<compile_context>
chip_gen: v7x
topology: tpu7x:2x2x1
jax: 0.10.0
libtpu: 0.0.40
codegen_flags: <defaults>
</compile_context>

<pallas_src>
import functools
import math

import jax
import jax.numpy as jnp
import numpy as np
from jax import lax
from jax.experimental import pallas as pl
from jax.experimental.pallas import tpu as pltpu


def _batch_kernel(x_ref, w_ref, b_ref, o_ref, *,
                  s, T, Cin, A, B, pad_t, pad_l, conv_pad):
    """All s*s output phases of one batch element, lane-dense (Cout, A*B) layout.

    x_ref : (1, Hp, Wp, Cin)        padded compact input (NHWC, channels on lanes)
    w_ref : (s, s, Cout, T*T*Cin)   per-phase sub-kernels, pre-transposed
    b_ref : (Cout, 1)               bias (zeros when the module has no bias)
    o_ref : (1, s, s, Cout, A*B)    lane-dense per-phase outputs
    """
    mm_dtype = w_ref.dtype
    for dh in range(s):
        sh = pad_t + (dh + conv_pad) // s - (T - 1)
        for dw in range(s):
            sw = pad_l + (dw + conv_pad) // s - (T - 1)
            # im2col in registers: T*T statically-shifted windows of the compact
            # input.  Channels stay on the lane axis; the shifts are pure static
            # row/col slices.  No VMEM scratch round trip.
            taps = [
                x_ref[0, sh + jh: sh + jh + A, sw + jw: sw + jw + B, :]
                .reshape(A * B, Cin)
                for jh in range(T) for jw in range(T)
            ]
            patches = jnp.concatenate(taps, axis=-1)          # (A*B, T*T*Cin)
            if patches.dtype != mm_dtype:
                patches = patches.astype(mm_dtype)
            w_t = w_ref[dh, dw]                               # (Cout, T*T*Cin)
            # One fused MXU matmul per phase, output lane-dense:
            #   acc[co, m] = sum_r w_t[co, r] * patches[m, r]   -> (Cout, A*B)
            acc = lax.dot_general(
                w_t, patches,
                dimension_numbers=(((1,), (1,)), ((), ())),
                preferred_element_type=jnp.float32)
            acc = acc + b_ref[...].astype(jnp.float32)        # (Cout, 1) broadcast
            o_ref[0, dh, dw] = acc.astype(o_ref.dtype)


def equalized_conv_transpose2d(x_nchw, weight, stride, padding, bias=None,
                               matmul_dtype=None):
    """Pallas equivalent of Equalized_ConvTranspose2d.forward.

    x_nchw       : (N, Cin, H, W)
    weight       : (Cin, Cout, K, K)   (unscaled, as stored by the module)
    bias         : (Cout,) float or None
    matmul_dtype : optional dtype for the MXU operands (e.g. jnp.bfloat16 on
                   v5e/v6e); accumulation is always f32.
    """
    N, Cin, H, W = x_nchw.shape
    Cin_w, Cout, K, K2 = weight.shape
    assert Cin_w == Cin and K == K2
    s, p = int(stride), int(padding)
    assert s >= 1 and p >= 0

    Ho = (H - 1) * s - 2 * p + K
    Wo = (W - 1) * s - 2 * p + K
    assert Ho >= 1 and Wo >= 1

    dtype = x_nchw.dtype
    scale = math.sqrt(2.0 / Cin)
    T = -(-K // s)          # taps per axis contributing to one output phase
    A = -(-Ho // s)         # per-phase output rows (extra rows cropped at the end)
    B = -(-Wo // s)         # per-phase output cols
    TTC = T * T * Cin

    # ---- polyphase weights, pre-transposed: (s, s, Cout, T*T*Cin) ------------
    # y[dh + s*a] = sum_j x[(dh+p)//s - (T-1) + a + j] * W[kh],
    #   kh = (dh+p)%s + s*(T-1-j)   (zero tap when kh >= K); same along width.
    w32 = weight.astype(jnp.float32) * scale                  # (Cin, Cout, K, K)
    zeros = jnp.zeros((Cin, Cout), jnp.float32)
    rows = []
    for dh in range(s):
        rh = (dh + p) % s
        cols = []
        for dw in range(s):
            rw = (dw + p) % s
            taps = []
            for jh in range(T):
                kh = rh + s * (T - 1 - jh)
                for jw in range(T):
                    kw = rw + s * (T - 1 - jw)
                    taps.append(w32[:, :, kh, kw] if (kh < K and kw < K) else zeros)
            # (T*T*Cin, Cout) -> (Cout, T*T*Cin): matches lane-dense acc layout.
            cols.append(jnp.concatenate(taps, axis=0).T)
        rows.append(jnp.stack(cols))
    w_dtype = matmul_dtype if matmul_dtype is not None else dtype
    w_phase = jnp.stack(rows).astype(w_dtype)                 # (s, s, Cout, TTC)

    # ---- compact input, NHWC, padded so every phase window is in bounds ------
    pad_t = max(0, (T - 1) - p // s)
    pad_l = pad_t
    max_e0 = (p + s - 1) // s - (T - 1)
    pad_b = max(0, max_e0 + A + T - 1 - H)
    pad_r = max(0, max_e0 + B + T - 1 - W)

    x_nhwc = jnp.transpose(x_nchw, (0, 2, 3, 1))              # (N, H, W, Cin)
    xp = jnp.pad(x_nhwc, ((0, 0), (pad_t, pad_b), (pad_l, pad_r), (0, 0)))
    Hp, Wp = H + pad_t + pad_b, W + pad_l + pad_r

    b_arr = jnp.zeros((Cout, 1), dtype) if bias is None else \
        jnp.asarray(bias, dtype).reshape(Cout, 1)

    kernel = functools.partial(_batch_kernel, s=s, T=T, Cin=Cin, A=A, B=B,
                               pad_t=pad_t, pad_l=pad_l, conv_pad=p)

    itemsize = jnp.dtype(dtype).itemsize
    cost = pl.CostEstimate(
        flops=2 * N * s * s * (A * B) * TTC * Cout,
        transcendentals=0,
        bytes_accessed=(xp.size * itemsize
                        + w_phase.size * jnp.dtype(w_dtype).itemsize
                        + N * s * s * Cout * A * B * itemsize))

    y = pl.pallas_call(
        kernel,
        out_shape=jax.ShapeDtypeStruct((N, s, s, Cout, A * B), dtype),
        grid=(N,),
        in_specs=[
            # padded compact input for this batch element (held across all phases)
            pl.BlockSpec((1, Hp, Wp, Cin), lambda n: (n, 0, 0, 0)),
            # all-phase flattened weights, resident in VMEM
            pl.BlockSpec((s, s, Cout, TTC), lambda n: (0, 0, 0, 0)),
            pl.BlockSpec((Cout, 1), lambda n: (0, 0)),
        ],
        out_specs=pl.BlockSpec((1, s, s, Cout, A * B), lambda n: (n, 0, 0, 0, 0)),
        compiler_params=pltpu.CompilerParams(dimension_semantics=("parallel",)),
        cost_estimate=cost,
    )(xp, w_phase, b_arr)

    # Interleave phases -> NCHW: out[n, co, s*a+dh, s*b+dw] = y[n, dh, dw, co, a*B+b]
    y = y.reshape(N, s, s, Cout, A, B)
    out = jnp.transpose(y, (0, 3, 4, 1, 5, 2)).reshape(N, Cout, A * s, B * s)
    return out[:, :, :Ho, :Wo]


def _reference(x_nchw, weight, stride, padding, bias=None):
    """Pure-XLA reference for F.conv_transpose2d(x, w*scale, bias, stride, padding)."""
    Cin = weight.shape[0]
    K = weight.shape[2]
    scale = math.sqrt(2.0 / Cin)
    w_f = jnp.transpose(weight, (1, 0, 2, 3))[:, :, ::-1, ::-1] * scale  # (Cout,Cin,K,K)
    pad = K - 1 - padding
    out = jax.lax.conv_general_dilated(
        x_nchw, w_f,
        window_strides=(1, 1),
        padding=[(pad, pad), (pad, pad)],
        lhs_dilation=(stride, stride),
        dimension_numbers=("NCHW", "OIHW", "NCHW"),
        precision=jax.lax.Precision.HIGHEST,
    )
    if bias is not None:
        out = out + jnp.asarray(bias, out.dtype)[None, :, None, None]
    return out


if __name__ == "__main__":
    # Module config: Equalized_ConvTranspose2d(4, 8, kernel_size=4, stride=2,
    #                                          padding=1, bias=False)
    in_channels, out_channels, kernel_size, stride, padding = 4, 8, 4, 2, 1

    key = jax.random.PRNGKey(0)
    kx, kw = jax.random.split(key)
    x = jax.random.normal(kx, (2, in_channels, 16, 16), dtype=jnp.float32)
    weight = jax.random.normal(
        kw, (in_channels, out_channels, kernel_size, kernel_size), dtype=jnp.float32)

    out = jax.block_until_ready(
        equalized_conv_transpose2d(x, weight, stride, padding, bias=None))
    ref = jax.block_until_ready(_reference(x, weight, stride, padding))
    assert out.shape == (2, out_channels, 32, 32), out.shape
    np.testing.assert_allclose(np.asarray(out), np.asarray(ref), rtol=1e-3, atol=1e-3)

    # bf16 MXU-operand path (native on v5e/v6e); accumulation stays f32.
    out_bf16 = jax.block_until_ready(
        equalized_conv_transpose2d(x, weight, stride, padding, bias=None,
                                   matmul_dtype=jnp.bfloat16))
    np.testing.assert_allclose(np.asarray(out_bf16), np.asarray(ref),
                               rtol=5e-2, atol=5e-2)

    # stride=1 degenerate path (single phase, T = K taps) with an explicit float bias.
    k2, s2, p2 = 3, 1, 1
    w2 = jax.random.normal(jax.random.PRNGKey(1),
                           (in_channels, out_channels, k2, k2), dtype=jnp.float32)
    b2 = 0.1 * jax.random.normal(jax.random.PRNGKey(2), (out_channels,),
                                 dtype=jnp.float32)
    out2 = jax.block_until_ready(equalized_conv_transpose2d(x, w2, s2, p2, bias=b2))
    ref2 = jax.block_until_ready(_reference(x, w2, s2, p2, bias=b2))
    assert out2.shape == (2, out_channels, 16, 16), out2.shape
    np.testing.assert_allclose(np.asarray(out2), np.asarray(ref2), rtol=1e-3, atol=1e-3)

    print("KERNEL_OK")
</pallas_src>

<mosaic_0001>
module attributes {stable_mosaic.version = 11 : i64} {
  func.func @_batch_kernel(%arg0: i32, %arg1: memref<1x18x18x4xf32, #tpu.memory_space<vmem>>, %arg2: memref<2x2x8x16xf32, #tpu.memory_space<vmem>>, %arg3: memref<8x1xf32, #tpu.memory_space<vmem>>, %arg4: memref<1x2x2x8x256xf32, #tpu.memory_space<vmem>>) attributes {dimension_semantics = [#tpu.dimension_semantics<parallel>], iteration_bounds = array<i64: 2>, scalar_prefetch = 0 : i64, scratch_operands = 0 : i64, tpu.core_type = #tpu.core_type<tc>, window_params = [{transform_indices = @transform_0, window_bounds = array<i64: 1, 18, 18, 4>}, {pipeline_mode = #tpu.pipeline_mode<synchronous>, transform_indices = @transform_1, window_bounds = array<i64: 2, 2, 8, 16>}, {pipeline_mode = #tpu.pipeline_mode<synchronous>, transform_indices = @transform_2, window_bounds = array<i64: 8, 1>}, {transform_indices = @transform_3, window_bounds = array<i64: 1, 2, 2, 8, 256>}]} {
    %c0 = arith.constant 0 : index
    %c0_0 = arith.constant 0 : index
    %c0_1 = arith.constant 0 : index
    %c0_2 = arith.constant 0 : index
    %0 = vector.load %arg1[%c0, %c0_0, %c0_1, %c0_2] : memref<1x18x18x4xf32, #tpu.memory_space<vmem>>, vector<1x16x16x4xf32>
    %1 = vector.shape_cast %0 : vector<1x16x16x4xf32> to vector<16x16x4xf32>
    %2 = vector.shape_cast %1 : vector<16x16x4xf32> to vector<256x4xf32>
    %c0_3 = arith.constant 0 : index
    %c0_4 = arith.constant 0 : index
    %c1 = arith.constant 1 : index
    %c0_5 = arith.constant 0 : index
    %3 = vector.load %arg1[%c0_3, %c0_4, %c1, %c0_5] : memref<1x18x18x4xf32, #tpu.memory_space<vmem>>, vector<1x16x16x4xf32>
    %4 = vector.shape_cast %3 : vector<1x16x16x4xf32> to vector<16x16x4xf32>
    %5 = vector.shape_cast %4 : vector<16x16x4xf32> to vector<256x4xf32>
    %c0_6 = arith.constant 0 : index
    %c1_7 = arith.constant 1 : index
    %c0_8 = arith.constant 0 : index
    %c0_9 = arith.constant 0 : index
    %6 = vector.load %arg1[%c0_6, %c1_7, %c0_8, %c0_9] : memref<1x18x18x4xf32, #tpu.memory_space<vmem>>, vector<1x16x16x4xf32>
    %7 = vector.shape_cast %6 : vector<1x16x16x4xf32> to vector<16x16x4xf32>
    %8 = vector.shape_cast %7 : vector<16x16x4xf32> to vector<256x4xf32>
    %c0_10 = arith.constant 0 : index
    %c1_11 = arith.constant 1 : index
    %c1_12 = arith.constant 1 : index
    %c0_13 = arith.constant 0 : index
    %9 = vector.load %arg1[%c0_10, %c1_11, %c1_12, %c0_13] : memref<1x18x18x4xf32, #tpu.memory_space<vmem>>, vector<1x16x16x4xf32>
    %10 = vector.shape_cast %9 : vector<1x16x16x4xf32> to vector<16x16x4xf32>
    %11 = vector.shape_cast %10 : vector<16x16x4xf32> to vector<256x4xf32>
    %12 = tpu.concatenate %2, %5, %8, %11 in 1 : vector<256x4xf32>, vector<256x4xf32>, vector<256x4xf32>, vector<256x4xf32> -> vector<256x16xf32>
    %c0_14 = arith.constant 0 : index
    %c0_15 = arith.constant 0 : index
    %c0_16 = arith.constant 0 : index
    %c0_17 = arith.constant 0 : index
    %13 = vector.load %arg2[%c0_14, %c0_15, %c0_16, %c0_17] : memref<2x2x8x16xf32, #tpu.memory_space<vmem>>, vector<1x1x8x16xf32>
    %14 = vector.shape_cast %13 : vector<1x1x8x16xf32> to vector<8x16xf32>
    %cst = arith.constant dense<0.000000e+00> : vector<8x256xf32>
    %15 = tpu.matmul %14, %12, %cst {dimension_numbers = #tpu.dot_dimension_numbers<[1], [1], [0], [0], [0, 0, 1, 0], [], []>} : vector<8x16xf32>, vector<256x16xf32>, vector<8x256xf32> -> vector<8x256xf32>
    %c0_18 = arith.constant 0 : index
    %c0_19 = arith.constant 0 : index
    %16 = vector.load %arg3[%c0_18, %c0_19] : memref<8x1xf32, #tpu.memory_space<vmem>>, vector<8x1xf32>
    %17 = vector.broadcast %16 : vector<8x1xf32> to vector<8x256xf32>
    %18 = arith.addf %15, %17 : vector<8x256xf32>
    %c0_20 = arith.constant 0 : index
    %c0_21 = arith.constant 0 : index
    %c0_22 = arith.constant 0 : index
    %c0_23 = arith.constant 0 : index
    %c0_24 = arith.constant 0 : index
    %19 = vector.load %arg4[%c0_20, %c0_21, %c0_22, %c0_23, %c0_24] : memref<1x2x2x8x256xf32, #tpu.memory_space<vmem>>, vector<1x1x1x8x256xf32>
    %20 = vector.shape_cast %19 : vector<1x1x1x8x256xf32> to vector<8x256xf32>
    %21 = vector.shape_cast %18 : vector<8x256xf32> to vector<1x1x1x8x256xf32>
    tpu.vector_store %arg4[%c0_20, %c0_21, %c0_22, %c0_23, %c0_24], %21 {strides = array<i32>} : memref<1x2x2x8x256xf32, #tpu.memory_space<vmem>>, vector<1x1x1x8x256xf32>,
    %c0_25 = arith.constant 0 : index
    %c0_26 = arith.constant 0 : index
    %c1_27 = arith.constant 1 : index
    %c0_28 = arith.constant 0 : index
    %22 = vector.load %arg1[%c0_25, %c0_26, %c1_27, %c0_28] : memref<1x18x18x4xf32, #tpu.memory_space<vmem>>, vector<1x16x16x4xf32>
    %23 = vector.shape_cast %22 : vector<1x16x16x4xf32> to vector<16x16x4xf32>
    %24 = vector.shape_cast %23 : vector<16x16x4xf32> to vector<256x4xf32>
    %c0_29 = arith.constant 0 : index
    %c0_30 = arith.constant 0 : index
    %c2 = arith.constant 2 : index
    %c0_31 = arith.constant 0 : index
    %25 = vector.load %arg1[%c0_29, %c0_30, %c2, %c0_31] : memref<1x18x18x4xf32, #tpu.memory_space<vmem>>, vector<1x16x16x4xf32>
    %26 = vector.shape_cast %25 : vector<1x16x16x4xf32> to vector<16x16x4xf32>
    %27 = vector.shape_cast %26 : vector<16x16x4xf32> to vector<256x4xf32>
    %c0_32 = arith.constant 0 : index
    %c1_33 = arith.constant 1 : index
    %c1_34 = arith.constant 1 : index
    %c0_35 = arith.constant 0 : index
    %28 = vector.load %arg1[%c0_32, %c1_33, %c1_34, %c0_35] : memref<1x18x18x4xf32, #tpu.memory_space<vmem>>, vector<1x16x16x4xf32>
    %29 = vector.shape_cast %28 : vector<1x16x16x4xf32> to vector<16x16x4xf32>
    %30 = vector.shape_cast %29 : vector<16x16x4xf32> to vector<256x4xf32>
    %c0_36 = arith.constant 0 : index
    %c1_37 = arith.constant 1 : index
    %c2_38 = arith.constant 2 : index
    %c0_39 = arith.constant 0 : index
    %31 = vector.load %arg1[%c0_36, %c1_37, %c2_38, %c0_39] : memref<1x18x18x4xf32, #tpu.memory_space<vmem>>, vector<1x16x16x4xf32>
    %32 = vector.shape_cast %31 : vector<1x16x16x4xf32> to vector<16x16x4xf32>
    %33 = vector.shape_cast %32 : vector<16x16x4xf32> to vector<256x4xf32>
    %34 = tpu.concatenate %24, %27, %30, %33 in 1 : vector<256x4xf32>, vector<256x4xf32>, vector<256x4xf32>, vector<256x4xf32> -> vector<256x16xf32>
    %c0_40 = arith.constant 0 : index
    %c1_41 = arith.constant 1 : index
    %c0_42 = arith.constant 0 : index
    %c0_43 = arith.constant 0 : index
    %35 = vector.load %arg2[%c0_40, %c1_41, %c0_42, %c0_43] : memref<2x2x8x16xf32, #tpu.memory_space<vmem>>, vector<1x1x8x16xf32>
    %36 = vector.shape_cast %35 : vector<1x1x8x16xf32> to vector<8x16xf32>
    %cst_44 = arith.constant dense<0.000000e+00> : vector<8x256xf32>
    %37 = tpu.matmul %36, %34, %cst_44 {dimension_numbers = #tpu.dot_dimension_numbers<[1], [1], [0], [0], [0, 0, 1, 0], [], []>} : vector<8x16xf32>, vector<256x16xf32>, vector<8x256xf32> -> vector<8x256xf32>
    %c0_45 = arith.constant 0 : index
    %c0_46 = arith.constant 0 : index
    %38 = vector.load %arg3[%c0_45, %c0_46] : memref<8x1xf32, #tpu.memory_space<vmem>>, vector<8x1xf32>
    %39 = vector.broadcast %38 : vector<8x1xf32> to vector<8x256xf32>
    %40 = arith.addf %37, %39 : vector<8x256xf32>
    %c0_47 = arith.constant 0 : index
    %c0_48 = arith.constant 0 : index
    %c1_49 = arith.constant 1 : index
    %c0_50 = arith.constant 0 : index
    %c0_51 = arith.constant 0 : index
    %41 = vector.load %arg4[%c0_47, %c0_48, %c1_49, %c0_50, %c0_51] : memref<1x2x2x8x256xf32, #tpu.memory_space<vmem>>, vector<1x1x1x8x256xf32>
    %42 = vector.shape_cast %41 : vector<1x1x1x8x256xf32> to vector<8x256xf32>
    %43 = vector.shape_cast %40 : vector<8x256xf32> to vector<1x1x1x8x256xf32>
    tpu.vector_store %arg4[%c0_47, %c0_48, %c1_49, %c0_50, %c0_51], %43 {strides = array<i32>} : memref<1x2x2x8x256xf32, #tpu.memory_space<vmem>>, vector<1x1x1x8x256xf32>,
    %c0_52 = arith.constant 0 : index
    %c1_53 = arith.constant 1 : index
    %c0_54 = arith.constant 0 : index
    %c0_55 = arith.constant 0 : index
    %44 = vector.load %arg1[%c0_52, %c1_53, %c0_54, %c0_55] : memref<1x18x18x4xf32, #tpu.memory_space<vmem>>, vector<1x16x16x4xf32>
    %45 = vector.shape_cast %44 : vector<1x16x16x4xf32> to vector<16x16x4xf32>
    %46 = vector.shape_cast %45 : vector<16x16x4xf32> to vector<256x4xf32>
    %c0_56 = arith.constant 0 : index
    %c1_57 = arith.constant 1 : index
    %c1_58 = arith.constant 1 : index
    %c0_59 = arith.constant 0 : index
    %47 = vector.load %arg1[%c0_56, %c1_57, %c1_58, %c0_59] : memref<1x18x18x4xf32, #tpu.memory_space<vmem>>, vector<1x16x16x4xf32>
    %48 = vector.shape_cast %47 : vector<1x16x16x4xf32> to vector<16x16x4xf32>
    %49 = vector.shape_cast %48 : vector<16x16x4xf32> to vector<256x4xf32>
    %c0_60 = arith.constant 0 : index
    %c2_61 = arith.constant 2 : index
    %c0_62 = arith.constant 0 : index
    %c0_63 = arith.constant 0 : index
    %50 = vector.load %arg1[%c0_60, %c2_61, %c0_62, %c0_63] : memref<1x18x18x4xf32, #tpu.memory_space<vmem>>, vector<1x16x16x4xf32>
    %51 = vector.shape_cast %50 : vector<1x16x16x4xf32> to vector<16x16x4xf32>
    %52 = vector.shape_cast %51 : vector<16x16x4xf32> to vector<256x4xf32>
    %c0_64 = arith.constant 0 : index
    %c2_65 = arith.constant 2 : index
    %c1_66 = arith.constant 1 : index
    %c0_67 = arith.constant 0 : index
    %53 = vector.load %arg1[%c0_64, %c2_65, %c1_66, %c0_67] : memref<1x18x18x4xf32, #tpu.memory_space<vmem>>, vector<1x16x16x4xf32>
    %54 = vector.shape_cast %53 : vector<1x16x16x4xf32> to vector<16x16x4xf32>
    %55 = vector.shape_cast %54 : vector<16x16x4xf32> to vector<256x4xf32>
    %56 = tpu.concatenate %46, %49, %52, %55 in 1 : vector<256x4xf32>, vector<256x4xf32>, vector<256x4xf32>, vector<256x4xf32> -> vector<256x16xf32>
    %c1_68 = arith.constant 1 : index
    %c0_69 = arith.constant 0 : index
    %c0_70 = arith.constant 0 : index
    %c0_71 = arith.constant 0 : index
    %57 = vector.load %arg2[%c1_68, %c0_69, %c0_70, %c0_71] : memref<2x2x8x16xf32, #tpu.memory_space<vmem>>, vector<1x1x8x16xf32>
    %58 = vector.shape_cast %57 : vector<1x1x8x16xf32> to vector<8x16xf32>
    %cst_72 = arith.constant dense<0.000000e+00> : vector<8x256xf32>
    %59 = tpu.matmul %58, %56, %cst_72 {dimension_numbers = #tpu.dot_dimension_numbers<[1], [1], [0], [0], [0, 0, 1, 0], [], []>} : vector<8x16xf32>, vector<256x16xf32>, vector<8x256xf32> -> vector<8x256xf32>
    %c0_73 = arith.constant 0 : index
    %c0_74 = arith.constant 0 : index
    %60 = vector.load %arg3[%c0_73, %c0_74] : memref<8x1xf32, #tpu.memory_space<vmem>>, vector<8x1xf32>
    %61 = vector.broadcast %60 : vector<8x1xf32> to vector<8x256xf32>
    %62 = arith.addf %59, %61 : vector<8x256xf32>
    %c0_75 = arith.constant 0 : index
    %c1_76 = arith.constant 1 : index
    %c0_77 = arith.constant 0 : index
    %c0_78 = arith.constant 0 : index
    %c0_79 = arith.constant 0 : index
    %63 = vector.load %arg4[%c0_75, %c1_76, %c0_77, %c0_78, %c0_79] : memref<1x2x2x8x256xf32, #tpu.memory_space<vmem>>, vector<1x1x1x8x256xf32>
    %64 = vector.shape_cast %63 : vector<1x1x1x8x256xf32> to vector<8x256xf32>
    %65 = vector.shape_cast %62 : vector<8x256xf32> to vector<1x1x1x8x256xf32>
    tpu.vector_store %arg4[%c0_75, %c1_76, %c0_77, %c0_78, %c0_79], %65 {strides = array<i32>} : memref<1x2x2x8x256xf32, #tpu.memory_space<vmem>>, vector<1x1x1x8x256xf32>,
    %c0_80 = arith.constant 0 : index
    %c1_81 = arith.constant 1 : index
    %c1_82 = arith.constant 1 : index
    %c0_83 = arith.constant 0 : index
    %66 = vector.load %arg1[%c0_80, %c1_81, %c1_82, %c0_83] : memref<1x18x18x4xf32, #tpu.memory_space<vmem>>, vector<1x16x16x4xf32>
    %67 = vector.shape_cast %66 : vector<1x16x16x4xf32> to vector<16x16x4xf32>
    %68 = vector.shape_cast %67 : vector<16x16x4xf32> to vector<256x4xf32>
    %c0_84 = arith.constant 0 : index
    %c1_85 = arith.constant 1 : index
    %c2_86 = arith.constant 2 : index
    %c0_87 = arith.constant 0 : index
    %69 = vector.load %arg1[%c0_84, %c1_85, %c2_86, %c0_87] : memref<1x18x18x4xf32, #tpu.memory_space<vmem>>, vector<1x16x16x4xf32>
    %70 = vector.shape_cast %69 : vector<1x16x16x4xf32> to vector<16x16x4xf32>
    %71 = vector.shape_cast %70 : vector<16x16x4xf32> to vector<256x4xf32>
    %c0_88 = arith.constant 0 : index
    %c2_89 = arith.constant 2 : index
    %c1_90 = arith.constant 1 : index
    %c0_91 = arith.constant 0 : index
    %72 = vector.load %arg1[%c0_88, %c2_89, %c1_90, %c0_91] : memref<1x18x18x4xf32, #tpu.memory_space<vmem>>, vector<1x16x16x4xf32>
    %73 = vector.shape_cast %72 : vector<1x16x16x4xf32> to vector<16x16x4xf32>
    %74 = vector.shape_cast %73 : vector<16x16x4xf32> to vector<256x4xf32>
    %c0_92 = arith.constant 0 : index
    %c2_93 = arith.constant 2 : index
    %c2_94 = arith.constant 2 : index
    %c0_95 = arith.constant 0 : index
    %75 = vector.load %arg1[%c0_92, %c2_93, %c2_94, %c0_95] : memref<1x18x18x4xf32, #tpu.memory_space<vmem>>, vector<1x16x16x4xf32>
    %76 = vector.shape_cast %75 : vector<1x16x16x4xf32> to vector<16x16x4xf32>
    %77 = vector.shape_cast %76 : vector<16x16x4xf32> to vector<256x4xf32>
    %78 = tpu.concatenate %68, %71, %74, %77 in 1 : vector<256x4xf32>, vector<256x4xf32>, vector<256x4xf32>, vector<256x4xf32> -> vector<256x16xf32>
    %c1_96 = arith.constant 1 : index
    %c1_97 = arith.constant 1 : index
    %c0_98 = arith.constant 0 : index
    %c0_99 = arith.constant 0 : index
    %79 = vector.load %arg2[%c1_96, %c1_97, %c0_98, %c0_99] : memref<2x2x8x16xf32, #tpu.memory_space<vmem>>, vector<1x1x8x16xf32>
    %80 = vector.shape_cast %79 : vector<1x1x8x16xf32> to vector<8x16xf32>
    %cst_100 = arith.constant dense<0.000000e+00> : vector<8x256xf32>
    %81 = tpu.matmul %80, %78, %cst_100 {dimension_numbers = #tpu.dot_dimension_numbers<[1], [1], [0], [0], [0, 0, 1, 0], [], []>} : vector<8x16xf32>, vector<256x16xf32>, vector<8x256xf32> -> vector<8x256xf32>
    %c0_101 = arith.constant 0 : index
    %c0_102 = arith.constant 0 : index
    %82 = vector.load %arg3[%c0_101, %c0_102] : memref<8x1xf32, #tpu.memory_space<vmem>>, vector<8x1xf32>
    %83 = vector.broadcast %82 : vector<8x1xf32> to vector<8x256xf32>
    %84 = arith.addf %81, %83 : vector<8x256xf32>
    %c0_103 = arith.constant 0 : index
    %c1_104 = arith.constant 1 : index
    %c1_105 = arith.constant 1 : index
    %c0_106 = arith.constant 0 : index
    %c0_107 = arith.constant 0 : index
    %85 = vector.load %arg4[%c0_103, %c1_104, %c1_105, %c0_106, %c0_107] : memref<1x2x2x8x256xf32, #tpu.memory_space<vmem>>, vector<1x1x1x8x256xf32>
    %86 = vector.shape_cast %85 : vector<1x1x1x8x256xf32> to vector<8x256xf32>
    %87 = vector.shape_cast %84 : vector<8x256xf32> to vector<1x1x1x8x256xf32>
    tpu.vector_store %arg4[%c0_103, %c1_104, %c1_105, %c0_106, %c0_107], %87 {strides = array<i32>} : memref<1x2x2x8x256xf32, #tpu.memory_space<vmem>>, vector<1x1x1x8x256xf32>,
    return
  }
  func.func @transform_0(%arg0: i32) -> (i32, i32, i32, i32) {
    %c0_i32 = arith.constant 0 : i32
    %c0_i32_0 = arith.constant 0 : i32
    %c0_i32_1 = arith.constant 0 : i32
    %c0_i32_2 = arith.constant 0 : i32
    return %arg0, %c0_i32, %c0_i32_0, %c0_i32_1 : i32, i32, i32, i32
  }
  func.func @transform_1(%arg0: i32) -> (i32, i32, i32, i32) {
    %c0_i32 = arith.constant 0 : i32
    %c0_i32_0 = arith.constant 0 : i32
    %c0_i32_1 = arith.constant 0 : i32
    %c0_i32_2 = arith.constant 0 : i32
    %c0_i32_3 = arith.constant 0 : i32
    return %c0_i32, %c0_i32_0, %c0_i32_1, %c0_i32_2 : i32, i32, i32, i32
  }
  func.func @transform_2(%arg0: i32) -> (i32, i32) {
    %c0_i32 = arith.constant 0 : i32
    %c0_i32_0 = arith.constant 0 : i32
    %c0_i32_1 = arith.constant 0 : i32
    return %c0_i32, %c0_i32_0 : i32, i32
  }
  func.func @transform_3(%arg0: i32) -> (i32, i32, i32, i32, i32) {
    %c0_i32 = arith.constant 0 : i32
    %c0_i32_0 = arith.constant 0 : i32
    %c0_i32_1 = arith.constant 0 : i32
    %c0_i32_2 = arith.constant 0 : i32
    %c0_i32_3 = arith.constant 0 : i32
    return %arg0, %c0_i32, %c0_i32_0, %c0_i32_1, %c0_i32_2 : i32, i32, i32, i32, i32
  }
}

</mosaic_0001>

<bundles_post_ra>
// kernel: tpu_custom_call.1
= control target key start
LH: loop header
LB: loop body
LE: loop exit
PB: predicated region body
PF: predicated region fallthrough
CT: control target
= control target key end

     0   :  { %8 = vsyncpa [#allocation3], 0  ;;  %s7594_s0 = inlined_call_operand.vmem [shape: f32[2,18,18,4], index: 0, kind: input, shape index: {}]   ;;  %s7595_s1 = inlined_call_operand.vmem [shape: f32[2,2,8,16], index: 1, kind: input, shape index: {}]   ;;  %s7596_s2 = inlined_call_operand.vmem [shape: f32[8,1], index: 2, kind: input, shape index: {}]   ;;  %s7597_s3 = inlined_call_operand.hbm [shape: f32[2,2,2,8,256], index: 3, kind: output, shape index: {}]  }
   0x1   :  { %10 = vsyncpa [#allocation3 + $0x1], 0  ;;  %s5416_s12 = smov 0   ;;  %s5418_s13 = smov 0  }
   0x2   :  { %s5420_s14 = smov 0   ;;  %s5422_s15 = smov 0  }
   0x3 LB: > { %s5437_s16 = sadd.s32 4294967295, %s5387_s15   ;;  %s3405_s17 = sadd.s32 4294967294, %s5387_s15   ;;  %s5387_s15 = sphi %s5422_s15, %s7783_s15   ;;  %s5383_s14 = sphi %s5420_s14, %s7782_s14   ;;  %s5379_s13 = sphi %s5418_s13, %s7781_s13   ;;  %s5375_s12 = sphi %s5416_s12, %s7780_s12  }
   0x4   : > { %s5441_s18 = sadd.s32 1, %s5387_s15   ;;  %s91_s19 = sadd.s32 1, %s5383_s14 }
   0x5   : > { %s88_s20 = ssub.s32 %s5387_s15, %s5441_s18  ;;  %p101_p0 = scmp.ne.s32.totalorder %s5383_s14, %s5379_s13 }
   0x6   : > { %p89_p1 = scmp.eq.s32.totalorder %s88_s20, 0  ;;  %p102_p2 = scmp.eq.s32.totalorder %s5437_s16, 1 }
   0x7   : > { %p107_p3 = scmp.ne.s32.totalorder %s5379_s13, %s5375_s12  ;;  %p108_p4 = scmp.eq.s32.totalorder %s3405_s17, 1 }
   0x8   : > { %s5452_s21 = scalar_select %p89_p1, %s5383_s14, %s91_s19  }
   0x9   : > { %p5454_p5 = por %p102_p2, %p101_p0  ;;  %p5458_p6 = por %p108_p4, %p107_p3 }
   0xa   : > { %p3408_p7 = scmp.ge.s32.totalorder %s5387_s15, 1  ;;  %p140_p8 = scmp.lt.s32.totalorder %s5387_s15, 3 }
   0xc   : > { %p141_p9 = pnand %p3408_p7, %p140_p8 }
   0xe   : > { %144 = sbr.rel (%p141_p9) target bundleno = 786 (0x312), region = 32 }
  0x15   : > { %p164_p10 = scmp.lt.s32.totalorder %s5437_s16, 1  ;;  %v5389_v0 = vmov 0   ;;  %s5390_s29 = smov 4   ;;  %vm788_vm0 = vcmask 130048   ;;  %vm682_vm1 = vcmask 31744   ;;  %vm715_vm2 = vcmask 64512  }
  0x16   : > { %4556 = vset.pattern.permute.xlu0 %v5389_v0  ;;  %5277 = vset.pattern.permute.xlu1 %v5389_v0  ;;  %s5391_s30 = smov 8   ;;  %s5392_s4 = smov 12   ;;  %vm748_vm3 = vcmask 97280   ;;  %vm6056_vm4 = vmpackc.low %vm788_vm0, %vm788_vm0 }
  0x17   : > { %s165_s24 = scalar_select %p164_p10, %s5437_s16, 1 }
  0x18   : > { %s5393_s10 = smov [#allocation2]  }
  0x19   : > { %s4270_s25 = smul.u32 432, %s165_s24  ;;  %s5329_s11 = sshll.u32 %s5393_s10, 4  ;;  %s5330_s11 = int_to_ptr.vmem [resolvable:$false] %s5329_s11 }
  0x1a   : > { %s5331_s17 = scalar_lea.vmem %s5330_s11, 2048 }
  0x1b   : > { %s5469_s28 = scalar_lea.vmem %s7594_s0, %s4270_s25 }
  0x1c   : > { %v205_v1 = vld [vmem:[%s5469_s28 + $0x31] sm:$0xff]  ;;  %v206_v2 = vld [vmem:[%s5469_s28 + $0x39] sm:$0xff]  ;;  %v201_v3 = vld [vmem:[%s5469_s28 + $0x1] sm:$0xff] }
  0x1d   : > { %v5474_v4 = vpack.i.bf16 %v206_v2, %v205_v1  ;;  %v202_v5 = vld [vmem:[%s5469_s28 + $0x9] sm:$0xff]  ;;  %v208_v7 = vld [vmem:[%s5469_s28 + $0x51] sm:$0xff]  ;;  %v203_v9 = vld [vmem:[%s5469_s28 + $0x19] sm:$0xff] }
  0x1e   : > { %v207_v6 = vld [vmem:[%s5469_s28 + $0x49] sm:$0xff]  ;;  %v4316_v8 = vpack.i.bf16 %v202_v5, %v201_v3  ;;  %v204_v10 = vld [vmem:[%s5469_s28 + $0x21] sm:$0xff]  ;;  %v211_v13 = vld [vmem:[%s5469_s28 + $0x79] sm:$0xff] }
  0x1f   : > { %4327 = vrot.lane.b32.xlu1 %v5474_v4, %s5390_s29  ;;  %v5483_v11 = vpack.i.bf16 %v208_v7, %v207_v6  ;;  %v5486_v12 = vpack.i.bf16 %v204_v10, %v203_v9  ;;  %v212_v14 = vld [vmem:[%s5469_s28 + $0x81] sm:$0xff]  ;;  %v210_v16 = vld [vmem:[%s5469_s28 + $0x69] sm:$0xff]  ;;  %v216_v20 = vld [vmem:[%s5469_s28 + $0xb1] sm:$0xff] }
  0x20   : > { %4317 = vrot.lane.b32.xlu0 %v4316_v8, %s5390_s29  ;;  %v209_v15 = vld [vmem:[%s5469_s28 + $0x61] sm:$0xff]  ;;  %v5494_v17 = vpack.i.bf16 %v212_v14, %v211_v13  ;;  %v215_v19 = vld [vmem:[%s5469_s28 + $0xa9] sm:$0xff]  ;;  %v213_v21 = vld [vmem:[%s5469_s28 + $0x91] sm:$0xff] }
  0x21   : > { %v5498_v18 = vpack.i.bf16 %v210_v16, %v209_v15  ;;  %v214_v22 = vld [vmem:[%s5469_s28 + $0x99] sm:$0xff]  ;;  %v5506_v23 = vpack.i.bf16 %v216_v20, %v215_v19  ;;  %v220_v26 = vld [vmem:[%s5469_s28 + $0xe1] sm:$0xff]  ;;  %v218_v28 = vld [vmem:[%s5469_s28 + $0xc9] sm:$0xff] }
  0x22   : > { %v5510_v24 = vpack.i.bf16 %v214_v22, %v213_v21  ;;  %v219_v25 = vld [vmem:[%s5469_s28 + $0xd9] sm:$0xff]  ;;  %v217_v27 = vld [vmem:[%s5469_s28 + $0xc1] sm:$0xff]  ;;  %v223_v31 = vld [vmem:[%s5469_s28 + $0x109] sm:$0xff] }
  0x23   : > { %4332 = vrot.lane.b32.xlu1 %v5483_v11, %s5390_s29  ;;  %v5518_v29 = vpack.i.bf16 %v220_v26, %v219_v25  ;;  %v5522_v30 = vpack.i.bf16 %v218_v28, %v217_v27  ;;  %v224_v32 = vld [vmem:[%s5469_s28 + $0x111] sm:$0xff]  ;;  %v222_v34 = vld [vmem:[%s5469_s28 + $0xf9] sm:$0xff]  ;;  %v228_v38 = vld [vmem:[%s5469_s28 + $0x141] sm:$0xff] }
  0x24   : > { %4322 = vrot.lane.b32.xlu0 %v5486_v12, %s5390_s29  ;;  %v221_v33 = vld [vmem:[%s5469_s28 + $0xf1] sm:$0xff]  ;;  %v5530_v35 = vpack.i.bf16 %v224_v32, %v223_v31  ;;  %v227_v37 = vld [vmem:[%s5469_s28 + $0x139] sm:$0xff]  ;;  %v225_v39 = vld [vmem:[%s5469_s28 + $0x121] sm:$0xff] }
  0x25   : > { %v5534_v36 = vpack.i.bf16 %v222_v34, %v221_v33  ;;  %v226_v40 = vld [vmem:[%s5469_s28 + $0x129] sm:$0xff]  ;;  %v5542_v41 = vpack.i.bf16 %v228_v38, %v227_v37  ;;  %v232_v44 = vld [vmem:[%s5469_s28 + $0x171] sm:$0xff]  ;;  %v230_v46 = vld [vmem:[%s5469_s28 + $0x159] sm:$0xff] }
  0x26   : > { %v5546_v42 = vpack.i.bf16 %v226_v40, %v225_v39  ;;  %v231_v43 = vld [vmem:[%s5469_s28 + $0x169] sm:$0xff]  ;;  %v229_v45 = vld [vmem:[%s5469_s28 + $0x151] sm:$0xff]  ;;  %v5570_v52 = vld [vmem:[%s5469_s28 + $0x20] sm:$0xff] }
  0x27   : > { %4342 = vrot.lane.b32.xlu1 %v5494_v17, %s5390_s29  ;;  %v5554_v47 = vpack.i.bf16 %v232_v44, %v231_v43  ;;  %v5558_v48 = vpack.i.bf16 %v230_v46, %v229_v45  ;;  %v5561_v49 = vld [vmem:[%s5469_s28 + $0x30] sm:$0xff]  ;;  %v5564_v50 = vld [vmem:[%s5469_s28 + $0x38] sm:$0xff]  ;;  %v5581_v55 = vld [vmem:[%s5469_s28 + $0x60] sm:$0xff] }
  0x28   : > { %4337 = vrot.lane.b32.xlu0 %v5498_v18, %s5390_s29  ;;  %v5567_v51 = vld [vmem:[%s5469_s28 + $0x18] sm:$0xff]  ;;  %v4401_v53 = vpack.i.bf16 %v5564_v50, %v5561_v49  ;;  %7658 = vst [vmem:[#allocation5_spill] sm:$0xff] %v5581_v55  ;;  %v5584_v56 = vld [vmem:[%s5469_s28 + $0x68] sm:$0xff]  ;;  %v5590_v58 = vld [vmem:[%s5469_s28 + $0x50] sm:$0xff] }
  0x29   : > { %v4396_v54 = vpack.i.bf16 %v5570_v52, %v5567_v51  ;;  %7659 = vst [vmem:[#allocation6_spill] sm:$0xff] %v5584_v56  ;;  %v5587_v57 = vld [vmem:[%s5469_s28 + $0x48] sm:$0xff]  ;;  %7660 = vst [vmem:[#allocation7_spill] sm:$0xff] %v5590_v58  ;;  %v4411_v59 = vpack.i.bf16 %v5584_v56, %v5581_v55  ;;  %v3421_v61 = vld [vmem:[%s5469_s28 + $0x90] sm:$0xff] }
  0x2a   : > { %v4406_v60 = vpack.i.bf16 %v5590_v58, %v5587_v57  ;;  %v3422_v62 = vld [vmem:[%s5469_s28 + $0x98] sm:$0xff]  ;;  %v5604_v0 = vld [vmem:[%s5469_s28 + $0x80] sm:$0xff]  ;;  %v3426_v5 = vld [vmem:[%s5469_s28 + $0xc8] sm:$0xff] }
  0x2b   : > { %4352 = vrot.lane.b32.xlu1 %v5506_v23, %s5390_s29  ;;  %v5601_v63 = vld [vmem:[%s5469_s28 + $0x78] sm:$0xff]  ;;  %7662 = vst [vmem:[#allocation9_spill] sm:$0xff] %v5604_v0  ;;  %v4421_v1 = vpack.i.bf16 %v3422_v62, %v3421_v61  ;;  %v3425_v3 = vld [vmem:[%s5469_s28 + $0xc0] sm:$0xff]  ;;  %v3423_v6 = vld [vmem:[%s5469_s28 + $0xa8] sm:$0xff] }
  0x2c   : > { %4347 = vrot.lane.b32.xlu0 %v5510_v24, %s5390_s29  ;;  %7661 = vst [vmem:[#allocation8_spill] sm:$0xff] %v5601_v63  ;;  %v4416_v2 = vpack.i.bf16 %v5604_v0, %v5601_v63  ;;  %v3424_v7 = vld [vmem:[%s5469_s28 + $0xb0] sm:$0xff]  ;;  %v4431_v8 = vpack.i.bf16 %v3426_v5, %v3425_v3  ;;  %v5620_v13 = vld [vmem:[%s5469_s28 + $0xf8] sm:$0xff]  ;;  %v5626_v15 = vld [vmem:[%s5469_s28 + $0xe0] sm:$0xff] }
  0x2d   : > { %v4426_v9 = vpack.i.bf16 %v3424_v7, %v3423_v6  ;;  %v5617_v10 = vld [vmem:[%s5469_s28 + $0xf0] sm:$0xff]  ;;  %v5623_v14 = vld [vmem:[%s5469_s28 + $0xd8] sm:$0xff]  ;;  %v5635_v20 = vld [vmem:[%s5469_s28 + $0x120] sm:$0xff] }
  0x2e   : > { %v4441_v16 = vpack.i.bf16 %v5620_v13, %v5617_v10  ;;  %v4436_v19 = vpack.i.bf16 %v5626_v15, %v5623_v14  ;;  %7663 = vst [vmem:[#allocation10_spill] sm:$0xff] %v5635_v20  ;;  %v5638_v21 = vld [vmem:[%s5469_s28 + $0x128] sm:$0xff]  ;;  %v5644_v25 = vld [vmem:[%s5469_s28 + $0x110] sm:$0xff]  ;;  %v5656_v31 = vld [vmem:[%s5469_s28 + $0x158] sm:$0xff] }
  0x2f   : > { %4362 = vrot.lane.b32.xlu1 %v5518_v29, %s5390_s29  ;;  %7664 = vst [vmem:[#allocation11_spill] sm:$0xff] %v5638_v21  ;;  %v5641_v22 = vld [vmem:[%s5469_s28 + $0x108] sm:$0xff]  ;;  %v4451_v26 = vpack.i.bf16 %v5638_v21, %v5635_v20  ;;  %v5653_v28 = vld [vmem:[%s5469_s28 + $0x150] sm:$0xff]  ;;  %7666 = vst [vmem:[#allocation13_spill] sm:$0xff] %v5656_v31 }
  0x30   : > { %4357 = vrot.lane.b32.xlu0 %v5522_v30, %s5390_s29  ;;  %v4446_v27 = vpack.i.bf16 %v5644_v25, %v5641_v22  ;;  %7665 = vst [vmem:[#allocation12_spill] sm:$0xff] %v5653_v28  ;;  %v5659_v32 = vld [vmem:[%s5469_s28 + $0x138] sm:$0xff]  ;;  %v5662_v33 = vld [vmem:[%s5469_s28 + $0x140] sm:$0xff]  ;;  %v4461_v34 = vpack.i.bf16 %v5656_v31, %v5653_v28  ;;  %v3442_v39 = vld [vmem:[%s5469_s28 + $0x188] sm:$0xff] }
  0x31   : > { %7667 = vst [vmem:[#allocation14_spill] sm:$0xff] %v5659_v32  ;;  %7668 = vst [vmem:[#allocation15_spill] sm:$0xff] %v5662_v33  ;;  %v4456_v37 = vpack.i.bf16 %v5662_v33, %v5659_v32  ;;  %v3441_v38 = vld [vmem:[%s5469_s28 + $0x180] sm:$0xff]  ;;  %v5673_v40 = vld [vmem:[%s5469_s28 + $0x168] sm:$0xff] }
  0x32   : > { %7669 = vst [vmem:[#allocation16_spill] sm:$0xff] %v5673_v40  ;;  %v5676_v43 = vld [vmem:[%s5469_s28 + $0x170] sm:$0xff]  ;;  %v4471_v44 = vpack.i.bf16 %v3442_v39, %v3441_v38  ;;  %v3473_v46 = vld [vmem:[%s5469_s28 + $0x181] sm:$0xff] }
  0x33   : > { %4372 = vrot.lane.b32.xlu1 %v5530_v35, %s5390_s29  ;;  %7670 = vst [vmem:[#allocation17_spill] sm:$0xff] %v5676_v43  ;;  %v4466_v45 = vpack.i.bf16 %v5676_v43, %v5673_v40  ;;  %v995_v62 = vld [vmem:[%s5469_s28 + $0x1a] sm:$0xff]  ;;  %v997_v3 = vld [vmem:[%s5469_s28 + $0x32] sm:$0xff] }
  0x34   : > { %4367 = vrot.lane.b32.xlu0 %v5534_v36, %s5390_s29  ;;  %v998_v5 = vld [vmem:[%s5469_s28 + $0x3a] sm:$0xff]  ;;  %v1005_v38 = vld [vmem:[%s5469_s28 + $0x92] sm:$0xff] }
  0x35   : > { %v5735_v7 = vpack.i.bf16 %v998_v5, %v997_v3  ;;  %v1006_v39 = vld [vmem:[%s5469_s28 + $0x9a] sm:$0xff]  ;;  %v5777_v3 = vld [vmem:[%s5469_s28 + $0xe2] sm:$0xff]  ;;  %v1013_v5 = vld [vmem:[%s5469_s28 + $0xf2] sm:$0xff] }
  0x36   : > { %v1021_v43 = vld [vmem:[%s5469_s28 + $0x152] sm:$0xff]  ;;  %v1022_v40 = vld [vmem:[%s5469_s28 + $0x15a] sm:$0xff] }
  0x37   : > { %4382 = vrot.lane.b32.xlu1 %v5542_v41, %s5390_s29  ;;  %v5990_v55 = vld [vmem:[%s5469_s28 + $0x91] sm:$0xff] }
  0x38   : > { %4377 = vrot.lane.b32.xlu0 %v5546_v42, %s5390_s29 }
  0x3b   : > { %4392 = vrot.lane.b32.xlu1 %v5554_v47, %s5390_s29 }
  0x3c   : > { %4387 = vrot.lane.b32.xlu0 %v5558_v48, %s5390_s29 }
  0x3f   : > { %4402 = vrot.lane.b32.xlu1 %v4401_v53, %s5391_s30  ;;  %v3474_v53 = vld [vmem:[%s5469_s28 + $0x189] sm:$0xff] }
  0x40   : > { %4397 = vrot.lane.b32.xlu0 %v4396_v54, %s5391_s30  ;;  %v5712_v54 = vpack.i.bf16 %v3474_v53, %v3473_v46  ;;  %v1007_v46 = vld [vmem:[%s5469_s28 + $0xaa] sm:$0xff]  ;;  %v1008_v53 = vld [vmem:[%s5469_s28 + $0xb2] sm:$0xff] }
  0x43   : > { %4412 = vrot.lane.b32.xlu1 %v4411_v59, %s5391_s30  ;;  %v993_v59 = vld [vmem:[%s5469_s28 + $0x2] sm:$0xff] }
  0x44   : > { %4407 = vrot.lane.b32.xlu0 %v4406_v60, %s5391_s30  ;;  %v994_v60 = vld [vmem:[%s5469_s28 + $0xa] sm:$0xff] }
  0x45   : > { %v4557_v61 = vpack.i.bf16 %v994_v60, %v993_v59  ;;  %v1009_v59 = vld [vmem:[%s5469_s28 + $0xc2] sm:$0xff]  ;;  %v1010_v60 = vld [vmem:[%s5469_s28 + $0xca] sm:$0xff] }
  0x47   : > { %4422 = vrot.lane.b32.xlu1 %v4421_v1, %s5391_s30  ;;  %v996_v1 = vld [vmem:[%s5469_s28 + $0x22] sm:$0xff] }
  0x48   : > { %4417 = vrot.lane.b32.xlu0 %v4416_v2, %s5391_s30  ;;  %v5727_v2 = vld [vmem:[%s7596_s2] sm:$0xff]  ;;  %v5732_v6 = vpack.i.bf16 %v996_v1, %v995_v62  ;;  %v5771_v62 = vpack.i.bf16 %v1010_v60, %v1009_v59 }
  0x49   : > { %v5774_v1 = vld [vmem:[%s5469_s28 + $0xda] sm:$0xff] }
  0x4a   : > { %v1019_v60 = vld [vmem:[%s5469_s28 + $0x13a] sm:$0xff] }
  0x4b   : > { %4432 = vrot.lane.b32.xlu1 %v4431_v8, %s5391_s30  ;;  %v999_v8 = vld [vmem:[%s5469_s28 + $0x4a] sm:$0xff] }
  0x4c   : > { %4427 = vrot.lane.b32.xlu0 %v4426_v9, %s5391_s30  ;;  %v1000_v9 = vld [vmem:[%s5469_s28 + $0x52] sm:$0xff] }
  0x4f   : > { %4442 = vrot.lane.b32.xlu1 %v4441_v16, %s5391_s30  ;;  %v1001_v16 = vld [vmem:[%s5469_s28 + $0x62] sm:$0xff] }
  0x50   : > { %4437 = vrot.lane.b32.xlu0 %v4436_v19, %s5391_s30  ;;  %v1002_v19 = vld [vmem:[%s5469_s28 + $0x6a] sm:$0xff] }
  0x53   : > { %4452 = vrot.lane.b32.xlu1 %v4451_v26, %s5391_s30  ;;  %v5743_v26 = vpack.i.bf16 %v1000_v9, %v999_v8  ;;  %v1014_v8 = vld [vmem:[%s5469_s28 + $0xfa] sm:$0xff]  ;;  %v5785_v9 = vpack.i.bf16 %v5777_v3, %v5774_v1 }
  0x54   : > { %4447 = vrot.lane.b32.xlu0 %v4446_v27, %s5391_s30  ;;  %v5747_v27 = vpack.i.bf16 %v1002_v19, %v1001_v16  ;;  %v5789_v16 = vpack.i.bf16 %v1014_v8, %v1013_v5  ;;  %v1015_v19 = vld [vmem:[%s5469_s28 + $0x10a] sm:$0xff]  ;;  %v1020_v5 = vld [vmem:[%s5469_s28 + $0x142] sm:$0xff] }
  0x55   : > { %v5817_v28 = vpack.i.bf16 %v1020_v5, %v1019_v60 }
  0x57   : > { %4462 = vrot.lane.b32.xlu1 %v4461_v34, %s5391_s30  ;;  %v1003_v34 = vld [vmem:[%s5469_s28 + $0x7a] sm:$0xff] }
  0x58   : > { %4457 = vrot.lane.b32.xlu0 %v4456_v37, %s5391_s30  ;;  %v1004_v37 = vld [vmem:[%s5469_s28 + $0x82] sm:$0xff] }
  0x5b   : > { %4472 = vrot.lane.b32.xlu1 %v4471_v44, %s5391_s30  ;;  %v5755_v44 = vpack.i.bf16 %v1004_v37, %v1003_v34  ;;  %v1016_v34 = vld [vmem:[%s5469_s28 + $0x112] sm:$0xff] }
  0x5c   : > { %4467 = vrot.lane.b32.xlu0 %v4466_v45, %s5391_s30  ;;  %v5759_v45 = vpack.i.bf16 %v1006_v39, %v1005_v38  ;;  %v1017_v38 = vld [vmem:[%s5469_s28 + $0x122] sm:$0xff]  ;;  %v1018_v39 = vld [vmem:[%s5469_s28 + $0x12a] sm:$0xff] }
  0x5d   : > { %v5805_v59 = vpack.i.bf16 %v1018_v39, %v1017_v38  ;;  %v1024_v38 = vld [vmem:[%s5469_s28 + $0x172] sm:$0xff] }
  0x5f   : > { %4482 = vrot.lane.b32.xlu1 %v5474_v4, %s5392_s4 }
  0x60   : > { %4477 = vrot.lane.b32.xlu0 %v5486_v12, %s5392_s4 }
  0x63   : > { %4492 = vrot.lane.b32.xlu1 %v5498_v18, %s5392_s4 }
  0x64   : > { %4487 = vrot.lane.b32.xlu0 %v5483_v11, %s5392_s4 }
  0x67   : > { %4502 = vrot.lane.b32.xlu1 %v5510_v24, %s5392_s4 }
  0x68   : > { %4497 = vrot.lane.b32.xlu0 %v5494_v17, %s5392_s4 }
  0x6b   : > { %4512 = vrot.lane.b32.xlu1 %v5522_v30, %s5392_s4 }
  0x6c   : > { %4507 = vrot.lane.b32.xlu0 %v5506_v23, %s5392_s4 }
  0x6f   : > { %4522 = vrot.lane.b32.xlu1 %v5534_v36, %s5392_s4 }
  0x70   : > { %4517 = vrot.lane.b32.xlu0 %v5518_v29, %s5392_s4 }
  0x73   : > { %4532 = vrot.lane.b32.xlu1 %v5546_v42, %s5392_s4 }
  0x74   : > { %4527 = vrot.lane.b32.xlu0 %v5530_v35, %s5392_s4 }
  0x77   : > { %4542 = vrot.lane.b32.xlu1 %v5558_v48, %s5392_s4 }
  0x78   : > { %4537 = vrot.lane.b32.xlu0 %v5542_v41, %s5392_s4 }
  0x7b   : > { %4552 = vrot.lane.b32.xlu1 %v5712_v54, %s5392_s4 }
  0x7c   : > { %4547 = vrot.lane.b32.xlu0 %v5554_v47, %s5392_s4 }
  0x7f   : > { %4558 = vrot.lane.b32.xlu1 %v4557_v61, %s5390_s29  ;;  %v5767_v61 = vpack.i.bf16 %v1008_v53, %v1007_v46  ;;  %v5801_v53 = vpack.i.bf16 %v1016_v34, %v1015_v19  ;;  %v5821_v19 = vpack.i.bf16 %v1022_v40, %v1021_v43  ;;  %v1023_v34 = vld [vmem:[%s5469_s28 + $0x16a] sm:$0xff] }
  0x80   : > { %785 = vperm.xlu0 %4556, %v5727_v2   ;;  %v5831_v63 = vpack.i.bf16 %v1024_v38, %v1023_v34 }
  0x83   : > { %4563 = vrot.lane.b32.xlu1 %v5732_v6, %s5390_s29 }
  0x84   : > { %4568 = vrot.lane.b32.xlu0 %v5735_v7, %s5390_s29 }
  0x87   : > { %4573 = vrot.lane.b32.xlu1 %v5743_v26, %s5390_s29 }
  0x88   : > { %4578 = vrot.lane.b32.xlu0 %v5747_v27, %s5390_s29 }
  0x8b   : > { %4583 = vrot.lane.b32.xlu1 %v5755_v44, %s5390_s29 }
  0x8c   : > { %4588 = vrot.lane.b32.xlu0 %v5759_v45, %s5390_s29 }
  0x8f   : > { %4593 = vrot.lane.b32.xlu1 %v5767_v61, %s5390_s29 }
  0x90   : > { %4598 = vrot.lane.b32.xlu0 %v5771_v62, %s5390_s29 }
  0x91   : > { %v5793_v37 = vpop.permute.xlu1 %4327 }
  0x92   : > { %v5797_v46 = vpop.permute.xlu0 %4317 }
  0x93   : > { %4603 = vrot.lane.b32.xlu1 %v5785_v9, %s5390_s29  ;;  %v4320_v32 = vunpack.i.h.bf16 %v5797_v46 }
  0x94   : > { %4608 = vrot.lane.b32.xlu0 %v5789_v16, %s5390_s29 }
  0x95   : > { %v5809_v8 = vpop.permute.xlu1 %4332 }
  0x96   : > { %v5813_v31 = vpop.permute.xlu0 %4322 }
  0x97   : > { %4613 = vrot.lane.b32.xlu1 %v5801_v53, %s5390_s29 }
  0x98   : > { %4618 = vrot.lane.b32.xlu0 %v5805_v59, %s5390_s29 }
  0x99   : > { %v5825_v39 = vpop.permute.xlu1 %4342 }
  0x9a   : > { %7671 = vst [vmem:[#allocation18_spill] sm:$0xff] %v5825_v39  ;;  %v5827_v0 = vpop.permute.xlu0 %4337  ;;  %v3649_v39 = vld [vmem:[%s5469_s28 + $0x81] sm:$0xff] }
  0x9b   : > { %7672 = vst [vmem:[#allocation19_spill] sm:$0xff] %v5827_v0  ;;  %4623 = vrot.lane.b32.xlu1 %v5817_v28, %s5390_s29 }
  0x9c   : > { %4628 = vrot.lane.b32.xlu0 %v5821_v19, %s5390_s29 }
  0x9d   : > { %v5835_v60 = vpop.permute.xlu1 %4352 }
  0x9e   : > { %7673 = vst [vmem:[#allocation20_spill] sm:$0xff] %v5835_v60  ;;  %v5837_v5 = vpop.permute.xlu0 %4347  ;;  %v5858_v60 = vld [vmem:[%s7595_s1] sm:$0xff] }
  0x9f   : > { %7674 = vst [vmem:[#allocation21_spill] sm:$0xff] %v5837_v5  ;;  %4633 = vrot.lane.b32.xlu1 %v5831_v63, %s5390_s29  ;;  %7675 = vst [vmem:[#allocation22_spill] sm:$0xff] %v5858_v60  ;;  %3974 = vmatprep.mubr.msk.f32.mxu0 %vm788_vm0, %v5858_v60  ;;  %v5961_v60 = vld [vmem:[%s5469_s28 + $0x19] sm:$0xff] }
  0xa0   : > { %4638 = vrot.lane.b32.xlu0 %v5486_v12, %s5391_s30 }
  0xa1   : > { %v5843_v40 = vpop.permute.xlu1 %4362 }
  0xa2   : > { %v5845_v43 = vpop.permute.xlu0 %4357 }
  0xa3   : > { %4643 = vrot.lane.b32.xlu1 %v5474_v4, %s5391_s30 }
  0xa4   : > { %4648 = vrot.lane.b32.xlu0 %v5483_v11, %s5391_s30 }
  0xa5   : > { %v5851_v34 = vpop.permute.xlu1 %4372 }
  0xa6   : > { %v5853_v38 = vpop.permute.xlu0 %4367 }
  0xa7   : > { %4653 = vrot.lane.b32.xlu1 %v5498_v18, %s5391_s30 }
  0xa8   : > { %4658 = vrot.lane.b32.xlu0 %v5494_v17, %s5391_s30 }
  0xa9   : > { %v5866_v4 = vpop.permute.xlu1 %4382 }
  0xaa   : > { %7676 = vst [vmem:[#allocation23_spill] sm:$0xff] %v5866_v4  ;;  %v5868_v11 = vpop.permute.xlu0 %4377 }
  0xab   : > { %4663 = vrot.lane.b32.xlu1 %v5510_v24, %s5391_s30 }
  0xac   : > { %4668 = vrot.lane.b32.xlu0 %v5506_v23, %s5391_s30 }
  0xad   : > { %v5874_v12 = vpop.permute.xlu1 %4392 }
  0xae   : > { %7677 = vst [vmem:[#allocation24_spill] sm:$0xff] %v5874_v12  ;;  %v5876_v5 = vpop.permute.xlu0 %4387  ;;  %v3646_v12 = vld [vmem:[%s5469_s28 + $0x61] sm:$0xff] }
  0xaf   : > { %7678 = vst [vmem:[#allocation25_spill] sm:$0xff] %v5876_v5  ;;  %4673 = vrot.lane.b32.xlu1 %v5522_v30, %s5391_s30  ;;  %v3648_v5 = vld [vmem:[%s5469_s28 + $0x79] sm:$0xff] }
  0xb0   : > { %4678 = vrot.lane.b32.xlu0 %v5518_v29, %s5391_s30 }
  0xb1   : > { %v5882_v17 = vpop.permute.xlu1 %4402 }
  0xb2   : > { %v5884_v18 = vpop.permute.xlu0 %4397 }
  0xb3   : > { %4683 = vrot.lane.b32.xlu1 %v5534_v36, %s5391_s30 }
  0xb4   : > { %4688 = vrot.lane.b32.xlu0 %v5530_v35, %s5391_s30 }
  0xb5   : > { %v5890_v23 = vpop.permute.xlu1 %4412 }
  0xb6   : > { %v5892_v24 = vpop.permute.xlu0 %4407 }
  0xb7   : > { %4693 = vrot.lane.b32.xlu1 %v5546_v42, %s5391_s30 }
  0xb8   : > { %4698 = vrot.lane.b32.xlu0 %v5542_v41, %s5391_s30 }
  0xb9   : > { %v5898_v29 = vpop.permute.xlu1 %4422 }
  0xba   : > { %7679 = vst [vmem:[#allocation26_spill] sm:$0xff] %v5898_v29  ;;  %v5900_v30 = vpop.permute.xlu0 %4417  ;;  %v3647_v29 = vld [vmem:[%s5469_s28 + $0x69] sm:$0xff] }
  0xbb   : > { %7680 = vst [vmem:[#allocation27_spill] sm:$0xff] %v5900_v30  ;;  %4703 = vrot.lane.b32.xlu1 %v5558_v48, %s5391_s30  ;;  %v170_v30 = vld [vmem:[%s5469_s28 + $0x8] sm:$0xff]  ;;  %v6002_v4 = vpack.i.bf16 %v3647_v29, %v3646_v12 }
  0xbc   : > { %4708 = vrot.lane.b32.xlu0 %v5554_v47, %s5391_s30 }
  0xbd   : > { %v5906_v35 = vpop.permute.xlu1 %4432 }
  0xbe   : > { %7681 = vst [vmem:[#allocation28_spill] sm:$0xff] %v5906_v35  ;;  %v5908_v36 = vpop.permute.xlu0 %4427  ;;  %v5966_v35 = vld [vmem:[%s5469_s28 + $0x21] sm:$0xff] }
  0xbf   : > { %7682 = vst [vmem:[#allocation29_spill] sm:$0xff] %v5908_v36  ;;  %4713 = vrot.lane.b32.xlu1 %v5712_v54, %s5391_s30  ;;  %v3645_v36 = vld [vmem:[%s5469_s28 + $0x51] sm:$0xff] }
  0xc0   : > { %4718 = vrot.lane.b32.xlu0 %v5732_v6, %s5392_s4 }
  0xc1   : > { %v5914_v41 = vpop.permute.xlu1 %4442 }
  0xc2   : > { %v5916_v42 = vpop.permute.xlu0 %4437 }
  0xc3   : > { %4723 = vrot.lane.b32.xlu1 %v5735_v7, %s5392_s4 }
  0xc4   : > { %4728 = vrot.lane.b32.xlu0 %v5743_v26, %s5392_s4 }
  0xc5   : > { %v5922_v47 = vpop.permute.xlu1 %4452 }
  0xc6   : > { %v5924_v48 = vpop.permute.xlu0 %4447 }
  0xc7   : > { %4733 = vrot.lane.b32.xlu1 %v5747_v27, %s5392_s4 }
  0xc8   : > { %4738 = vrot.lane.b32.xlu0 %v5755_v44, %s5392_s4 }
  0xc9   : > { %v5930_v54 = vpop.permute.xlu1 %4462 }
  0xca   : > { %7683 = vst [vmem:[#allocation30_spill] sm:$0xff] %v5930_v54  ;;  %v5932_v6 = vpop.permute.xlu0 %4457  ;;  %v5993_v54 = vld [vmem:[%s5469_s28 + $0x99] sm:$0xff] }
  0xcb   : > { %4743 = vrot.lane.b32.xlu1 %v5759_v45, %s5392_s4 }
  0xcc   : > { %4748 = vrot.lane.b32.xlu0 %v5767_v61, %s5392_s4 }
  0xcd   : > { %v5938_v7 = vpop.permute.xlu1 %4472 }
  0xce   : > { %7684 = vst [vmem:[#allocation31_spill] sm:$0xff] %v5938_v7  ;;  %v5940_v26 = vpop.permute.xlu0 %4467  ;;  %v3643_v7 = vld [vmem:[%s5469_s28 + $0x39] sm:$0xff] }
  0xcf   : > { %7685 = vst [vmem:[#allocation32_spill] sm:$0xff] %v5940_v26  ;;  %4753 = vrot.lane.b32.xlu1 %v5771_v62, %s5392_s4  ;;  %v3570_v62 = vld [vmem:[%s5469_s28 + $0x182] sm:$0xff] }
  0xd0   : > { %4758 = vrot.lane.b32.xlu0 %v5785_v9, %s5392_s4  ;;  %v3571_v9 = vld [vmem:[%s5469_s28 + $0x18a] sm:$0xff] }
  0xd1   : > { %v5946_v27 = vpop.permute.xlu1 %4482  ;;  %v4792_v56 = vpack.i.bf16 %v3571_v9, %v3570_v62  ;;  %v4360_v62 = vunpack.i.h.bf16 %v5845_v43  ;;  %v4359_v9 = vunpack.i.l.bf16 %v5845_v43  ;;  %v4445_v43 = vunpack.i.h.bf16 %v5914_v41 }
  0xd2   : > { %v5948_v44 = vpop.permute.xlu0 %4477 }
  0xd3   : > { %4763 = vrot.lane.b32.xlu1 %v5789_v16, %s5392_s4  ;;  %v3642_v16 = vld [vmem:[%s5469_s28 + $0x31] sm:$0xff] }
  0xd4   : > { %4768 = vrot.lane.b32.xlu0 %v5801_v53, %s5392_s4  ;;  %v3644_v53 = vld [vmem:[%s5469_s28 + $0x49] sm:$0xff] }
  0xd5   : > { %v5954_v45 = vpop.permute.xlu1 %4492 }
  0xd6   : > { %v5956_v61 = vpop.permute.xlu0 %4487 }
  0xd7   : > { %4773 = vrot.lane.b32.xlu1 %v5805_v59, %s5392_s4  ;;  %v4319_v59 = vunpack.i.l.bf16 %v5797_v46  ;;  %v5998_v46 = vpack.i.bf16 %v3643_v7, %v3642_v16  ;;  %v4400_v7 = vunpack.i.h.bf16 %v5884_v18  ;;  %v4325_v16 = vunpack.i.h.bf16 %v5813_v31 }
  0xd8   : > { %4778 = vrot.lane.b32.xlu0 %v5817_v28, %s5392_s4  ;;  %v169_v28 = vld [vmem:[%s5469_s28] sm:$0xff] }
  0xd9   : > { %v5975_v26 = vpop.permute.xlu1 %4502 }
  0xda   : > { %7686 = vst [vmem:[#allocation33_spill] sm:$0xff] %v5975_v26  ;;  %v5981_v33 = vpop.permute.xlu0 %4497  ;;  %v4797_v26 = vpack.i.bf16 %v5966_v35, %v5961_v60  ;;  %v4365_v60 = vunpack.i.h.bf16 %v5843_v40  ;;  %v4364_v35 = vunpack.i.l.bf16 %v5843_v40  ;;  %v684_v40 = vsel %vm682_vm1, %v170_v30, %v4320_v32 }
  0xdb   : > { %7687 = vst [vmem:[#allocation34_spill] sm:$0xff] %v5981_v33  ;;  %4783 = vrot.lane.b32.xlu1 %v5821_v19, %s5392_s4  ;;  %v6000_v33 = vpack.i.bf16 %v3645_v36, %v3644_v53  ;;  %v6004_v19 = vpack.i.bf16 %v3649_v39, %v3648_v5  ;;  %v4399_v36 = vunpack.i.l.bf16 %v5884_v18  ;;  %v185_v39 = vld [vmem:[%s5469_s28 + $0xc0] sm:$0xff]  ;;  %v186_v5 = vld [vmem:[%s5469_s28 + $0xc8] sm:$0xff]  ;;  %v4444_v53 = vunpack.i.l.bf16 %v5914_v41 }
  0xdc   : > { %4788 = vrot.lane.b32.xlu0 %v5831_v63, %s5392_s4  ;;  %v683_v63 = vsel %vm682_vm1, %v169_v28, %v4319_v59  ;;  %v4440_v59 = vunpack.i.h.bf16 %v5916_v42  ;;  %v4439_v18 = vunpack.i.l.bf16 %v5916_v42  ;;  %v4480_v28 = vunpack.i.h.bf16 %v5948_v44 }
  0xdd   : > { %v6010_v0 = vpop.permute.xlu1 %4512  ;;  %v701_v32 = vsel %vm682_vm1, %v5623_v14, %v4364_v35  ;;  %v702_v30 = vsel %vm682_vm1, %v5626_v15, %v4365_v60  ;;  %v699_v41 = vsel %vm682_vm1, %v185_v39, %v4359_v9  ;;  %v716_v20 = vsel %vm715_vm2, %v683_v63, %v4399_v36 }
  0xde   : > { %7688 = vst [vmem:[#allocation35_spill] sm:$0xff] %v6010_v0  ;;  %v6015_v12 = vpop.permute.xlu0 %4507  ;;  %v4479_v0 = vunpack.i.l.bf16 %v5948_v44  ;;  %v717_v44 = vsel %vm715_vm2, %v684_v40, %v4400_v7  ;;  %v735_v58 = vsel %vm715_vm2, %v702_v30, %v4445_v43  ;;  %v732_v15 = vsel %vm715_vm2, %v699_v41, %v4439_v18  ;;  %v3653_v18 = vld [vmem:[%s5469_s28 + $0xb1] sm:$0xff] }
  0xdf   : > { %7689 = vst [vmem:[#allocation36_spill] sm:$0xff] %v6015_v12  ;;  %4793 = vrot.lane.b32.xlu1 %v4792_v56, %s5392_s4  ;;  %v700_v56 = vsel %vm682_vm1, %v186_v5, %v4360_v62  ;;  %v750_v9 = vsel %vm748_vm3, %v717_v44, %v4480_v28  ;;  %v4405_v40 = vunpack.i.h.bf16 %v5882_v17  ;;  %v4404_v43 = vunpack.i.l.bf16 %v5882_v17  ;;  %v6074_v28 = vld [vmem:[%s5469_s28 + $0xc9] sm:$0xff] }
  0xe0   : > { %1574 = vperm.xlu0 %4556, %v5727_v2   ;;  %v734_v2 = vsel %vm715_vm2, %v701_v32, %v4444_v53  ;;  %v733_v60 = vsel %vm715_vm2, %v700_v56, %v4440_v59  ;;  %v749_v62 = vsel %vm748_vm3, %v716_v20, %v4479_v0  ;;  %v4324_v0 = vunpack.i.l.bf16 %v5813_v31  ;;  %v6071_v31 = vld [vmem:[%s5469_s28 + $0xc1] sm:$0xff] }
  0xe1   : > { %v4523_v29 = vpop.permute.xlu1 %4522  ;;  %v4370_v20 = vunpack.i.h.bf16 %v5853_v38  ;;  %v4450_v53 = vunpack.i.h.bf16 %v5924_v48  ;;  %v4081_v59 = vpack.c.bf16 %v750_v9, %v749_v62  ;;  %v4485_v32 = vunpack.i.h.bf16 %v5946_v27 }
  0xe2   : > { %v4525_v12 = vunpack.i.h.bf16 %v4523_v29  ;;  %v4524_v21 = vunpack.i.l.bf16 %v4523_v29  ;;  %v4518_v42 = vpop.permute.xlu0 %4517  ;;  %v3652_v29 = vld [vmem:[%s5469_s28 + $0xa9] sm:$0xff]  ;;  %v4484_v17 = vunpack.i.l.bf16 %v5946_v27  ;;  %v685_v27 = vsel %vm682_vm1, %v5567_v51, %v4324_v0 }
  0xe3   : > { %v4520_v14 = vunpack.i.h.bf16 %v4518_v42  ;;  %v4519_v35 = vunpack.i.l.bf16 %v4518_v42  ;;  %4798 = vrot.lane.b32.xlu1 %v4797_v26, %s5390_s29  ;;  %v6088_v42 = vld [vmem:[%s5469_s28 + $0xd9] sm:$0xff]  ;;  %v686_v44 = vsel %vm682_vm1, %v5570_v52, %v4325_v16  ;;  %v704_v51 = vsel %vm682_vm1, %v5620_v13, %v4370_v20 }
  0xe4   : > { %4803 = vrot.lane.b32.xlu0 %v5998_v46, %s5390_s29  ;;  %v767_v63 = vsel %vm748_vm3, %v734_v2, %v4524_v21  ;;  %v768_v7 = vsel %vm748_vm3, %v735_v58, %v4525_v12  ;;  %v4369_v58 = vunpack.i.l.bf16 %v5853_v38  ;;  %v4449_v38 = vunpack.i.l.bf16 %v5924_v48 }
  0xe5   : > { %v6050_v36 = vpop.permute.xlu1 %4532  ;;  %v765_v26 = vsel %vm748_vm3, %v732_v15, %v4519_v35  ;;  %v766_v39 = vsel %vm748_vm3, %v733_v60, %v4520_v14  ;;  %v4084_v30 = vpack.c.bf16 %v768_v7, %v767_v63  ;;  %v4827_v2 = vpack.i.bf16 %v3653_v18, %v3652_v29  ;;  %v6099_v35 = vld [vmem:[%s5469_s28 + $0xe1] sm:$0xff]  ;;  %v6102_v15 = vld [vmem:[%s5469_s28 + $0xf1] sm:$0xff]  ;;  %v6105_v60 = vld [vmem:[%s5469_s28 + $0xf9] sm:$0xff] }
  0xe6   : > { %v4528_v21 = vpop.permute.xlu0 %4527  ;;  %v4078_v12 = vpack.c.bf16 %v766_v39, %v765_v26  ;;  %v4832_v14 = vpack.i.bf16 %v6074_v28, %v6071_v31  ;;  %v703_v62 = vsel %vm682_vm1, %v5617_v10, %v4369_v58  ;;  %v718_v52 = vsel %vm715_vm2, %v685_v27, %v4404_v43  ;;  %v6138_v29 = vld [vmem:[%s5469_s28 + $0x109] sm:$0xff]  ;;  %v6145_v18 = vld [vmem:[%s5469_s28 + $0x111] sm:$0xff] }
  0xe7   : > { %4808 = vrot.lane.b32.xlu1 %v6000_v33, %s5390_s29  ;;  %v4530_v41 = vunpack.i.h.bf16 %v4528_v21  ;;  %v4529_v56 = vunpack.i.l.bf16 %v4528_v21  ;;  %v719_v16 = vsel %vm715_vm2, %v686_v44, %v4405_v40  ;;  %v736_v9 = vsel %vm715_vm2, %v703_v62, %v4449_v38  ;;  %v3662_v38 = vld [vmem:[%s5469_s28 + $0x121] sm:$0xff] }
  0xe8   : > { %4813 = vrot.lane.b32.xlu0 %v6002_v4, %s5390_s29  ;;  %4080 = vmatprep.subr.msk.bf16.mxu0 %vm6056_vm4, %v4078_v12  ;;  %v737_v63 = vsel %vm715_vm2, %v704_v51, %v4450_v53  ;;  %v751_v7 = vsel %vm748_vm3, %v718_v52, %v4484_v17  ;;  %v752_v26 = vsel %vm748_vm3, %v719_v16, %v4485_v32  ;;  %v4330_v21 = vunpack.i.h.bf16 %v5793_v37 }
  0xe9   : > { %4083 = vmatpush3.bf16.xpose.msk.msra.mxu0 %vm6056_vm4, %v4081_v59  ;;  %v6085_v48 = vpop.permute.xlu1 %4542  ;;  %v7692_v10 = vpack.i.bf16 %v5993_v54, %v5990_v55  ;;  %v769_v13 = vsel %vm748_vm3, %v736_v9, %v4529_v56  ;;  %v770_v39 = vsel %vm748_vm3, %v737_v63, %v4530_v41  ;;  %v4837_v20 = vpack.i.bf16 %v6099_v35, %v6088_v42 }
  0xea   : > { %4086 = vmatprep.subr.msk.bf16.mxu0 %vm6056_vm4, %v4084_v30  ;;  %v6131_v58 = vpack.i.bf16 %v6105_v60, %v6102_v15  ;;  %v4329_v55 = vunpack.i.l.bf16 %v5793_v37  ;;  %v4375_v54 = vunpack.i.h.bf16 %v5851_v34  ;;  %v4374_v12 = vunpack.i.l.bf16 %v5851_v34  ;;  %v3663_v37 = vld [vmem:[%s5469_s28 + $0x129] sm:$0xff]  ;;  %v4538_v63 = vpop.permute.xlu0 %4537 }
  0xeb   : > { %4818 = vrot.lane.b32.xlu1 %v6004_v19, %s5390_s29  ;;  %v4410_v40 = vunpack.i.h.bf16 %v5892_v24  ;;  %v4409_v43 = vunpack.i.l.bf16 %v5892_v24  ;;  %v4455_v53 = vunpack.i.h.bf16 %v5922_v47  ;;  %v4087_v59 = vpack.c.bf16 %v752_v26, %v751_v7 }
  0xec   : > { %4823 = vrot.lane.b32.xlu0 %v7692_v10, %s5390_s29  ;;  %v4454_v32 = vunpack.i.l.bf16 %v5922_v47  ;;  %v4490_v34 = vunpack.i.h.bf16 %v5956_v61  ;;  %v4489_v17 = vunpack.i.l.bf16 %v5956_v61  ;;  %v4090_v24 = vpack.c.bf16 %v770_v39, %v769_v13 }
  0xed   : > { %v6125_v0 = vpop.permute.xlu1 %4552  ;;  %v4535_v30 = vunpack.i.h.bf16 %v6050_v36  ;;  %v4534_v41 = vunpack.i.l.bf16 %v6050_v36  ;;  %v687_v27 = vsel %vm682_vm1, %v5561_v49, %v4329_v55  ;;  %v688_v47 = vsel %vm682_vm1, %v5564_v50, %v4330_v21  ;;  %v6172_v36 = vld [vmem:[%s5469_s28 + $0x139] sm:$0xff]  ;;  %v3688_v55 = vld [vmem:[%s5469_s28 + $0xf0] sm:$0xff] }
  0xee   : > { %v6167_v61 = vpack.i.bf16 %v6145_v18, %v6138_v29  ;;  %v6169_v44 = vpack.i.bf16 %v3663_v37, %v3662_v38  ;;  %v706_v49 = vsel %vm682_vm1, %v5644_v25, %v4375_v54  ;;  %v720_v50 = vsel %vm715_vm2, %v687_v27, %v4409_v43  ;;  %v3805_v43 = vld [vmem:[%s5469_s28 + $0x22] sm:$0xff] }
  0xef   : > { %4828 = vrot.lane.b32.xlu1 %v4827_v2, %s5390_s29  ;;  %v3804_v2 = vld [vmem:[%s5469_s28 + $0x1a] sm:$0xff]  ;;  %v721_v62 = vsel %vm715_vm2, %v688_v47, %v4410_v40  ;;  %v739_v52 = vsel %vm715_vm2, %v706_v49, %v4455_v53  ;;  %v753_v16 = vsel %vm748_vm3, %v720_v50, %v4489_v17  ;;  %v4857_v26 = vpack.i.bf16 %v5774_v1, %v6172_v36  ;;  %v6208_v53 = vld [vmem:[%s5469_s28 + $0xf2] sm:$0xff]  ;;  %v7694_v27 = vld [vmem:[#allocation10_spill] sm:$0xff]  ;;  %v6234_v50 = vpop.permute.xlu0 %4547 }
  0xf0   : > { %4833 = vrot.lane.b32.xlu0 %v4832_v14, %s5390_s29  ;;  %v705_v14 = vsel %vm682_vm1, %v5641_v22, %v4374_v12  ;;  %v754_v9 = vsel %vm748_vm3, %v721_v62, %v4490_v34  ;;  %v772_v25 = vsel %vm748_vm3, %v739_v52, %v4535_v30  ;;  %v4862_v10 = vpack.i.bf16 %v3804_v2, %v5777_v3  ;;  %v3689_v3 = vld [vmem:[%s5469_s28 + $0xf8] sm:$0xff]  ;;  %v7693_v17 = vld [vmem:[#allocation7_spill] sm:$0xff] }
  0xf1   : > { %4089 = vmatpush3.bf16.xpose.msk.msra.mxu0 %vm6056_vm4, %v4087_v59  ;;  %v6157_v56 = vpop.permute.xlu1 %4558  ;;  %v738_v51 = vsel %vm715_vm2, %v705_v14, %v4454_v32  ;;  %v4335_v13 = vunpack.i.h.bf16 %v5809_v8  ;;  %v4334_v39 = vunpack.i.l.bf16 %v5809_v8  ;;  %v4379_v21 = vunpack.i.l.bf16 %v5868_v11  ;;  %v3672_v30 = vld [vmem:[%s5469_s28 + $0x30] sm:$0xff] }
  0xf2   : > { %4092 = vmatprep.subr.msk.bf16.mxu0 %vm6056_vm4, %v4090_v24  ;;  %v771_v22 = vsel %vm748_vm3, %v738_v51, %v4534_v41  ;;  %v4415_v54 = vunpack.i.h.bf16 %v5890_v23  ;;  %v4414_v12 = vunpack.i.l.bf16 %v5890_v23  ;;  %v4460_v40 = vunpack.i.h.bf16 %v5932_v6  ;;  %v3673_v41 = vld [vmem:[%s5469_s28 + $0x38] sm:$0xff]  ;;  %v7695_v2 = vld [vmem:[#allocation11_spill] sm:$0xff] }
  0xf3   : > { %4838 = vrot.lane.b32.xlu1 %v4837_v20, %s5390_s29  ;;  %v4380_v20 = vunpack.i.h.bf16 %v5868_v11  ;;  %v4093_v1 = vpack.c.bf16 %v754_v9, %v753_v16  ;;  %v4459_v8 = vunpack.i.l.bf16 %v5932_v6  ;;  %v4495_v11 = vunpack.i.h.bf16 %v5954_v45 }
  0xf4   : > { %4843 = vrot.lane.b32.xlu0 %v6131_v58, %s5390_s29  ;;  %v4494_v59 = vunpack.i.l.bf16 %v5954_v45  ;;  %v4096_v23 = vpack.c.bf16 %v772_v25, %v771_v22  ;;  %v4540_v38 = vunpack.i.h.bf16 %v4538_v63  ;;  %v4539_v37 = vunpack.i.l.bf16 %v4538_v63 }
  0xf5   : > { %v6190_v7 = vpop.permute.xlu1 %4563  ;;  %v689_v34 = vsel %vm682_vm1, %v5587_v57, %v4334_v39  ;;  %v690_v6 = vsel %vm682_vm1, %v7693_v17, %v4335_v13  ;;  %v4867_v45 = vpack.i.bf16 %v3689_v3, %v3688_v55  ;;  %v4872_v24 = vpack.i.bf16 %v6208_v53, %v3805_v43  ;;  %v7696_v13 = vld [vmem:[#allocation19_spill] sm:$0xff] }
  0xf6   : > { %v707_v47 = vsel %vm682_vm1, %v7694_v27, %v4379_v21  ;;  %v708_v14 = vsel %vm682_vm1, %v7695_v2, %v4380_v20  ;;  %v722_v49 = vsel %vm715_vm2, %v689_v34, %v4414_v12  ;;  %v723_v57 = vsel %vm715_vm2, %v690_v6, %v4415_v54  ;;  %v7697_v20 = vld [vmem:[#allocation23_spill] sm:$0xff]  ;;  %v7702_v6 = vld [vmem:[#allocation5_spill] sm:$0xff]  ;;  %v7704_v27 = vld [vmem:[#allocation14_spill] sm:$0xff] }
  0xf7   : > { %4848 = vrot.lane.b32.xlu1 %v6167_v61, %s5390_s29  ;;  %v740_v62 = vsel %vm715_vm2, %v707_v47, %v4459_v8  ;;  %v741_v51 = vsel %vm715_vm2, %v708_v14, %v4460_v40  ;;  %v755_v52 = vsel %vm748_vm3, %v722_v49, %v4494_v59  ;;  %v756_v16 = vsel %vm748_vm3, %v723_v57, %v4495_v11  ;;  %v7698_v54 = vld [vmem:[#allocation27_spill] sm:$0xff]  ;;  %v7701_v11 = vld [vmem:[#allocation34_spill] sm:$0xff] }
  0xf8   : > { %4853 = vrot.lane.b32.xlu0 %v6169_v44, %s5390_s29  ;;  %v773_v9 = vsel %vm748_vm3, %v740_v62, %v4539_v37  ;;  %v774_v22 = vsel %vm748_vm3, %v741_v51, %v4540_v38  ;;  %v4882_v63 = vpack.i.bf16 %v3673_v41, %v3672_v30  ;;  %v4340_v39 = vunpack.i.h.bf16 %v7696_v13  ;;  %v7703_v30 = vld [vmem:[#allocation6_spill] sm:$0xff] }
  0xf9   : > { %4095 = vmatpush3.bf16.xpose.msk.msra.mxu0 %vm6056_vm4, %v4093_v1  ;;  %v6217_v32 = vpop.permute.xlu1 %4573  ;;  %v4385_v21 = vunpack.i.h.bf16 %v7697_v20  ;;  %v4384_v55 = vunpack.i.l.bf16 %v7697_v20  ;;  %v4420_v12 = vunpack.i.h.bf16 %v7698_v54  ;;  %v4419_v40 = vunpack.i.l.bf16 %v7698_v54 }
  0xfa   : > { %4098 = vmatprep.subr.msk.bf16.mxu0 %vm6056_vm4, %v4096_v23  ;;  %v4099_v43 = vpack.c.bf16 %v756_v16, %v755_v52  ;;  %v4500_v59 = vunpack.i.h.bf16 %v7701_v11  ;;  %v4499_v23 = vunpack.i.l.bf16 %v7701_v11  ;;  %v4102_v38 = vpack.c.bf16 %v774_v22, %v773_v9  ;;  %v3868_v11 = vld [vmem:[%s5469_s28 + $0x32] sm:$0xff] }
  0xfb   : > { %4858 = vrot.lane.b32.xlu1 %v4857_v26, %s5390_s29  ;;  %v4339_v26 = vunpack.i.l.bf16 %v7696_v13  ;;  %v4545_v37 = vunpack.i.h.bf16 %v6085_v48  ;;  %v4544_v34 = vunpack.i.l.bf16 %v6085_v48  ;;  %v692_v41 = vsel %vm682_vm1, %v7703_v30, %v4340_v39  ;;  %v7705_v48 = vld [vmem:[#allocation15_spill] sm:$0xff] }
  0xfc   : > { %4863 = vrot.lane.b32.xlu0 %v4862_v10, %s5390_s29  ;;  %v7699_v10 = vld [vmem:[#allocation30_spill] sm:$0xff]  ;;  %v709_v47 = vsel %vm682_vm1, %v7704_v27, %v4384_v55  ;;  %v710_v2 = vsel %vm682_vm1, %v7705_v48, %v4385_v21  ;;  %v725_v49 = vsel %vm715_vm2, %v692_v41, %v4420_v12  ;;  %v7707_v55 = vld [vmem:[#allocation25_spill] sm:$0xff]  ;;  %v7712_v41 = vld [vmem:[#allocation8_spill] sm:$0xff] }
  0xfd   : > { %v6244_v25 = vpop.permute.xlu1 %4583  ;;  %v4465_v1 = vunpack.i.h.bf16 %v7699_v10  ;;  %v4464_v8 = vunpack.i.l.bf16 %v7699_v10  ;;  %v758_v16 = vsel %vm748_vm3, %v725_v49, %v4500_v59  ;;  %v4390_v54 = vunpack.i.h.bf16 %v7707_v55  ;;  %v6309_v59 = vld [vmem:[%s5469_s28 + $0x3a] sm:$0xff]  ;;  %v3690_v49 = vld [vmem:[%s5469_s28 + $0x108] sm:$0xff] }
  0xfe   : > { %v4389_v12 = vunpack.i.l.bf16 %v7707_v55 }
  0xff   : > { %v6253_v3 = vpop.permute.xlu0 %785  ;;  %4868 = vrot.lane.b32.xlu1 %v4867_v45, %s5391_s30  ;;  %v691_v45 = vsel %vm682_vm1, %v7702_v6, %v4339_v26  ;;  %v742_v62 = vsel %vm715_vm2, %v709_v47, %v4464_v8  ;;  %v743_v51 = vsel %vm715_vm2, %v710_v2, %v4465_v1  ;;  %v7706_v26 = vld [vmem:[#allocation18_spill] sm:$0xff]  ;;  %v7709_v1 = vld [vmem:[#allocation32_spill] sm:$0xff]  ;;  %v7713_v47 = vld [vmem:[#allocation9_spill] sm:$0xff]  ;;  %v4907_v2 = vpack.i.bf16 %v6309_v59, %v3868_v11 }
 0x100   : > { %7700 = vst [vmem:[#allocation7_spill] sm:$0xff] %v6253_v3  ;;  %4873 = vrot.lane.b32.xlu0 %v4872_v24, %s5390_s29  ;;  %v6273_v24 = vld [vmem:[%s5469_s28 + $0xfa] sm:$0xff]  ;;  %v724_v14 = vsel %vm715_vm2, %v691_v45, %v4419_v40  ;;  %v775_v9 = vsel %vm748_vm3, %v742_v62, %v4544_v34  ;;  %v776_v22 = vsel %vm748_vm3, %v743_v51, %v4545_v37  ;;  %v4345_v20 = vunpack.i.h.bf16 %v7706_v26  ;;  %v7708_v40 = vld [vmem:[#allocation26_spill] sm:$0xff] }
 0x101   : > { %4101 = vmatpush3.bf16.xpose.msk.msra.mxu0 %vm6056_vm4, %v4099_v43  ;;  %v6264_v17 = vpop.permute.xlu1 %4593  ;;  %v757_v52 = vsel %vm748_vm3, %v724_v14, %v4499_v23  ;;  %v4897_v39 = vpack.i.bf16 %v6273_v24, %v6208_v53  ;;  %v4344_v21 = vunpack.i.l.bf16 %v7706_v26  ;;  %v4424_v10 = vunpack.i.l.bf16 %v7708_v40  ;;  %v6333_v62 = vld [vmem:[%s5469_s28 + $0x10a] sm:$0xff]  ;;  %v7714_v51 = vld [vmem:[#allocation12_spill] sm:$0xff] }
 0x102   : > { %4104 = vmatprep.subr.msk.bf16.mxu0 %vm6056_vm4, %v4102_v38  ;;  %v4470_v43 = vunpack.i.h.bf16 %v7709_v1  ;;  %v4105_v53 = vpack.c.bf16 %v758_v16, %v757_v52  ;;  %v4469_v23 = vunpack.i.l.bf16 %v7709_v1  ;;  %v7711_v38 = vld [vmem:[#allocation33_spill] sm:$0xff]  ;;  %v4108_v6 = vpack.c.bf16 %v776_v22, %v775_v9 }
 0x103   : > { %v6281_v57 = vpop.permute.xlu0 %4568  ;;  %4878 = vrot.lane.b32.xlu1 %v6131_v58, %s5391_s30  ;;  %v4505_v37 = vunpack.i.h.bf16 %v7711_v38  ;;  %v4504_v34 = vunpack.i.l.bf16 %v7711_v38  ;;  %v4550_v45 = vunpack.i.h.bf16 %v6234_v50  ;;  %v693_v27 = vsel %vm682_vm1, %v7712_v41, %v4344_v21  ;;  %v7715_v16 = vld [vmem:[#allocation13_spill] sm:$0xff]  ;;  %v3674_v41 = vld [vmem:[%s5469_s28 + $0x48] sm:$0xff] }
 0x104   : > { %4883 = vrot.lane.b32.xlu0 %v4882_v63, %s5391_s30  ;;  %v4425_v63 = vunpack.i.h.bf16 %v7708_v40  ;;  %v694_v48 = vsel %vm682_vm1, %v7713_v47, %v4345_v20  ;;  %v4912_v14 = vpack.i.bf16 %v3868_v11, %v6273_v24  ;;  %v711_v52 = vsel %vm682_vm1, %v7714_v51, %v4389_v12  ;;  %v7718_v1 = vld [vmem:[#allocation21_spill] sm:$0xff]  ;;  %v7719_v11 = vld [vmem:[#allocation24_spill] sm:$0xff] }
 0x105   : > { %v6292_v13 = vpop.permute.xlu1 %4603  ;;  %v712_v9 = vsel %vm682_vm1, %v7715_v16, %v4390_v54  ;;  %v726_v22 = vsel %vm715_vm2, %v693_v27, %v4424_v10  ;;  %v744_v24 = vsel %vm715_vm2, %v711_v52, %v4469_v23  ;;  %v4922_v10 = vpack.i.bf16 %v6333_v62, %v6309_v59  ;;  %v7720_v38 = vld [vmem:[#allocation29_spill] sm:$0xff]  ;;  %v3675_v27 = vld [vmem:[%s5469_s28 + $0x50] sm:$0xff] }
 0x106   : > { %v727_v26 = vsel %vm715_vm2, %v694_v48, %v4425_v63  ;;  %v745_v21 = vsel %vm715_vm2, %v712_v9, %v4470_v43  ;;  %v759_v55 = vsel %vm748_vm3, %v726_v22, %v4504_v34  ;;  %v4350_v43 = vunpack.i.h.bf16 %v7718_v1  ;;  %v7722_v48 = vld [vmem:[#allocation36_spill] sm:$0xff]  ;;  %v5278_v9 = vld [vmem:[%s5469_s28 + $0x90] sm:$0xff] }
 0x107   : > { %v6303_v8 = vpop.permute.xlu0 %4578  ;;  %4888 = vrot.lane.b32.xlu1 %v6131_v58, %s5392_s4  ;;  %v4549_v58 = vunpack.i.l.bf16 %v6234_v50  ;;  %v3691_v50 = vld [vmem:[%s5469_s28 + $0x110] sm:$0xff]  ;;  %v760_v40 = vsel %vm748_vm3, %v727_v26, %v4505_v37  ;;  %v778_v12 = vsel %vm748_vm3, %v745_v21, %v4550_v45  ;;  %v4395_v23 = vunpack.i.h.bf16 %v7719_v11  ;;  %v5279_v26 = vld [vmem:[%s5469_s28 + $0x98] sm:$0xff] }
 0x108   : > { %7710 = vst [vmem:[#allocation10_spill] sm:$0xff] %v6303_v8  ;;  %4893 = vrot.lane.b32.xlu0 %v5998_v46, %s5391_s30  ;;  %v4430_v37 = vunpack.i.h.bf16 %v7720_v38  ;;  %v4429_v34 = vunpack.i.l.bf16 %v7720_v38  ;;  %v4111_v59 = vpack.c.bf16 %v760_v40, %v759_v55  ;;  %v4555_v52 = vunpack.i.h.bf16 %v6125_v0  ;;  %v7724_v21 = vld [vmem:[#allocation16_spill] sm:$0xff]  ;;  %v7725_v40 = vld [vmem:[#allocation17_spill] sm:$0xff]  ;;  %v3894_v8 = vld [vmem:[%s5469_s28 + $0x16a] sm:$0xff] }
 0x109   : > { %4107 = vmatpush3.bf16.xpose.msk.msra.mxu0 %vm6056_vm4, %v4105_v53  ;;  %v6320_v30 = vpop.permute.xlu1 %4613  ;;  %v777_v54 = vsel %vm748_vm3, %v744_v24, %v4549_v58  ;;  %v4349_v53 = vunpack.i.l.bf16 %v7718_v1  ;;  %v4554_v16 = vunpack.i.l.bf16 %v6125_v0  ;;  %v696_v24 = vsel %vm682_vm1, %v5279_v26, %v4350_v43  ;;  %v3572_v43 = vld [vmem:[%s7595_s1 + $0x8] sm:$0xff]  ;;  %v5281_v26 = vld [vmem:[%s5469_s28 + $0xb0] sm:$0xff]  ;;  %v6550_v3 = vld [vmem:[%s5469_s28 + $0x159] sm:$0xff] }
 0x10a   : > { %4110 = vmatprep.subr.msk.bf16.mxu0 %vm6056_vm4, %v4108_v6  ;;  %v7721_v6 = vld [vmem:[#allocation31_spill] sm:$0xff]  ;;  %v4114_v51 = vpack.c.bf16 %v778_v12, %v777_v54  ;;  %v714_v0 = vsel %vm682_vm1, %v7725_v40, %v4395_v23  ;;  %v729_v12 = vsel %vm715_vm2, %v696_v24, %v4430_v37  ;;  %4008 = vmatprep.mubr.msk.f32.mxu1 %vm788_vm0, %v3572_v43 }
 0x10b   : > { %v6341_v20 = vpop.permute.xlu0 %4588  ;;  %4898 = vrot.lane.b32.xlu1 %v4897_v39, %s5392_s4  ;;  %v4917_v39 = vpack.i.bf16 %v3691_v50, %v3690_v49  ;;  %v4474_v45 = vunpack.i.l.bf16 %v7721_v6  ;;  %v4475_v47 = vunpack.i.h.bf16 %v7721_v6  ;;  %v4510_v49 = vunpack.i.h.bf16 %v7722_v48  ;;  %7745 = vst [vmem:[#allocation13_spill] sm:$0xff] %v6550_v3 }
 0x10c   : > { %7716 = vst [vmem:[#allocation11_spill] sm:$0xff] %v6341_v20  ;;  %4903 = vrot.lane.b32.xlu0 %v5998_v46, %s5392_s4  ;;  %v4394_v46 = vunpack.i.l.bf16 %v7719_v11  ;;  %v4509_v50 = vunpack.i.l.bf16 %v7722_v48  ;;  %v695_v22 = vsel %vm682_vm1, %v5278_v9, %v4349_v53  ;;  %v7728_v48 = vld [vmem:[#allocation35_spill] sm:$0xff]  ;;  %v5280_v9 = vld [vmem:[%s5469_s28 + $0xa8] sm:$0xff] }
 0x10d   : > { %v6352_v63 = vpop.permute.xlu1 %4623  ;;  %v728_v54 = vsel %vm715_vm2, %v695_v22, %v4429_v34  ;;  %v747_v11 = vsel %vm715_vm2, %v714_v0, %v4475_v47  ;;  %v762_v23 = vsel %vm748_vm3, %v729_v12, %v4510_v49  ;;  %v7726_v34 = vld [vmem:[#allocation20_spill] sm:$0xff]  ;;  %v4515_v49 = vunpack.i.h.bf16 %v7728_v48  ;;  %v3870_v12 = vld [vmem:[%s5469_s28 + $0x4a] sm:$0xff] }
 0x10e   : > { %7717 = vst [vmem:[#allocation19_spill] sm:$0xff] %v6352_v63  ;;  %v713_v55 = vsel %vm682_vm1, %v7724_v21, %v4394_v46  ;;  %v761_v46 = vsel %vm748_vm3, %v728_v54, %v4509_v50  ;;  %v780_v37 = vsel %vm748_vm3, %v747_v11, %v4555_v52  ;;  %v4355_v6 = vunpack.i.h.bf16 %v7726_v34  ;;  %v3887_v52 = vld [vmem:[%s5469_s28 + $0x112] sm:$0xff] }
 0x10f   : > { %v6363_v58 = vpop.permute.xlu0 %4598  ;;  %4908 = vrot.lane.b32.xlu1 %v4907_v2, %s5392_s4  ;;  %v746_v1 = vsel %vm715_vm2, %v713_v55, %v4474_v45  ;;  %v4354_v45 = vunpack.i.l.bf16 %v7726_v34  ;;  %v4117_v47 = vpack.c.bf16 %v762_v23, %v761_v46  ;;  %v4514_v50 = vunpack.i.l.bf16 %v7728_v48  ;;  %v3692_v23 = vld [vmem:[%s5469_s28 + $0x120] sm:$0xff]  ;;  %v7734_v48 = vld [vmem:[#allocation22_spill] sm:$0xff] }
 0x110   : > { %4913 = vrot.lane.b32.xlu0 %v4912_v14, %s5390_s29  ;;  %v4932_v14 = vpack.i.bf16 %v3675_v27, %v3674_v41  ;;  %v779_v38 = vsel %vm748_vm3, %v746_v1, %v4554_v16  ;;  %v698_v24 = vsel %vm682_vm1, %v5281_v26, %v4355_v6  ;;  %v4947_v40 = vpack.i.bf16 %v3887_v52, %v6333_v62  ;;  %v3871_v1 = vld [vmem:[%s5469_s28 + $0x52] sm:$0xff]  ;;  %v3826_v34 = vld [vmem:[%s5469_s28 + $0x122] sm:$0xff] }
 0x111   : > { %4113 = vmatpush3.bf16.xpose.msk.msra.mxu0 %vm6056_vm4, %v4111_v59  ;;  %v6376_v2 = vpop.permute.xlu1 %4633  ;;  %v7727_v59 = vld [vmem:[#allocation28_spill] sm:$0xff]  ;;  %v697_v22 = vsel %vm682_vm1, %v5280_v9, %v4354_v45  ;;  %v4957_v62 = vpack.i.bf16 %v3871_v1, %v3870_v12  ;;  %v4962_v46 = vpack.i.bf16 %v3870_v12, %v3887_v52  ;;  %v3889_v52 = vld [vmem:[%s5469_s28 + $0x12a] sm:$0xff]  ;;  %v3695_v12 = vld [vmem:[%s5469_s28 + $0x140] sm:$0xff] }
 0x112   : > { %7723 = vst [vmem:[#allocation23_spill] sm:$0xff] %v6376_v2  ;;  %4116 = vmatprep.subr.msk.bf16.mxu0 %vm6056_vm4, %v4114_v51  ;;  %v4435_v41 = vunpack.i.h.bf16 %v7727_v59  ;;  %v4434_v27 = vunpack.i.l.bf16 %v7727_v59  ;;  %v4120_v51 = vpack.c.bf16 %v780_v37, %v779_v38  ;;  %v3693_v38 = vld [vmem:[%s5469_s28 + $0x128] sm:$0xff]  ;;  %v4972_v59 = vpack.i.bf16 %v3826_v34, %v3871_v1 }
 0x113   : > { %v6391_v53 = vpop.permute.xlu0 %4608  ;;  %4918 = vrot.lane.b32.xlu1 %v4917_v39, %s5391_s30  ;;  %v4967_v45 = vpack.i.bf16 %v3693_v38, %v3692_v23  ;;  %v4997_v26 = vpack.i.bf16 %v3889_v52, %v3826_v34  ;;  %v3678_v38 = vld [vmem:[%s5469_s28 + $0x78] sm:$0xff]  ;;  %v3679_v34 = vld [vmem:[%s5469_s28 + $0x80] sm:$0xff] }
 0x114   : > { %4923 = vrot.lane.b32.xlu0 %v4922_v10, %s5390_s29  ;;  %v730_v21 = vsel %vm715_vm2, %v697_v22, %v4434_v27  ;;  %v731_v55 = vsel %vm715_vm2, %v698_v24, %v4435_v41  ;;  %v3677_v27 = vld [vmem:[%s5469_s28 + $0x68] sm:$0xff] }
 0x115   : > { %v6404_v39 = vpop.permute.xlu1 %4643  ;;  %v763_v0 = vsel %vm748_vm3, %v730_v21, %v4514_v50  ;;  %v764_v54 = vsel %vm748_vm3, %v731_v55, %v4515_v49  ;;  %v3872_v24 = vld [vmem:[%s5469_s28 + $0x62] sm:$0xff]  ;;  %v3873_v21 = vld [vmem:[%s5469_s28 + $0x6a] sm:$0xff] }
 0x117   : > { %v6410_v10 = vpop.permute.xlu0 %4618  ;;  %4928 = vrot.lane.b32.xlu1 %v6167_v61, %s5391_s30 }
 0x118   : > { %4933 = vrot.lane.b32.xlu0 %v4932_v14, %s5391_s30 }
 0x119   : > { %4119 = vmatpush3.bf16.xpose.msk.msra.mxu0 %vm6056_vm4, %v4117_v47  ;;  %v6420_v16 = vpop.permute.xlu1 %4653 }
 0x11a   : > { %7729 = vst [vmem:[#allocation27_spill] sm:$0xff] %v6420_v16  ;;  %4122 = vmatprep.subr.msk.bf16.mxu0 %vm6056_vm4, %v4120_v51  ;;  %v6590_v16 = vld [vmem:[%s5469_s28 + $0x169] sm:$0xff] }
 0x11b   : > { %v6430_v14 = vpop.permute.xlu0 %4628  ;;  %4938 = vrot.lane.b32.xlu1 %v6167_v61, %s5392_s4  ;;  %v4123_v61 = vpack.c.bf16 %v764_v54, %v763_v0  ;;  %v5007_v0 = vpack.i.bf16 %v3873_v21, %v3872_v24  ;;  %v5012_v54 = vpack.i.bf16 %v3872_v24, %v3889_v52  ;;  %v3891_v52 = vld [vmem:[%s5469_s28 + $0x142] sm:$0xff]  ;;  %7747 = vst [vmem:[#allocation24_spill] sm:$0xff] %v6590_v16 }
 0x11c   : > { %7730 = vst [vmem:[#allocation30_spill] sm:$0xff] %v6430_v14  ;;  %4943 = vrot.lane.b32.xlu0 %v6000_v33, %s5391_s30  ;;  %v3875_v24 = vld [vmem:[%s5469_s28 + $0x82] sm:$0xff]  ;;  %v3847_v14 = vld [vmem:[%s5469_s28 + $0xb1] sm:$0xff] }
 0x11d   : > { %v6441_v43 = vpop.permute.xlu1 %4663 }
 0x11e   : > { %7731 = vst [vmem:[#allocation34_spill] sm:$0xff] %v6441_v43  ;;  %v3846_v43 = vld [vmem:[%s5469_s28 + $0xa9] sm:$0xff] }
 0x11f   : > { %v6443_v11 = vpop.permute.xlu0 %4638  ;;  %4948 = vrot.lane.b32.xlu1 %v4947_v40, %s5392_s4 }
 0x120   : > { %4953 = vrot.lane.b32.xlu0 %v6000_v33, %s5392_s4  ;;  %v3676_v33 = vld [vmem:[%s5469_s28 + $0x60] sm:$0xff]  ;;  %v4641_v20 = vunpack.i.h.bf16 %v6443_v11 }
 0x121   : > { %4125 = vmatpush3.bf16.xpose.msk.msra.mxu0 %vm6056_vm4, %v4123_v61  ;;  %v6452_v37 = vpop.permute.xlu1 %4673  ;;  %v4982_v49 = vpack.i.bf16 %v3677_v27, %v3676_v33  ;;  %v6499_v61 = vld [vmem:[%s5469_s28 + $0x141] sm:$0xff]  ;;  %v5032_v33 = vpack.i.bf16 %v3679_v34, %v3678_v38  ;;  %v3845_v38 = vld [vmem:[%s5469_s28 + $0x99] sm:$0xff] }
 0x122   : > { %7732 = vst [vmem:[#allocation5_spill] sm:$0xff] %v6452_v37  ;;  %7738 = vst [vmem:[#allocation25_spill] sm:$0xff] %v6499_v61  ;;  %v5022_v23 = vpack.i.bf16 %v6499_v61, %v3873_v21  ;;  %v6529_v21 = vld [vmem:[%s5469_s28 + $0x150] sm:$0xff] }
 0x123   : > { %v6455_v6 = vpop.permute.xlu0 %4648  ;;  %4958 = vrot.lane.b32.xlu1 %v4957_v62, %s5392_s4  ;;  %v3892_v34 = vld [vmem:[%s5469_s28 + $0x152] sm:$0xff] }
 0x124   : > { %4963 = vrot.lane.b32.xlu0 %v4962_v46, %s5390_s29  ;;  %v6570_v37 = vld [vmem:[%s5469_s28 + $0x170] sm:$0xff] }
 0x125   : > { %v6459_v41 = vpop.permute.xlu1 %4683 }
 0x127   : > { %v6463_v47 = vpop.permute.xlu0 %4658  ;;  %4968 = vrot.lane.b32.xlu1 %v4967_v45, %s5391_s30 }
 0x128   : > { %7733 = vst [vmem:[#allocation6_spill] sm:$0xff] %v6463_v47  ;;  %4973 = vrot.lane.b32.xlu0 %v4972_v59, %s5390_s29  ;;  %3975 = vmatmul.mubr.msk.f32.vlgmr.msra.gmra.mrb[0].mxu0 %vm788_vm0, %v7734_v48  ;;  %v5027_v59 = vpack.i.bf16 %v6499_v61, %v6172_v36  ;;  %v3874_v36 = vld [vmem:[%s5469_s28 + $0x7a] sm:$0xff]  ;;  %v962_v61 = vld [vmem:[%s5469_s28 + $0x9] sm:$0xff] }
 0x129   : > { %v6469_v50 = vpop.permute.xlu1 %4693  ;;  %v5057_v47 = vpack.i.bf16 %v3875_v24, %v3874_v36 }
 0x12b   : > { %v6471_v51 = vpop.permute.xlu0 %4668  ;;  %4978 = vrot.lane.b32.xlu1 %v6169_v44, %s5391_s30 }
 0x12c   : > { %7735 = vst [vmem:[#allocation14_spill] sm:$0xff] %v6471_v51  ;;  %4983 = vrot.lane.b32.xlu0 %v4982_v49, %s5391_s30  ;;  %v3890_v49 = vld [vmem:[%s5469_s28 + $0x13a] sm:$0xff] }
 0x12d   : > { %v6477_v9 = vpop.permute.xlu1 %4703  ;;  %v3877_v51 = vld [vmem:[%s5469_s28 + $0x9a] sm:$0xff] }
 0x12e   : > { %7736 = vst [vmem:[#allocation15_spill] sm:$0xff] %v6477_v9 }
 0x12f   : > { %v6479_v22 = vpop.permute.xlu0 %4678  ;;  %4988 = vrot.lane.b32.xlu1 %v6169_v44, %s5392_s4  ;;  %v3694_v44 = vld [vmem:[%s5469_s28 + $0x138] sm:$0xff] }
 0x130   : > { %4993 = vrot.lane.b32.xlu0 %v6002_v4, %s5391_s30  ;;  %v5017_v46 = vpack.i.bf16 %v3695_v12, %v3694_v44  ;;  %v6538_v44 = vld [vmem:[%s5469_s28 + $0x98] sm:$0xff] }
 0x131   : > { %v6487_v55 = vpop.permute.xlu1 %4713 }
 0x132   : > { %7737 = vst [vmem:[#allocation18_spill] sm:$0xff] %v6487_v55  ;;  %v3876_v55 = vld [vmem:[%s5469_s28 + $0x92] sm:$0xff] }
 0x133   : > { %v6489_v40 = vpop.permute.xlu0 %4688  ;;  %4998 = vrot.lane.b32.xlu1 %v4997_v26, %s5392_s4 }
 0x134   : > { %5003 = vrot.lane.b32.xlu0 %v6002_v4, %s5392_s4 }
 0x135   : > { %v6496_v1 = vpop.permute.xlu1 %4723 }
 0x137   : > { %v6501_v62 = vpop.permute.xlu0 %4698  ;;  %5008 = vrot.lane.b32.xlu1 %v5007_v0, %s5392_s4  ;;  %v6532_v0 = vld [vmem:[%s5469_s28 + $0x158] sm:$0xff] }
 0x138   : > { %7739 = vst [vmem:[#allocation26_spill] sm:$0xff] %v6501_v62  ;;  %5013 = vrot.lane.b32.xlu0 %v5012_v54, %s5390_s29  ;;  %v6535_v54 = vld [vmem:[%s5469_s28 + $0x90] sm:$0xff]  ;;  %v5067_v2 = vpack.i.bf16 %v6532_v0, %v6529_v21  ;;  %v4560_v62 = vunpack.i.l.bf16 %v6157_v56  ;;  %v6601_v21 = vpack.i.bf16 %v3877_v51, %v3876_v55  ;;  %v961_v0 = vld [vmem:[%s5469_s28 + $0x1] sm:$0xff]  ;;  %v4606_v51 = vunpack.i.h.bf16 %v6292_v13 }
 0x139   : > { %v6506_v4 = vpop.permute.xlu1 %4733  ;;  %v4605_v55 = vunpack.i.l.bf16 %v6292_v13  ;;  %v4686_v13 = vunpack.i.h.bf16 %v6459_v41 }
 0x13a   : > { %7740 = vst [vmem:[#allocation32_spill] sm:$0xff] %v6506_v4  ;;  %v3895_v4 = vld [vmem:[%s5469_s28 + $0x172] sm:$0xff] }
 0x13b   : > { %v6510_v45 = vpop.permute.xlu0 %4708  ;;  %5018 = vrot.lane.b32.xlu1 %v5017_v46, %s5391_s30  ;;  %v5047_v46 = vpack.i.bf16 %v3891_v52, %v3890_v49  ;;  %v6560_v49 = vld [vmem:[%s5469_s28 + $0xa8] sm:$0xff]  ;;  %v6563_v52 = vld [vmem:[%s5469_s28 + $0xb0] sm:$0xff] }
 0x13c   : > { %7741 = vst [vmem:[#allocation33_spill] sm:$0xff] %v6510_v45  ;;  %5023 = vrot.lane.b32.xlu0 %v5022_v23, %s5390_s29  ;;  %v3844_v23 = vld [vmem:[%s5469_s28 + $0x91] sm:$0xff]  ;;  %v4561_v45 = vunpack.i.h.bf16 %v6157_v56 }
 0x13d   : > { %v6516_v27 = vpop.permute.xlu1 %4743  ;;  %v6597_v36 = vpack.i.bf16 %v3845_v38, %v3844_v23  ;;  %v6619_v23 = vpack.i.bf16 %v3895_v4, %v3894_v8  ;;  %v4601_v38 = vunpack.i.h.bf16 %v6363_v58  ;;  %v4685_v8 = vunpack.i.l.bf16 %v6459_v41 }
 0x13e   : > { %7742 = vst [vmem:[#allocation8_spill] sm:$0xff] %v6516_v27  ;;  %v6566_v27 = vld [vmem:[%s5469_s28 + $0x168] sm:$0xff] }
 0x13f   : > { %v6518_v48 = vpop.permute.xlu0 %4718  ;;  %5028 = vrot.lane.b32.xlu1 %v5027_v59, %s5391_s30  ;;  %7749 = vst [vmem:[#allocation31_spill] sm:$0xff] %v6619_v23 }
 0x140   : > { %5033 = vrot.lane.b32.xlu0 %v5032_v33, %s5391_s30  ;;  %v6547_v33 = vld [vmem:[%s5469_s28 + $0x151] sm:$0xff]  ;;  %v4720_v4 = vunpack.i.l.bf16 %v6518_v48 }
 0x141   : > { %v6524_v26 = vpop.permute.xlu1 %4753  ;;  %7744 = vst [vmem:[#allocation12_spill] sm:$0xff] %v6547_v33  ;;  %v6582_v63 = vpack.i.bf16 %v6550_v3, %v6547_v33 }
 0x142   : > { %7743 = vst [vmem:[#allocation9_spill] sm:$0xff] %v6524_v26  ;;  %v3893_v26 = vld [vmem:[%s5469_s28 + $0x15a] sm:$0xff] }
 0x143   : > { %v6540_v12 = vpop.permute.xlu0 %4728  ;;  %5038 = vrot.lane.b32.xlu1 %v5027_v59, %s5392_s4  ;;  %v6599_v24 = vpack.i.bf16 %v3893_v26, %v3892_v34  ;;  %v1474_v26 = vsel %vm682_vm1, %v962_v61, %v4561_v45  ;;  %v4600_v34 = vunpack.i.l.bf16 %v6363_v58  ;;  %v4681_v58 = vunpack.i.h.bf16 %v6479_v22 }
 0x144   : > { %5043 = vrot.lane.b32.xlu0 %v6004_v19, %s5391_s30  ;;  %v4680_v61 = vunpack.i.l.bf16 %v6479_v22 }
 0x145   : > { %v6557_v59 = vpop.permute.xlu1 %4763  ;;  %v1489_v22 = vsel %vm682_vm1, %v6071_v31, %v4600_v34  ;;  %v4611_v34 = vunpack.i.h.bf16 %v6391_v53 }
 0x146   : > { %v4766_v41 = vunpack.i.h.bf16 %v6557_v59  ;;  %v1521_v31 = vsel %vm715_vm2, %v1489_v22, %v4680_v61  ;;  %v4646_v61 = vunpack.i.h.bf16 %v6404_v39 }
 0x147   : > { %v6575_v9 = vpop.permute.xlu0 %4738  ;;  %5048 = vrot.lane.b32.xlu1 %v5047_v46, %s5392_s4 }
 0x148   : > { %7746 = vst [vmem:[#allocation21_spill] sm:$0xff] %v6575_v9  ;;  %v6593_v9 = vld [vmem:[%s5469_s28 + $0x171] sm:$0xff]  ;;  %5053 = vrot.lane.b32.xlu0 %v6004_v19, %s5392_s4  ;;  %v6614_v19 = vpack.i.bf16 %v3847_v14, %v3846_v43  ;;  %v1473_v14 = vsel %vm682_vm1, %v961_v0, %v4560_v62  ;;  %v4566_v43 = vunpack.i.h.bf16 %v6190_v7  ;;  %v1492_v62 = vsel %vm682_vm1, %v6099_v35, %v4606_v51 }
 0x149   : > { %7748 = vst [vmem:[#allocation29_spill] sm:$0xff] %v6593_v9  ;;  %v6604_v33 = vpop.permute.xlu1 %4773  ;;  %v6610_v56 = vpack.i.bf16 %v6593_v9, %v6590_v16  ;;  %v4640_v16 = vunpack.i.l.bf16 %v6443_v11  ;;  %v4721_v11 = vunpack.i.h.bf16 %v6518_v48  ;;  %v1491_v0 = vsel %vm682_vm1, %v6088_v42, %v4605_v55 }
 0x14a   : > { %v1490_v48 = vsel %vm682_vm1, %v6074_v28, %v4601_v38  ;;  %v1506_v35 = vsel %vm715_vm2, %v1474_v26, %v4641_v20  ;;  %v1523_v51 = vsel %vm715_vm2, %v1491_v0, %v4685_v8  ;;  %v1524_v42 = vsel %vm715_vm2, %v1492_v62, %v4686_v13  ;;  %v3878_v8 = vld [vmem:[%s5469_s28 + $0xaa] sm:$0xff] }
 0x14b   : > { %v6625_v9 = vpop.permute.xlu0 %4748  ;;  %5058 = vrot.lane.b32.xlu1 %v5057_v47, %s5392_s4  ;;  %v1522_v28 = vsel %vm715_vm2, %v1490_v48, %v4681_v58  ;;  %v1538_v20 = vsel %vm748_vm3, %v1506_v35, %v4721_v11  ;;  %v1556_v26 = vsel %vm748_vm3, %v1524_v42, %v4766_v41  ;;  %v4565_v38 = vunpack.i.l.bf16 %v6190_v7  ;;  %v3879_v58 = vld [vmem:[%s5469_s28 + $0xb2] sm:$0xff]  ;;  %v5282_v35 = vld [vmem:[%s5469_s28 + $0x21] sm:$0xff] }
 0x14c   : > { %7750 = vst [vmem:[#allocation36_spill] sm:$0xff] %v6625_v9  ;;  %5063 = vrot.lane.b32.xlu0 %v5047_v46, %s5390_s29  ;;  %v4765_v46 = vunpack.i.l.bf16 %v6557_v59  ;;  %v1505_v9 = vsel %vm715_vm2, %v1473_v14, %v4640_v16  ;;  %v4610_v14 = vunpack.i.l.bf16 %v6391_v53  ;;  %v4691_v11 = vunpack.i.h.bf16 %v6489_v40  ;;  %v6683_v62 = vld [vmem:[%s5469_s28 + $0x171] sm:$0xff] }
 0x14d   : > { %v6637_v45 = vpop.permute.xlu1 %4783  ;;  %v1537_v16 = vsel %vm748_vm3, %v1505_v9, %v4720_v4  ;;  %v7751_v7 = vpack.i.bf16 %v6538_v44, %v6535_v54  ;;  %v6680_v4 = vld [vmem:[%s5469_s28 + $0x169] sm:$0xff]  ;;  %v4690_v0 = vunpack.i.l.bf16 %v6489_v40  ;;  %v4726_v41 = vunpack.i.h.bf16 %v6496_v1 }
 0x14e   : > { %v1555_v59 = vsel %vm748_vm3, %v1523_v51, %v4765_v46  ;;  %v4129_v53 = vpack.c.bf16 %v1538_v20, %v1537_v16  ;;  %v4576_v44 = vunpack.i.h.bf16 %v6217_v32  ;;  %v6695_v40 = vpack.i.bf16 %v3879_v58, %v3878_v8  ;;  %v5283_v51 = vld [vmem:[%s5469_s28 + $0x19] sm:$0xff] }
 0x14f   : > { %v4759_v3 = vpop.permute.xlu0 %4758  ;;  %5068 = vrot.lane.b32.xlu1 %v5067_v2, %s5391_s30  ;;  %v4132_v54 = vpack.c.bf16 %v1556_v26, %v1555_v59  ;;  %v1475_v42 = vsel %vm682_vm1, %v5283_v51, %v4565_v38  ;;  %v6711_v16 = vld [vmem:[%s5469_s28 + $0x180] sm:$0xff]  ;;  %v1494_v20 = vsel %vm682_vm1, %v6105_v60, %v4611_v34  ;;  %v5284_v60 = vld [vmem:[%s5469_s28 + $0x51] sm:$0xff]  ;;  %v4571_v58 = vunpack.i.h.bf16 %v6281_v57 }
 0x150   : > { %v4761_v55 = vunpack.i.h.bf16 %v4759_v3  ;;  %v4760_v23 = vunpack.i.l.bf16 %v4759_v3  ;;  %5073 = vrot.lane.b32.xlu0 %v5057_v47, %s5390_s29  ;;  %v4585_v51 = vunpack.i.l.bf16 %v6244_v25 }
 0x151   : > { %v6655_v2 = vpop.permute.xlu1 %4793 }
 0x152   : > { %v1553_v3 = vsel %vm748_vm3, %v1521_v31, %v4760_v23  ;;  %v1554_v47 = vsel %vm748_vm3, %v1522_v28, %v4761_v55  ;;  %v4645_v23 = vunpack.i.l.bf16 %v6404_v39  ;;  %v4725_v39 = vunpack.i.l.bf16 %v6496_v1 }
 0x153   : > { %v4769_v13 = vpop.permute.xlu0 %4768  ;;  %5078 = vrot.lane.b32.xlu1 %v6582_v63, %s5391_s30  ;;  %v4126_v9 = vpack.c.bf16 %v1554_v47, %v1553_v3  ;;  %v1476_v1 = vsel %vm682_vm1, %v5282_v35, %v4566_v43  ;;  %v4575_v55 = vunpack.i.l.bf16 %v6217_v32  ;;  %v5167_v28 = vpack.i.bf16 %v6683_v62, %v6680_v4  ;;  %v6714_v43 = vld [vmem:[%s5469_s28 + $0x188] sm:$0xff] }
 0x154   : > { %5083 = vrot.lane.b32.xlu0 %v7751_v7, %s5391_s30  ;;  %v4771_v22 = vunpack.i.h.bf16 %v4769_v13  ;;  %v4770_v48 = vunpack.i.l.bf16 %v4769_v13  ;;  %v1493_v32 = vsel %vm682_vm1, %v6102_v15, %v4610_v14  ;;  %v1507_v59 = vsel %vm715_vm2, %v1475_v42, %v4645_v23  ;;  %v5286_v42 = vld [vmem:[%s5469_s28 + $0x39] sm:$0xff] }
 0x155   : > { %4128 = vmatprep.subr.msk.bf16.mxu1 %vm6056_vm4, %v4126_v9  ;;  %v6690_v46 = vpop.permute.xlu1 %4798  ;;  %v1508_v26 = vsel %vm715_vm2, %v1476_v1, %v4646_v61  ;;  %v1525_v3 = vsel %vm715_vm2, %v1493_v32, %v4690_v0  ;;  %v1526_v47 = vsel %vm715_vm2, %v1494_v20, %v4691_v11  ;;  %v1539_v38 = vsel %vm748_vm3, %v1507_v59, %v4725_v39  ;;  %v6766_v1 = vld [vmem:[%s5469_s28 + $0xc0] sm:$0xff]  ;;  %v5287_v20 = vld [vmem:[%s5469_s28 + $0x31] sm:$0xff] }
 0x156   : > { %4131 = vmatpush3.bf16.xpose.msk.msra.mxu1 %vm6056_vm4, %v4129_v53  ;;  %v1540_v13 = vsel %vm748_vm3, %v1508_v26, %v4726_v41  ;;  %v6732_v15 = vsel %vm682_vm1, %v5284_v60, %v4576_v44  ;;  %v1557_v34 = vsel %vm748_vm3, %v1525_v3, %v4770_v48  ;;  %v1558_v14 = vsel %vm748_vm3, %v1526_v47, %v4771_v22  ;;  %v5285_v48 = vld [vmem:[%s5469_s28 + $0x49] sm:$0xff] }
 0x157   : > { %v6702_v31 = vpop.permute.xlu0 %4778  ;;  %4134 = vmatprep.subr.msk.bf16.mxu1 %vm6056_vm4, %v4132_v54  ;;  %5088 = vrot.lane.b32.xlu1 %v6582_v63, %s5392_s4  ;;  %v5177_v8 = vpack.i.bf16 %v6714_v43, %v6711_v16  ;;  %v4570_v61 = vunpack.i.l.bf16 %v6281_v57  ;;  %v4616_v23 = vunpack.i.h.bf16 %v6320_v30  ;;  %v4615_v11 = vunpack.i.l.bf16 %v6320_v30  ;;  %v3865_v26 = vld [vmem:[%s5469_s28 + $0x189] sm:$0xff] }
 0x158   : > { %5093 = vrot.lane.b32.xlu0 %v6597_v36, %s5391_s30  ;;  %v4651_v53 = vunpack.i.h.bf16 %v6455_v6  ;;  %v4650_v0 = vunpack.i.l.bf16 %v6455_v6  ;;  %v4696_v41 = vunpack.i.h.bf16 %v6469_v50  ;;  %v4135_v57 = vpack.c.bf16 %v1540_v13, %v1539_v38 }
 0x159   : > { %v6728_v9 = vpop.permute.xlu1 %4808  ;;  %v4695_v30 = vunpack.i.l.bf16 %v6469_v50  ;;  %v4731_v39 = vunpack.i.h.bf16 %v6540_v12  ;;  %v4730_v54 = vunpack.i.l.bf16 %v6540_v12  ;;  %v4138_v22 = vpack.c.bf16 %v1558_v14, %v1557_v34  ;;  %v6769_v12 = vld [vmem:[%s5469_s28 + $0xc8] sm:$0xff] }
 0x15a   : > { %v6758_v6 = vsel %vm682_vm1, %v5285_v48, %v4575_v55  ;;  %v4776_v35 = vunpack.i.h.bf16 %v6604_v33  ;;  %v4775_v50 = vunpack.i.l.bf16 %v6604_v33  ;;  %v1478_v55 = vsel %vm682_vm1, %v5286_v42, %v4571_v58  ;;  %v3864_v33 = vld [vmem:[%s5469_s28 + $0x181] sm:$0xff] }
 0x15b   : > { %v6742_v7 = vpop.permute.xlu0 %4788  ;;  %5098 = vrot.lane.b32.xlu1 %v6599_v24, %s5392_s4  ;;  %v1477_v32 = vsel %vm682_vm1, %v5287_v20, %v4570_v61  ;;  %v1496_v3 = vsel %vm682_vm1, %v6145_v18, %v4616_v23  ;;  %v1495_v47 = vsel %vm682_vm1, %v6138_v29, %v4615_v11  ;;  %v1510_v13 = vsel %vm715_vm2, %v1478_v55, %v4651_v53  ;;  %v5288_v18 = vld [vmem:[%s5469_s28 + $0x81] sm:$0xff]  ;;  %v7755_v55 = vld [vmem:[#allocation32_spill] sm:$0xff] }
 0x15c   : > { %5103 = vrot.lane.b32.xlu0 %v6597_v36, %s5392_s4  ;;  %v4586_v36 = vunpack.i.h.bf16 %v6244_v25  ;;  %v5192_v25 = vpack.i.bf16 %v6769_v12, %v6766_v1  ;;  %v1509_v38 = vsel %vm715_vm2, %v1477_v32, %v4650_v0  ;;  %v1527_v60 = vsel %vm715_vm2, %v1495_v47, %v4695_v30  ;;  %v7753_v48 = vld [vmem:[#allocation26_spill] sm:$0xff] }
 0x15d   : > { %v6754_v44 = vpop.permute.xlu1 %4818  ;;  %v1528_v34 = vsel %vm715_vm2, %v1496_v3, %v4696_v41  ;;  %v1541_v14 = vsel %vm748_vm3, %v1509_v38, %v4730_v54  ;;  %v1542_v58 = vsel %vm748_vm3, %v1510_v13, %v4731_v39  ;;  %v1559_v23 = vsel %vm748_vm3, %v1527_v60, %v4775_v50  ;;  %v7752_v39 = vld [vmem:[#allocation27_spill] sm:$0xff] }
 0x15e   : > { %4137 = vmatpush3.bf16.xpose.msk.msra.mxu1 %vm6056_vm4, %v4135_v57  ;;  %v6802_v29 = vsel %vm682_vm1, %v5288_v18, %v4586_v36  ;;  %v6806_v11 = vpack.i.bf16 %v3865_v26, %v3864_v33  ;;  %v4596_v53 = vunpack.i.h.bf16 %v6264_v17  ;;  %v4595_v0 = vunpack.i.l.bf16 %v6264_v17  ;;  %v3849_v50 = vld [vmem:[%s5469_s28 + $0xc9] sm:$0xff]  ;;  %v5289_v26 = vld [vmem:[%s5469_s28 + $0x79] sm:$0xff]  ;;  %v5290_v13 = vld [vmem:[%s5469_s28 + $0xb1] sm:$0xff] }
 0x15f   : > { %v6776_v59 = vpop.permute.xlu0 %1574  ;;  %4140 = vmatprep.subr.msk.bf16.mxu1 %vm6056_vm4, %v4138_v22  ;;  %5108 = vrot.lane.b32.xlu1 %v6601_v21, %s5392_s4  ;;  %v4621_v41 = vunpack.i.h.bf16 %v6410_v10  ;;  %v4620_v57 = vunpack.i.l.bf16 %v6410_v10  ;;  %v4656_v54 = vunpack.i.h.bf16 %v7752_v39  ;;  %v4655_v22 = vunpack.i.l.bf16 %v7752_v39  ;;  %v3848_v10 = vld [vmem:[%s5469_s28 + $0xc1] sm:$0xff]  ;;  %v5292_v18 = vld [vmem:[%s5469_s28 + $0x129] sm:$0xff] }
 0x160   : > { %5113 = vrot.lane.b32.xlu0 %v6582_v63, %s5390_s29  ;;  %v1560_v63 = vsel %vm748_vm3, %v1528_v34, %v4776_v35  ;;  %v4701_v36 = vunpack.i.h.bf16 %v7753_v48  ;;  %v7754_v17 = vpack.i.bf16 %v6570_v37, %v6566_v27  ;;  %v4141_v35 = vpack.c.bf16 %v1542_v58, %v1541_v14  ;;  %v7756_v37 = vld [vmem:[#allocation10_spill] sm:$0xff] }
 0x161   : > { %v6798_v61 = vpop.permute.xlu1 %4828  ;;  %v4700_v42 = vunpack.i.l.bf16 %v7753_v48  ;;  %v4735_v20 = vunpack.i.l.bf16 %v7755_v55  ;;  %v4144_v33 = vpack.c.bf16 %v1560_v63, %v1559_v23  ;;  %v6832_v3 = vsel %vm682_vm1, %v5289_v26, %v4585_v51  ;;  %v5291_v34 = vld [vmem:[%s5469_s28 + $0xa9] sm:$0xff]  ;;  %v5293_v63 = vld [vmem:[%s5469_s28 + $0x121] sm:$0xff] }
 0x162   : > { %v4581_v27 = vunpack.i.h.bf16 %v7756_v37  ;;  %v4781_v47 = vunpack.i.h.bf16 %v6702_v31  ;;  %v4780_v38 = vunpack.i.l.bf16 %v6702_v31  ;;  %v6841_v60 = vsel %vm682_vm1, %v5290_v13, %v4596_v53 }
 0x163   : > { %v6812_v30 = vpop.permute.xlu0 %4803  ;;  %5118 = vrot.lane.b32.xlu1 %v6599_v24, %s5390_s29  ;;  %v4736_v24 = vunpack.i.h.bf16 %v7755_v55  ;;  %v6845_v14 = vsel %vm682_vm1, %v5291_v34, %v4595_v0  ;;  %v4580_v51 = vunpack.i.l.bf16 %v7756_v37  ;;  %v6854_v31 = vpack.i.bf16 %v3849_v50, %v3848_v10  ;;  %v7761_v37 = vld [vmem:[#allocation6_spill] sm:$0xff] }
 0x164   : > { %5123 = vrot.lane.b32.xlu0 %v7754_v17, %s5391_s30  ;;  %v1498_v23 = vsel %vm682_vm1, %v5292_v18, %v4621_v41  ;;  %v1497_v53 = vsel %vm682_vm1, %v5293_v63, %v4620_v57  ;;  %v1511_v0 = vsel %vm715_vm2, %v6758_v6, %v4655_v22  ;;  %v1512_v39 = vsel %vm715_vm2, %v6732_v15, %v4656_v54  ;;  %v5294_v57 = vld [vmem:[%s5469_s28 + $0x69] sm:$0xff] }
 0x165   : > { %v6828_v32 = vpop.permute.xlu1 %4838  ;;  %v1529_v48 = vsel %vm715_vm2, %v1497_v53, %v4700_v42  ;;  %v1543_v17 = vsel %vm748_vm3, %v1511_v0, %v4735_v20  ;;  %v1544_v41 = vsel %vm748_vm3, %v1512_v39, %v4736_v24  ;;  %v1482_v10 = vsel %vm682_vm1, %v5294_v57, %v4581_v27  ;;  %v7757_v6 = vld [vmem:[#allocation11_spill] sm:$0xff] }
 0x166   : > { %4143 = vmatpush3.bf16.xpose.msk.msra.mxu1 %vm6056_vm4, %v4141_v35  ;;  %v4591_v22 = vunpack.i.h.bf16 %v7757_v6  ;;  %v1561_v15 = vsel %vm748_vm3, %v1529_v48, %v4780_v38  ;;  %v4590_v50 = vunpack.i.l.bf16 %v7757_v6  ;;  %v7758_v42 = vld [vmem:[#allocation19_spill] sm:$0xff]  ;;  %v7760_v26 = vpack.i.bf16 %v6563_v52, %v6560_v49  ;;  %v5295_v52 = vld [vmem:[%s5469_s28 + $0x61] sm:$0xff]  ;;  %v5296_v48 = vld [vmem:[%s5469_s28 + $0x99] sm:$0xff] }
 0x167   : > { %v6848_v58 = vpop.permute.xlu0 %4813  ;;  %4146 = vmatprep.subr.msk.bf16.mxu1 %vm6056_vm4, %v4144_v33  ;;  %5128 = vrot.lane.b32.xlu1 %v6601_v21, %s5390_s29  ;;  %v1530_v21 = vsel %vm715_vm2, %v1498_v23, %v4701_v36  ;;  %v4626_v36 = vunpack.i.h.bf16 %v7758_v42  ;;  %v4625_v55 = vunpack.i.l.bf16 %v7758_v42  ;;  %v7759_v20 = vld [vmem:[#allocation23_spill] sm:$0xff]  ;;  %v4661_v27 = vunpack.i.h.bf16 %v7761_v37  ;;  %v7763_v23 = vld [vmem:[#allocation21_spill] sm:$0xff] }
 0x168   : > { %5133 = vrot.lane.b32.xlu0 %v6610_v56, %s5391_s30  ;;  %v1562_v54 = vsel %vm748_vm3, %v1530_v21, %v4781_v47  ;;  %v4636_v24 = vunpack.i.h.bf16 %v7759_v20  ;;  %v4660_v47 = vunpack.i.l.bf16 %v7761_v37  ;;  %v7762_v38 = vld [vmem:[#allocation15_spill] sm:$0xff]  ;;  %v4147_v34 = vpack.c.bf16 %v1544_v41, %v1543_v17  ;;  %v7764_v6 = vld [vmem:[#allocation25_spill] sm:$0xff] }
 0x169   : > { %v6870_v35 = vpop.permute.xlu1 %4848  ;;  %v4706_v13 = vunpack.i.h.bf16 %v7762_v38  ;;  %v4705_v18 = vunpack.i.l.bf16 %v7762_v38  ;;  %v4741_v63 = vunpack.i.h.bf16 %v7763_v23  ;;  %v4740_v53 = vunpack.i.l.bf16 %v7763_v23  ;;  %v5297_v41 = vld [vmem:[%s5469_s28 + $0x91] sm:$0xff] }
 0x16a   : > { %v4150_v49 = vpack.c.bf16 %v1562_v54, %v1561_v15  ;;  %v1481_v39 = vsel %vm682_vm1, %v5295_v52, %v4580_v51  ;;  %v6901_v21 = vsel %vm682_vm1, %v5296_v48, %v4591_v22  ;;  %v4785_v17 = vunpack.i.l.bf16 %v6637_v45  ;;  %v7765_v54 = vld [vmem:[#allocation30_spill] sm:$0xff]  ;;  %v7767_v38 = vld [vmem:[#allocation31_spill] sm:$0xff] }
 0x16b   : > { %v6881_v33 = vpop.permute.xlu0 %4823  ;;  %5138 = vrot.lane.b32.xlu1 %v7760_v26, %s5391_s30  ;;  %v6909_v57 = vsel %vm682_vm1, %v5297_v41, %v4590_v50  ;;  %v1500_v15 = vsel %vm682_vm1, %v7764_v6, %v4626_v36  ;;  %v4635_v51 = vunpack.i.l.bf16 %v7759_v20  ;;  %v4631_v42 = vunpack.i.h.bf16 %v7765_v54  ;;  %v7766_v50 = vld [vmem:[#allocation29_spill] sm:$0xff] }
 0x16c   : > { %5143 = vrot.lane.b32.xlu0 %v6610_v56, %s5392_s4  ;;  %v4786_v56 = vunpack.i.h.bf16 %v6637_v45  ;;  %v5298_v45 = vld [vmem:[%s5469_s28 + $0x139] sm:$0xff]  ;;  %v6925_v37 = vsel %vm682_vm1, %v7766_v50, %v4636_v24  ;;  %v1513_v36 = vsel %vm715_vm2, %v1481_v39, %v4660_v47  ;;  %v1514_v20 = vsel %vm715_vm2, %v1482_v10, %v4661_v27  ;;  %v7768_v24 = vld [vmem:[#allocation34_spill] sm:$0xff] }
 0x16d   : > { %v6895_v0 = vpop.permute.xlu1 %4858  ;;  %v1499_v26 = vsel %vm682_vm1, %v5298_v45, %v4625_v55  ;;  %v1532_v23 = vsel %vm715_vm2, %v1500_v15, %v4706_v13  ;;  %v1546_v52 = vsel %vm748_vm3, %v1514_v20, %v4741_v63  ;;  %v4630_v48 = vunpack.i.l.bf16 %v7765_v54  ;;  %v7769_v27 = vld [vmem:[#allocation24_spill] sm:$0xff]  ;;  %v7770_v13 = vld [vmem:[#allocation13_spill] sm:$0xff] }
 0x16e   : > { %4149 = vmatpush3.bf16.xpose.msk.msra.mxu1 %vm6056_vm4, %v4147_v34  ;;  %v1531_v34 = vsel %vm715_vm2, %v1499_v26, %v4705_v18  ;;  %v4665_v41 = vunpack.i.l.bf16 %v7768_v24  ;;  %v1564_v10 = vsel %vm748_vm3, %v1532_v23, %v4786_v56  ;;  %v6941_v18 = vsel %vm682_vm1, %v7769_v27, %v4635_v51  ;;  %v7771_v39 = vld [vmem:[#allocation5_spill] sm:$0xff]  ;;  %v7773_v26 = vld [vmem:[#allocation8_spill] sm:$0xff] }
 0x16f   : > { %v6915_v22 = vpop.permute.xlu0 %4833  ;;  %4152 = vmatprep.subr.msk.bf16.mxu1 %vm6056_vm4, %v4150_v49  ;;  %5148 = vrot.lane.b32.xlu1 %v6614_v19, %s5391_s30  ;;  %v1545_v49 = vsel %vm748_vm3, %v1513_v36, %v4740_v53  ;;  %v1563_v47 = vsel %vm748_vm3, %v1531_v34, %v4785_v17  ;;  %v1502_v53 = vsel %vm682_vm1, %v7770_v13, %v4631_v42  ;;  %v4666_v63 = vunpack.i.h.bf16 %v7768_v24  ;;  %v7772_v17 = vld [vmem:[#allocation33_spill] sm:$0xff]  ;;  %v6960_v20 = vld [vmem:[%s5469_s28 + $0xd8] sm:$0xff] }
 0x170   : > { %5153 = vrot.lane.b32.xlu0 %v7767_v38, %s5392_s4  ;;  %v4675_v6 = vunpack.i.l.bf16 %v7771_v39  ;;  %v4711_v54 = vunpack.i.h.bf16 %v7772_v17  ;;  %v4841_v56 = vunpack.i.h.bf16 %v6828_v32  ;;  %v4840_v45 = vunpack.i.l.bf16 %v6828_v32  ;;  %v6963_v34 = vld [vmem:[%s5469_s28 + $0xe0] sm:$0xff]  ;;  %v7774_v24 = vld [vmem:[#allocation12_spill] sm:$0xff] }
 0x171   : > { %v4869_v55 = vpop.permute.xlu1 %4868  ;;  %v4153_v51 = vpack.c.bf16 %v1546_v52, %v1545_v49  ;;  %v4710_v42 = vunpack.i.l.bf16 %v7772_v17  ;;  %v4746_v50 = vunpack.i.h.bf16 %v7773_v26  ;;  %v4745_v36 = vunpack.i.l.bf16 %v7773_v26 }
 0x172   : > { %v4156_v23 = vpack.c.bf16 %v1564_v10, %v1563_v47  ;;  %v1501_v32 = vsel %vm682_vm1, %v7774_v24, %v4630_v48  ;;  %v1515_v27 = vsel %vm715_vm2, %v6832_v3, %v4665_v41  ;;  %v4791_v49 = vunpack.i.h.bf16 %v6742_v7  ;;  %v7775_v3 = vld [vmem:[#allocation14_spill] sm:$0xff] }
 0x173   : > { %v6947_v15 = vpop.permute.xlu0 %4843  ;;  %5158 = vrot.lane.b32.xlu1 %v6614_v19, %s5392_s4  ;;  %v4790_v52 = vunpack.i.l.bf16 %v6742_v7  ;;  %v1516_v13 = vsel %vm715_vm2, %v6802_v29, %v4666_v63  ;;  %v4676_v17 = vunpack.i.h.bf16 %v7771_v39  ;;  %v4871_v26 = vunpack.i.h.bf16 %v4869_v55 }
 0x174   : > { %5163 = vrot.lane.b32.xlu0 %v6695_v40, %s5392_s4  ;;  %v4870_v47 = vunpack.i.l.bf16 %v4869_v55  ;;  %v1519_v7 = vsel %vm715_vm2, %v6845_v14, %v4675_v6  ;;  %v4671_v48 = vunpack.i.h.bf16 %v7775_v3  ;;  %v2280_v29 = vsel %vm682_vm1, %v6963_v34, %v4841_v56 }
 0x175   : > { %v6965_v19 = vpop.permute.xlu1 %4878  ;;  %v2279_v55 = vsel %vm682_vm1, %v6960_v20, %v4840_v45  ;;  %v1533_v41 = vsel %vm715_vm2, %v1501_v32, %v4710_v42  ;;  %v1534_v63 = vsel %vm715_vm2, %v1502_v53, %v4711_v54  ;;  %v1547_v4 = vsel %vm748_vm3, %v1515_v27, %v4745_v36  ;;  %v7777_v32 = vld [vmem:[#allocation36_spill] sm:$0xff] }
 0x176   : > { %4155 = vmatpush3.bf16.xpose.msk.msra.mxu1 %vm6056_vm4, %v4153_v51  ;;  %v1548_v62 = vsel %vm748_vm3, %v1516_v13, %v4746_v50  ;;  %v1565_v14 = vsel %vm748_vm3, %v1533_v41, %v4790_v52  ;;  %v1566_v39 = vsel %vm748_vm3, %v1534_v63, %v4791_v49  ;;  %v4670_v45 = vunpack.i.l.bf16 %v7775_v3  ;;  %v7776_v51 = vld [vmem:[#allocation18_spill] sm:$0xff] }
 0x177   : > { %v6978_v10 = vpop.permute.xlu0 %4853  ;;  %4158 = vmatprep.subr.msk.bf16.mxu1 %vm6056_vm4, %v4156_v23  ;;  %5168 = vrot.lane.b32.xlu1 %v5167_v28, %s5390_s29  ;;  %v4716_v23 = vunpack.i.h.bf16 %v7776_v51  ;;  %v2312_v42 = vsel %vm715_vm2, %v2280_v29, %v4871_v26  ;;  %v4715_v54 = vunpack.i.l.bf16 %v7776_v51  ;;  %v4159_v24 = vpack.c.bf16 %v1548_v62, %v1547_v4  ;;  %v7778_v29 = vld [vmem:[#allocation9_spill] sm:$0xff] }
 0x178   : > { %5173 = vrot.lane.b32.xlu0 %v7767_v38, %s5390_s29  ;;  %v2311_v38 = vsel %vm715_vm2, %v2279_v55, %v4870_v47  ;;  %v4751_v27 = vunpack.i.h.bf16 %v7777_v32  ;;  %v4750_v49 = vunpack.i.l.bf16 %v7777_v32  ;;  %v4162_v16 = vpack.c.bf16 %v1566_v39, %v1565_v14  ;;  %v7036_v63 = vld [vmem:[%s5469_s28 + $0xe1] sm:$0xff] }
 0x179   : > { %v4889_v28 = vpop.permute.xlu1 %4888  ;;  %v4796_v43 = vunpack.i.h.bf16 %v6655_v2  ;;  %v4861_v26 = vunpack.i.h.bf16 %v6895_v0  ;;  %v1517_v3 = vsel %vm715_vm2, %v6909_v57, %v4670_v45  ;;  %v4756_v55 = vunpack.i.h.bf16 %v7778_v29  ;;  %v3896_v62 = vld [vmem:[%s5469_s28 + $0x182] sm:$0xff] }
 0x17a   : > { %v4891_v6 = vunpack.i.h.bf16 %v4889_v28  ;;  %v4890_v56 = vunpack.i.l.bf16 %v4889_v28  ;;  %v4755_v41 = vunpack.i.l.bf16 %v7778_v29  ;;  %v1535_v57 = vsel %vm715_vm2, %v6941_v18, %v4715_v54  ;;  %v3897_v28 = vld [vmem:[%s5469_s28 + $0x18a] sm:$0xff]  ;;  %v7093_v32 = vld [vmem:[%s5469_s28 + $0x1a0] sm:$0xff] }
 0x17b   : > { %v7005_v53 = vpop.permute.xlu0 %4863  ;;  %5178 = vrot.lane.b32.xlu1 %v5177_v8, %s5391_s30  ;;  %v4795_v8 = vunpack.i.l.bf16 %v6655_v2  ;;  %v7033_v2 = vld [vmem:[%s5469_s28 + $0xd9] sm:$0xff]  ;;  %v1549_v14 = vsel %vm748_vm3, %v1517_v3, %v4750_v49  ;;  %v4881_v18 = vunpack.i.h.bf16 %v6965_v19  ;;  %v7079_v51 = vpack.i.bf16 %v3897_v28, %v3896_v62  ;;  %v3773_v62 = vld [vmem:[%s5469_s28 + $0x21] sm:$0xff] }
 0x17c   : > { %v2343_v50 = vsel %vm748_vm3, %v2311_v38, %v4890_v56  ;;  %v2344_v36 = vsel %vm748_vm3, %v2312_v42, %v4891_v6  ;;  %5183 = vrot.lane.b32.xlu0 %v6695_v40, %s5390_s29  ;;  %v4865_v47 = vunpack.i.l.bf16 %v7005_v53  ;;  %v1520_v40 = vsel %vm715_vm2, %v6841_v60, %v4676_v17  ;;  %v3881_v38 = vld [vmem:[%s5469_s28 + $0xca] sm:$0xff]  ;;  %v3609_v42 = vld [vmem:[%s5469_s28 + $0x20] sm:$0xff]  ;;  %v3627_v3 = vld [vmem:[%s5469_s28 + $0xf8] sm:$0xff] }
 0x17d   : > { %v4174_v52 = vpack.c.bf16 %v2344_v36, %v2343_v50  ;;  %v7018_v13 = vpop.permute.xlu1 %4898  ;;  %v1518_v60 = vsel %vm715_vm2, %v6901_v21, %v4671_v48  ;;  %v1536_v17 = vsel %vm715_vm2, %v6925_v37, %v4716_v23  ;;  %v4880_v37 = vunpack.i.l.bf16 %v6965_v19  ;;  %v3880_v23 = vld [vmem:[%s5469_s28 + $0xc2] sm:$0xff]  ;;  %v3772_v29 = vld [vmem:[%s5469_s28 + $0x19] sm:$0xff] }
 0x17e   : > { %4161 = vmatpush3.bf16.xpose.msk.msra.mxu1 %vm6056_vm4, %v4159_v24  ;;  %v1550_v21 = vsel %vm748_vm3, %v1518_v60, %v4751_v27  ;;  %v1567_v1 = vsel %vm748_vm3, %v1535_v57, %v4795_v8  ;;  %v1568_v12 = vsel %vm748_vm3, %v1536_v17, %v4796_v43  ;;  %v3069_v39 = vsel %vm682_vm1, %v7036_v63, %v4865_v47  ;;  %v7090_v24 = vld [vmem:[%s5469_s28 + $0x198] sm:$0xff] }
 0x17f   : > { %v7038_v4 = vpop.permute.xlu0 %4873  ;;  %4164 = vmatprep.subr.msk.bf16.mxu1 %vm6056_vm4, %v4162_v16  ;;  %5188 = vrot.lane.b32.xlu1 %v6806_v11, %s5391_s30  ;;  %v7071_v6 = vsel %vm748_vm3, %v1519_v7, %v4755_v41  ;;  %v7074_v19 = vsel %vm748_vm3, %v1520_v40, %v4756_v55  ;;  %v4801_v56 = vunpack.i.h.bf16 %v6690_v46  ;;  %v4800_v54 = vunpack.i.l.bf16 %v6690_v46  ;;  %v3608_v27 = vld [vmem:[%s5469_s28 + $0x18] sm:$0xff]  ;;  %v3626_v40 = vld [vmem:[%s5469_s28 + $0xf0] sm:$0xff] }
 0x180   : > { %5193 = vrot.lane.b32.xlu0 %v5192_v25, %s5391_s30  ;;  %4176 = vmatprep.subr.msk.bf16.mxu0 %vm6056_vm4, %v4174_v52  ;;  %v3068_v25 = vsel %vm682_vm1, %v7033_v2, %v4861_v26  ;;  %v4901_v7 = vunpack.i.h.bf16 %v7018_v13  ;;  %v4900_v50 = vunpack.i.l.bf16 %v7018_v13  ;;  %v4165_v36 = vpack.c.bf16 %v1550_v21, %v1549_v14 }
 0x181   : > { %v7062_v48 = vpop.permute.xlu1 %4908  ;;  %v3100_v49 = vsel %vm715_vm2, %v3068_v25, %v4880_v37  ;;  %v3101_v46 = vsel %vm715_vm2, %v3069_v39, %v4881_v18  ;;  %v4168_v16 = vpack.c.bf16 %v1568_v12, %v1567_v1  ;;  %v4846_v13 = vunpack.i.h.bf16 %v6947_v15 }
 0x182   : > { %v4845_v43 = vunpack.i.l.bf16 %v6947_v15  ;;  %v4866_v8 = vunpack.i.h.bf16 %v7005_v53  ;;  %v7103_v26 = vpack.i.bf16 %v3881_v38, %v3880_v23  ;;  %v2264_v47 = vsel %vm682_vm1, %v3609_v42, %v4801_v56 }
 0x183   : > { %v4884_v45 = vpop.permute.xlu0 %4883  ;;  %5198 = vrot.lane.b32.xlu1 %v6806_v11, %s5392_s4  ;;  %v4875_v55 = vunpack.i.l.bf16 %v7038_v4  ;;  %v4171_v15 = vpack.c.bf16 %v7074_v19, %v7071_v6  ;;  %v5232_v53 = vpack.i.bf16 %v7093_v32, %v7090_v24  ;;  %v2263_v60 = vsel %vm682_vm1, %v3608_v27, %v4800_v54  ;;  %v3866_v27 = vld [vmem:[%s5469_s28 + $0x199] sm:$0xff] }
 0x184   : > { %5203 = vrot.lane.b32.xlu0 %v6854_v31, %s5391_s30  ;;  %v3132_v57 = vsel %vm748_vm3, %v3100_v49, %v4900_v50  ;;  %v3133_v17 = vsel %vm748_vm3, %v3101_v46, %v4901_v7  ;;  %v4886_v28 = vunpack.i.h.bf16 %v4884_v45  ;;  %v4885_v14 = vunpack.i.l.bf16 %v4884_v45 }
 0x185   : > { %v4919_v52 = vpop.permute.xlu1 %4918  ;;  %v2282_v12 = vsel %vm682_vm1, %v3627_v3, %v4846_v13  ;;  %v2281_v25 = vsel %vm682_vm1, %v3626_v40, %v4845_v43  ;;  %v3052_v39 = vsel %vm682_vm1, %v3772_v29, %v4866_v8  ;;  %v4876_v6 = vunpack.i.h.bf16 %v7038_v4  ;;  %v3791_v40 = vld [vmem:[%s5469_s28 + $0xf9] sm:$0xff] }
 0x186   : > { %4167 = vmatpush3.bf16.xpose.msk.msra.mxu1 %vm6056_vm4, %v4165_v36  ;;  %v4920_v21 = vunpack.i.l.bf16 %v4919_v52  ;;  %v4222_v19 = vpack.c.bf16 %v3133_v17, %v3132_v57  ;;  %v3053_v56 = vsel %vm682_vm1, %v3773_v62, %v4875_v55  ;;  %v4921_v45 = vunpack.i.h.bf16 %v4919_v52 }
 0x187   : > { %v4894_v41 = vpop.permute.xlu0 %4893  ;;  %4170 = vmatprep.subr.msk.bf16.mxu1 %vm6056_vm4, %v4168_v16  ;;  %5208 = vrot.lane.b32.xlu1 %v7079_v51, %s5392_s4  ;;  %v4910_v38 = vunpack.i.l.bf16 %v7062_v48  ;;  %v2296_v42 = vsel %vm715_vm2, %v2264_v47, %v4886_v28  ;;  %v2295_v4 = vsel %vm715_vm2, %v2263_v60, %v4885_v14 }
 0x188   : > { %5213 = vrot.lane.b32.xlu0 %v6854_v31, %s5392_s4  ;;  %v4896_v18 = vunpack.i.h.bf16 %v4894_v41  ;;  %v4895_v37 = vunpack.i.l.bf16 %v4894_v41  ;;  %v4911_v31 = vunpack.i.h.bf16 %v7062_v48  ;;  %v2313_v50 = vsel %vm715_vm2, %v2281_v25, %v4920_v21  ;;  %v3867_v48 = vld [vmem:[%s5469_s28 + $0x1a1] sm:$0xff] }
 0x189   : > { %v4929_v1 = vpop.permute.xlu1 %4928  ;;  %v2314_v13 = vsel %vm715_vm2, %v2282_v12, %v4921_v45 }
 0x18a   : > { %v3084_v36 = vsel %vm715_vm2, %v3052_v39, %v4895_v37  ;;  %v3085_v24 = vsel %vm715_vm2, %v3053_v56, %v4896_v18  ;;  %v4931_v43 = vunpack.i.h.bf16 %v4929_v1  ;;  %v4930_v8 = vunpack.i.l.bf16 %v4929_v1  ;;  %v3898_v56 = vld [vmem:[%s5469_s28 + $0x19a] sm:$0xff] }
 0x18b   : > { %v4904_v23 = vpop.permute.xlu0 %4903  ;;  %5218 = vrot.lane.b32.xlu1 %v7103_v26, %s5392_s4  ;;  %v3116_v60 = vsel %vm748_vm3, %v3084_v36, %v4910_v38  ;;  %v3117_v57 = vsel %vm748_vm3, %v3085_v24, %v4911_v31  ;;  %v5247_v1 = vpack.i.bf16 %v6963_v34, %v6960_v20  ;;  %v3899_v20 = vld [vmem:[%s5469_s28 + $0x1a2] sm:$0xff]  ;;  %v5257_v31 = vpack.i.bf16 %v7036_v63, %v7033_v2  ;;  %v3882_v38 = vld [vmem:[%s5469_s28 + $0xda] sm:$0xff] }
 0x18c   : > { %v4906_v54 = vunpack.i.h.bf16 %v4904_v23  ;;  %v4905_v7 = vunpack.i.l.bf16 %v4904_v23  ;;  %5223 = vrot.lane.b32.xlu0 %v6806_v11, %s5390_s29  ;;  %v3790_v11 = vld [vmem:[%s5469_s28 + $0xf1] sm:$0xff]  ;;  %v4225_v12 = vpack.c.bf16 %v3117_v57, %v3116_v60  ;;  %v5262_v23 = vpack.i.bf16 %v3899_v20, %v3898_v56  ;;  %v3775_v24 = vld [vmem:[%s5469_s28 + $0x39] sm:$0xff] }
 0x18d   : > { %v4939_v32 = vpop.permute.xlu1 %4938  ;;  %v3070_v28 = vsel %vm682_vm1, %v3790_v11, %v4876_v6  ;;  %v4805_v36 = vunpack.i.l.bf16 %v6812_v30 }
 0x18e   : > { %v2327_v49 = vsel %vm748_vm3, %v2295_v4, %v4905_v7  ;;  %v2328_v46 = vsel %vm748_vm3, %v2296_v42, %v4906_v54  ;;  %v4941_v52 = vunpack.i.h.bf16 %v4939_v32  ;;  %v4940_v16 = vunpack.i.l.bf16 %v4939_v32  ;;  %4173 = vmatpush3.bf16.xpose.msk.msra.mxu1 %vm6056_vm4, %v4171_v15  ;;  %v3883_v42 = vld [vmem:[%s5469_s28 + $0xe2] sm:$0xff]  ;;  %v3774_v54 = vld [vmem:[%s5469_s28 + $0x31] sm:$0xff] }
 0x18f   : > { %v4177_v47 = vpack.c.bf16 %v2328_v46, %v2327_v49  ;;  %v4914_v3 = vpop.permute.xlu0 %4913  ;;  %4224 = vmatprep.subr.msk.bf16.mxu1 %vm6056_vm4, %v4222_v19  ;;  %5228 = vrot.lane.b32.xlu1 %v7079_v51, %s5390_s29  ;;  %v5242_v15 = vpack.i.bf16 %v3867_v48, %v3866_v27  ;;  %v4851_v32 = vunpack.i.h.bf16 %v6870_v35  ;;  %v5272_v48 = vpack.i.bf16 %v3883_v42, %v3882_v38  ;;  %v3793_v38 = vld [vmem:[%s5469_s28 + $0x111] sm:$0xff] }
 0x190   : > { %v2345_v29 = vsel %vm748_vm3, %v2313_v50, %v4940_v16  ;;  %v2346_v55 = vsel %vm748_vm3, %v2314_v13, %v4941_v52  ;;  %v4915_v41 = vunpack.i.l.bf16 %v4914_v3  ;;  %5233 = vrot.lane.b32.xlu0 %v5232_v53, %s5391_s30  ;;  %v3102_v53 = vsel %vm715_vm2, %v3070_v28, %v4930_v8  ;;  %v5303_v28 = vld [vmem:[%s5469_s28 + $0x108] sm:$0xff] }
 0x191   : > { %v4180_v17 = vpack.c.bf16 %v2346_v55, %v2345_v29  ;;  %4179 = vmatpush3.bf16.xpose.msk.msra.mxu0 %vm6056_vm4, %v4177_v47  ;;  %v4949_v62 = vpop.permute.xlu1 %4948  ;;  %v4916_v45 = vunpack.i.h.bf16 %v4914_v3  ;;  %v4806_v50 = vunpack.i.h.bf16 %v6812_v30  ;;  %v4850_v49 = vunpack.i.l.bf16 %v6870_v35  ;;  %v5300_v47 = vld [vmem:[%s5469_s28 + $0x38] sm:$0xff]  ;;  %v5301_v3 = vld [vmem:[%s5469_s28 + $0x30] sm:$0xff] }
 0x192   : > { %v3071_v51 = vsel %vm682_vm1, %v3791_v40, %v4915_v41  ;;  %v4951_v14 = vunpack.i.h.bf16 %v4949_v62  ;;  %v4950_v21 = vunpack.i.l.bf16 %v4949_v62  ;;  %v2265_v35 = vsel %vm682_vm1, %v5301_v3, %v4805_v36  ;;  %v5302_v41 = vld [vmem:[%s5469_s28 + $0x110] sm:$0xff] }
 0x193   : > { %v3103_v18 = vsel %vm715_vm2, %v3071_v51, %v4931_v43  ;;  %v7164_v37 = vpop.permute.xlu0 %4923  ;;  %5238 = vrot.lane.b32.xlu1 %v7103_v26, %s5390_s29  ;;  %4182 = vmatprep.subr.msk.bf16.mxu0 %vm6056_vm4, %v4180_v17  ;;  %v5299_v26 = vld [vmem:[%s7595_s1 + $0x8] sm:$0xff]  ;;  %v3054_v46 = vsel %vm682_vm1, %v3774_v54, %v4916_v45  ;;  %v2266_v40 = vsel %vm682_vm1, %v5300_v47, %v4806_v50  ;;  %s161_s29 = sand.u32 1, %s5379_s13  }
 0x194   : > { %v3134_v25 = vsel %vm748_vm3, %v3102_v53, %v4950_v21  ;;  %v3135_v39 = vsel %vm748_vm3, %v3103_v18, %v4951_v14  ;;  %5243 = vrot.lane.b32.xlu0 %v5242_v15, %s5391_s30  ;;  %v4925_v7 = vunpack.i.l.bf16 %v7164_v37  ;;  %v2283_v51 = vsel %vm682_vm1, %v5303_v28, %v4850_v49  ;;  %v3776_v47 = vld [vmem:[%s5469_s28 + $0x49] sm:$0xff] }
 0x195   : > { %v4228_v6 = vpack.c.bf16 %v3135_v39, %v3134_v25  ;;  %4009 = vmatmul.mubr.msk.f32.vlgmr.msra.gmra.mrb[0].mxu1 %vm788_vm0, %v5299_v26  ;;  %v4959_v19 = vpop.permute.xlu1 %4958  ;;  %v4926_v18 = vunpack.i.h.bf16 %v7164_v37  ;;  %v3792_v37 = vld [vmem:[%s5469_s28 + $0x109] sm:$0xff] }
 0x196   : > { %4227 = vmatpush3.bf16.xpose.msk.msra.mxu1 %vm6056_vm4, %v4225_v12  ;;  %v4961_v27 = vunpack.i.h.bf16 %v4959_v19  ;;  %v4960_v2 = vunpack.i.l.bf16 %v4959_v19  ;;  %v3055_v30 = vsel %vm682_vm1, %v3775_v24, %v4925_v7  ;;  %v7237_v24 = vld [vmem:[%s7595_s1 + $0x10] sm:$0xff] }
 0x197   : > { %v4934_v34 = vpop.permute.xlu0 %4933  ;;  %5248 = vrot.lane.b32.xlu1 %v5247_v1, %s5391_s30  ;;  %4230 = vmatprep.subr.msk.bf16.mxu1 %vm6056_vm4, %v4228_v6  ;;  %v3150_v6 = vld [vmem:[%s7596_s2] sm:$0xff] }
 0x198   : > { %5253 = vrot.lane.b32.xlu0 %v5242_v15, %s5392_s4  ;;  %v4936_v11 = vunpack.i.h.bf16 %v4934_v34  ;;  %v4935_v13 = vunpack.i.l.bf16 %v4934_v34  ;;  %v2284_v15 = vsel %vm682_vm1, %v5302_v41, %v4851_v32  ;;  %v7242_v32 = vld [vmem:[%s7595_s1 + $0x18] sm:$0xff]  ;;  %4042 = vmatprep.mubr.msk.f32.mxu0 %vm788_vm0, %v7237_v24  ;;  %v4856_v41 = vunpack.i.h.bf16 %v6978_v10 }
 0x199   : > { %v4969_v4 = vpop.permute.xlu1 %4968  ;;  %4076 = vmatprep.mubr.msk.f32.mxu1 %vm788_vm0, %v7242_v32 }
 0x19a   : > { %v4970_v43 = vunpack.i.l.bf16 %v4969_v4  ;;  %v4971_v60 = vunpack.i.h.bf16 %v4969_v4  ;;  %v2297_v1 = vsel %vm715_vm2, %v2265_v35, %v4935_v13  ;;  %v2298_v12 = vsel %vm715_vm2, %v2266_v40, %v4936_v11 }
 0x19b   : > { %v4944_v63 = vpop.permute.xlu0 %4943  ;;  %5258 = vrot.lane.b32.xlu1 %v5257_v31, %s5391_s30  ;;  %v4811_v35 = vunpack.i.h.bf16 %v6728_v9  ;;  %s3409_s30 = sshll.u32 %s161_s29, 6 }
 0x19c   : > { %v4946_v52 = vunpack.i.h.bf16 %v4944_v63  ;;  %v4945_v16 = vunpack.i.l.bf16 %v4944_v63  ;;  %5263 = vrot.lane.b32.xlu0 %v5262_v23, %s5392_s4  ;;  %v2315_v25 = vsel %vm715_vm2, %v2283_v51, %v4970_v43  ;;  %v2316_v34 = vsel %vm715_vm2, %v2284_v15, %v4971_v60 }
 0x19d   : > { %v4979_v8 = vpop.permute.xlu1 %4978 }
 0x19e   : > { %v3086_v29 = vsel %vm715_vm2, %v3054_v46, %v4945_v16  ;;  %v3087_v55 = vsel %vm715_vm2, %v3055_v30, %v4946_v52  ;;  %v4980_v45 = vunpack.i.l.bf16 %v4979_v8 }
 0x19f   : > { %v3118_v57 = vsel %vm748_vm3, %v3086_v29, %v4960_v2  ;;  %v3119_v17 = vsel %vm748_vm3, %v3087_v55, %v4961_v27  ;;  %v4954_v62 = vpop.permute.xlu0 %4953  ;;  %5268 = vrot.lane.b32.xlu1 %v5257_v31, %s5392_s4  ;;  %v4981_v31 = vunpack.i.h.bf16 %v4979_v8  ;;  %v3072_v27 = vsel %vm682_vm1, %v3792_v37, %v4926_v18  ;;  %v3777_v55 = vld [vmem:[%s5469_s28 + $0x51] sm:$0xff] }
 0x1a0   : > { %v4231_v14 = vpack.c.bf16 %v3119_v17, %v3118_v57  ;;  %v4956_v21 = vunpack.i.h.bf16 %v4954_v62  ;;  %v4955_v53 = vunpack.i.l.bf16 %v4954_v62  ;;  %5273 = vrot.lane.b32.xlu0 %v5272_v48, %s5392_s4  ;;  %v3104_v49 = vsel %vm715_vm2, %v3072_v27, %v4980_v45  ;;  %s7448_s4 = scalar_lea.vmem [#allocation2], %s3409_s30 }
 0x1a1   : > { %v4989_v39 = vpop.permute.xlu1 %4988  ;;  %v4810_v29 = vunpack.i.l.bf16 %v6728_v9  ;;  %v4855_v17 = vunpack.i.l.bf16 %v6978_v10  ;;  %s3343_s5 = sshll.u32 %s7448_s4, 4  ;;  %s7547_s5 = int_to_ptr.vmem [resolvable:$true] %s3343_s5 }
 0x1a2   : > { %v2329_v26 = vsel %vm748_vm3, %v2297_v1, %v4955_v53  ;;  %v2330_v19 = vsel %vm748_vm3, %v2298_v12, %v4956_v21  ;;  %v4991_v56 = vunpack.i.h.bf16 %v4989_v39  ;;  %v4990_v20 = vunpack.i.l.bf16 %v4989_v39  ;;  %4233 = vmatpush3.bf16.xpose.msk.msra.mxu1 %vm6056_vm4, %v4231_v14  ;;  %v5304_v1 = vld [vmem:[%s5469_s28 + $0x50] sm:$0xff]  ;;  %s5325_s9 = scalar_lea.vmem %s7547_s5, 1024  ;;  %p5332_p0 = scmp.lt.s32.totalorder %s7547_s5, %s5330_s11 }
 0x1a3   : > { %v4183_v23 = vpack.c.bf16 %v2330_v19, %v2329_v26  ;;  %v4964_v42 = vpop.permute.xlu0 %4963  ;;  %2364 = vperm.xlu1 %5277, %v3150_v6   ;;  %v2268_v12 = vsel %vm682_vm1, %v5304_v1, %v4811_v35  ;;  %v5306_v26 = vld [vmem:[%s5469_s28 + $0x128] sm:$0xff]  ;;  %v4816_v1 = vunpack.i.h.bf16 %v6848_v58  ;;  %p5326_p11 = scmp.ne.s32.totalorder %s7547_s5, %s5325_s9  ;;  %p5333_p1 = scmp.lt.s32.totalorder %s5331_s17, %s5325_s9 }
 0x1a4   : > { %v2347_v54 = vsel %vm748_vm3, %v2315_v25, %v4990_v20  ;;  %v2348_v7 = vsel %vm748_vm3, %v2316_v34, %v4991_v56  ;;  %v4965_v4 = vunpack.i.l.bf16 %v4964_v42  ;;  %3153 = vperm.xlu0 %4556, %v3150_v6   ;;  %v4966_v8 = vunpack.i.h.bf16 %v4964_v42  ;;  %v5305_v25 = vld [vmem:[%s5469_s28 + $0x48] sm:$0xff] }
 0x1a5   : > { %v4186_v50 = vpack.c.bf16 %v2348_v7, %v2347_v54  ;;  %4185 = vmatpush3.bf16.xpose.msk.msra.mxu0 %vm6056_vm4, %v4183_v23  ;;  %v4999_v36 = vpop.permute.xlu1 %4998  ;;  %v2267_v39 = vsel %vm682_vm1, %v5305_v25, %v4810_v29  ;;  %v2286_v19 = vsel %vm682_vm1, %v5306_v26, %v4856_v41  ;;  %v4815_v25 = vunpack.i.l.bf16 %v6848_v58  ;;  %v5308_v58 = vld [vmem:[%s5469_s28 + $0x68] sm:$0xff]  ;;  %p5327_p12 = pnand %p5326_p11, %p5454_p5  ;;  %p5334_p2 = por %p5333_p1, %p5332_p0 }
 0x1a6   : > { %v3073_v2 = vsel %vm682_vm1, %v3793_v38, %v4965_v4  ;;  %v5001_v63 = vunpack.i.h.bf16 %v4999_v36  ;;  %v5000_v48 = vunpack.i.l.bf16 %v4999_v36  ;;  %v3056_v62 = vsel %vm682_vm1, %v3776_v47, %v4966_v8 }
 0x1a7   : > { %v3105_v46 = vsel %vm715_vm2, %v3073_v2, %v4981_v31  ;;  %v7252_v52 = vpop.permute.xlu0 %4973  ;;  %4188 = vmatprep.subr.msk.bf16.mxu0 %vm6056_vm4, %v4186_v50  ;;  %v5307_v31 = vld [vmem:[%s5469_s28 + $0x120] sm:$0xff]  ;;  %p5328_p13 = pneg %p5327_p12 }
 0x1a8   : > { %v3136_v16 = vsel %vm748_vm3, %v3104_v49, %v5000_v48  ;;  %v3137_v30 = vsel %vm748_vm3, %v3105_v46, %v5001_v63  ;;  %v4975_v40 = vunpack.i.l.bf16 %v7252_v52  ;;  %v2285_v45 = vsel %vm682_vm1, %v5307_v31, %v4855_v17  ;;  %v3794_v49 = vld [vmem:[%s5469_s28 + $0x121] sm:$0xff] }
 0x1a9   : > { %v4234_v11 = vpack.c.bf16 %v3137_v30, %v3136_v16  ;;  %v5009_v13 = vpop.permute.xlu1 %5008  ;;  %v4976_v54 = vunpack.i.h.bf16 %v7252_v52  ;;  %p5335_p3 = pnand %p5334_p2, %p5328_p13 }
 0x1aa   : > { %v5011_v15 = vunpack.i.h.bf16 %v5009_v13  ;;  %v5010_v60 = vunpack.i.l.bf16 %v5009_v13  ;;  %v3057_v14 = vsel %vm682_vm1, %v3777_v55, %v4975_v40 }
 0x1ab   : > { %v4984_v43 = vpop.permute.xlu0 %4983  ;;  %4236 = vmatprep.subr.msk.bf16.mxu1 %vm6056_vm4, %v4234_v11  ;;  %v3795_v11 = vld [vmem:[%s5469_s28 + $0x129] sm:$0xff]  ;;  %v3074_v35 = vsel %vm682_vm1, %v3794_v49, %v4976_v54 }
 0x1ac   : > { %v4986_v21 = vunpack.i.h.bf16 %v4984_v43  ;;  %v4985_v53 = vunpack.i.l.bf16 %v4984_v43 }
 0x1ad   : > { %v5019_v3 = vpop.permute.xlu1 %5018 }
 0x1ae   : > { %v5020_v9 = vunpack.i.l.bf16 %v5019_v3  ;;  %v5021_v56 = vunpack.i.h.bf16 %v5019_v3  ;;  %v2300_v7 = vsel %vm715_vm2, %v2268_v12, %v4986_v21  ;;  %v2299_v4 = vsel %vm715_vm2, %v2267_v39, %v4985_v53  ;;  %v3778_v53 = vld [vmem:[%s5469_s28 + $0x61] sm:$0xff]  ;;  %v3779_v12 = vld [vmem:[%s5469_s28 + $0x69] sm:$0xff] }
 0x1af   : > { %v4994_v57 = vpop.permute.xlu0 %4993  ;;  %v4860_v39 = vunpack.i.l.bf16 %v6895_v0  ;;  %v3633_v0 = vld [vmem:[%s5469_s28 + $0x140] sm:$0xff] }
 0x1b0   : > { %v4996_v28 = vunpack.i.h.bf16 %v4994_v57  ;;  %v4995_v51 = vunpack.i.l.bf16 %v4994_v57  ;;  %v2317_v50 = vsel %vm715_vm2, %v2285_v45, %v5020_v9  ;;  %v2318_v46 = vsel %vm715_vm2, %v2286_v19, %v5021_v56 }
 0x1b1   : > { %v5029_v18 = vpop.permute.xlu1 %5028 }
 0x1b2   : > { %v3088_v6 = vsel %vm715_vm2, %v3056_v62, %v4995_v51  ;;  %v3089_v10 = vsel %vm715_vm2, %v3057_v14, %v4996_v28  ;;  %v5031_v52 = vunpack.i.h.bf16 %v5029_v18  ;;  %v5030_v16 = vunpack.i.l.bf16 %v5029_v18 }
 0x1b3   : > { %v3120_v20 = vsel %vm748_vm3, %v3088_v6, %v5010_v60  ;;  %v3121_v37 = vsel %vm748_vm3, %v3089_v10, %v5011_v15  ;;  %v5004_v34 = vpop.permute.xlu0 %5003 }
 0x1b4   : > { %v4237_v23 = vpack.c.bf16 %v3121_v37, %v3120_v20  ;;  %v5006_v38 = vunpack.i.h.bf16 %v5004_v34  ;;  %v5005_v42 = vunpack.i.l.bf16 %v5004_v34  ;;  %v3106_v15 = vsel %vm715_vm2, %v3074_v35, %v5030_v16 }
 0x1b5   : > { %v5039_v36 = vpop.permute.xlu1 %5038 }
 0x1b6   : > { %v2331_v27 = vsel %vm748_vm3, %v2299_v4, %v5005_v42  ;;  %v2332_v2 = vsel %vm748_vm3, %v2300_v7, %v5006_v38  ;;  %v5041_v63 = vunpack.i.h.bf16 %v5039_v36  ;;  %v5040_v48 = vunpack.i.l.bf16 %v5039_v36  ;;  %4239 = vmatpush3.bf16.xpose.msk.msra.mxu1 %vm6056_vm4, %v4237_v23  ;;  %v5309_v4 = vld [vmem:[%s5469_s28 + $0x60] sm:$0xff] }
 0x1b7   : > { %v4189_v30 = vpack.c.bf16 %v2332_v2, %v2331_v27  ;;  %v5014_v13 = vpop.permute.xlu0 %5013  ;;  %v2270_v42 = vsel %vm682_vm1, %v5308_v58, %v4816_v1 }
 0x1b8   : > { %v2349_v43 = vsel %vm748_vm3, %v2317_v50, %v5040_v48  ;;  %v2350_v8 = vsel %vm748_vm3, %v2318_v46, %v5041_v63  ;;  %v5015_v47 = vunpack.i.l.bf16 %v5014_v13  ;;  %v5016_v21 = vunpack.i.h.bf16 %v5014_v13  ;;  %v5310_v48 = vld [vmem:[%s5469_s28 + $0x138] sm:$0xff] }
 0x1b9   : > { %v4192_v40 = vpack.c.bf16 %v2350_v8, %v2349_v43  ;;  %4191 = vmatpush3.bf16.xpose.msk.msra.mxu0 %vm6056_vm4, %v4189_v30  ;;  %v5049_v3 = vpop.permute.xlu1 %5048  ;;  %v2269_v50 = vsel %vm682_vm1, %v5309_v4, %v4815_v25  ;;  %v2287_v49 = vsel %vm682_vm1, %v5310_v48, %v4860_v39  ;;  %v4820_v4 = vunpack.i.l.bf16 %v6754_v44 }
 0x1ba   : > { %v3075_v29 = vsel %vm682_vm1, %v3795_v11, %v5015_v47  ;;  %v5051_v55 = vunpack.i.h.bf16 %v5049_v3  ;;  %v5050_v41 = vunpack.i.l.bf16 %v5049_v3  ;;  %v3058_v19 = vsel %vm682_vm1, %v3778_v53, %v5016_v21 }
 0x1bb   : > { %v3107_v60 = vsel %vm715_vm2, %v3075_v29, %v5031_v52  ;;  %v5024_v57 = vpop.permute.xlu0 %5023  ;;  %4194 = vmatprep.subr.msk.bf16.mxu0 %vm6056_vm4, %v4192_v40 }
 0x1bc   : > { %v3138_v17 = vsel %vm748_vm3, %v3106_v15, %v5050_v41  ;;  %v3139_v62 = vsel %vm748_vm3, %v3107_v60, %v5051_v55  ;;  %v5025_v9 = vunpack.i.l.bf16 %v5024_v57  ;;  %v5026_v56 = vunpack.i.h.bf16 %v5024_v57  ;;  %v3796_v60 = vld [vmem:[%s5469_s28 + $0x139] sm:$0xff]  ;;  %v3797_v57 = vld [vmem:[%s5469_s28 + $0x141] sm:$0xff] }
 0x1bd   : > { %v4240_v28 = vpack.c.bf16 %v3139_v62, %v3138_v17  ;;  %v5059_v51 = vpop.permute.xlu1 %5058 }
 0x1be   : > { %v5061_v6 = vunpack.i.h.bf16 %v5059_v51  ;;  %v5060_v10 = vunpack.i.l.bf16 %v5059_v51  ;;  %v3059_v34 = vsel %vm682_vm1, %v3779_v12, %v5025_v9  ;;  %v2288_v30 = vsel %vm682_vm1, %v3633_v0, %v5026_v56 }
 0x1bf   : > { %v5034_v14 = vpop.permute.xlu0 %5033  ;;  %4242 = vmatprep.subr.msk.bf16.mxu1 %vm6056_vm4, %v4240_v28  ;;  %v4821_v0 = vunpack.i.h.bf16 %v6754_v44 }
 0x1c0   : > { %v5036_v31 = vunpack.i.h.bf16 %v5034_v14  ;;  %v5035_v45 = vunpack.i.l.bf16 %v5034_v14 }
 0x1c1   : > { %v5069_v18 = vpop.permute.xlu1 %5068 }
 0x1c2   : > { %v5070_v23 = vunpack.i.l.bf16 %v5069_v18  ;;  %v5071_v36 = vunpack.i.h.bf16 %v5069_v18  ;;  %v2301_v11 = vsel %vm715_vm2, %v2269_v50, %v5035_v45  ;;  %v2302_v13 = vsel %vm715_vm2, %v2270_v42, %v5036_v31  ;;  %v3780_v45 = vld [vmem:[%s5469_s28 + $0x79] sm:$0xff] }
 0x1c3   : > { %v5044_v26 = vpop.permute.xlu0 %5043 }
 0x1c4   : > { %v5046_v20 = vunpack.i.h.bf16 %v5044_v26  ;;  %v5045_v37 = vunpack.i.l.bf16 %v5044_v26  ;;  %v2319_v43 = vsel %vm715_vm2, %v2287_v49, %v5070_v23  ;;  %v2320_v29 = vsel %vm715_vm2, %v2288_v30, %v5071_v36  ;;  %v3781_v23 = vld [vmem:[%s5469_s28 + $0x81] sm:$0xff] }
 0x1c5   : > { %v5079_v38 = vpop.permute.xlu1 %5078  ;;  %v5311_v30 = vld [vmem:[%s5469_s28 + $0x80] sm:$0xff] }
 0x1c6   : > { %v3090_v54 = vsel %vm715_vm2, %v3058_v19, %v5045_v37  ;;  %v3091_v7 = vsel %vm715_vm2, %v3059_v34, %v5046_v20  ;;  %v5081_v55 = vunpack.i.h.bf16 %v5079_v38  ;;  %v5080_v41 = vunpack.i.l.bf16 %v5079_v38 }
 0x1c7   : > { %v3122_v27 = vsel %vm748_vm3, %v3090_v54, %v5060_v10  ;;  %v3123_v2 = vsel %vm748_vm3, %v3091_v7, %v5061_v6  ;;  %v5054_v63 = vpop.permute.xlu0 %5053  ;;  %v2272_v44 = vsel %vm682_vm1, %v5311_v30, %v4821_v0 }
 0x1c8   : > { %v4243_v46 = vpack.c.bf16 %v3123_v2, %v3122_v27  ;;  %v5056_v52 = vunpack.i.h.bf16 %v5054_v63  ;;  %v5055_v16 = vunpack.i.l.bf16 %v5054_v63 }
 0x1c9   : > { %v5089_v8 = vpop.permute.xlu1 %5088 }
 0x1ca   : > { %v2333_v47 = vsel %vm748_vm3, %v2301_v11, %v5055_v16  ;;  %v2334_v40 = vsel %vm748_vm3, %v2302_v13, %v5056_v52  ;;  %v5091_v3 = vunpack.i.h.bf16 %v5089_v8  ;;  %v5090_v35 = vunpack.i.l.bf16 %v5089_v8  ;;  %4245 = vmatpush3.bf16.xpose.msk.msra.mxu1 %vm6056_vm4, %v4243_v46 }
 0x1cb   : > { %v4195_v15 = vpack.c.bf16 %v2334_v40, %v2333_v47  ;;  %v5064_v17 = vpop.permute.xlu0 %5063 }
 0x1cc   : > { %v2351_v62 = vsel %vm748_vm3, %v2319_v43, %v5090_v35  ;;  %v2352_v28 = vsel %vm748_vm3, %v2320_v29, %v5091_v3  ;;  %v5066_v51 = vunpack.i.h.bf16 %v5064_v17  ;;  %v5065_v14 = vunpack.i.l.bf16 %v5064_v17  ;;  %v5312_v43 = vld [vmem:[%s5469_s28 + $0x78] sm:$0xff] }
 0x1cd   : > { %v4198_v21 = vpack.c.bf16 %v2352_v28, %v2351_v62  ;;  %4197 = vmatpush3.bf16.xpose.msk.msra.mxu0 %vm6056_vm4, %v4195_v15  ;;  %v5099_v53 = vpop.permute.xlu1 %5098  ;;  %v2271_v8 = vsel %vm682_vm1, %v5312_v43, %v4820_v4  ;;  %v4826_v17 = vunpack.i.h.bf16 %v6881_v33  ;;  %v4825_v62 = vunpack.i.l.bf16 %v6881_v33 }
 0x1ce   : > { %v3077_v9 = vsel %vm682_vm1, %v3797_v57, %v5066_v51  ;;  %v3076_v18 = vsel %vm682_vm1, %v3796_v60, %v5065_v14  ;;  %v5101_v1 = vunpack.i.h.bf16 %v5099_v53  ;;  %v5100_v12 = vunpack.i.l.bf16 %v5099_v53  ;;  %v3799_v53 = vld [vmem:[%s5469_s28 + $0x159] sm:$0xff] }
 0x1cf   : > { %v3108_v25 = vsel %vm715_vm2, %v3076_v18, %v5080_v41  ;;  %v3109_v39 = vsel %vm715_vm2, %v3077_v9, %v5081_v55  ;;  %v5074_v6 = vpop.permute.xlu0 %5073  ;;  %4200 = vmatprep.subr.msk.bf16.mxu0 %vm6056_vm4, %v4198_v21  ;;  %v3798_v21 = vld [vmem:[%s5469_s28 + $0x151] sm:$0xff] }
 0x1d0   : > { %v3140_v10 = vsel %vm748_vm3, %v3108_v25, %v5100_v12  ;;  %v3141_v26 = vsel %vm748_vm3, %v3109_v39, %v5101_v1  ;;  %v5076_v37 = vunpack.i.h.bf16 %v5074_v6  ;;  %v5075_v34 = vunpack.i.l.bf16 %v5074_v6  ;;  %v3634_v39 = vld [vmem:[%s5469_s28 + $0x150] sm:$0xff]  ;;  %v3635_v6 = vld [vmem:[%s5469_s28 + $0x158] sm:$0xff] }
 0x1d1   : > { %v4246_v19 = vpack.c.bf16 %v3141_v26, %v3140_v10  ;;  %v5109_v56 = vpop.permute.xlu1 %5108 }
 0x1d2   : > { %v5111_v38 = vunpack.i.h.bf16 %v5109_v56  ;;  %v5110_v58 = vunpack.i.l.bf16 %v5109_v56  ;;  %v3061_v50 = vsel %vm682_vm1, %v3781_v23, %v5076_v37  ;;  %v3060_v36 = vsel %vm682_vm1, %v3780_v45, %v5075_v34  ;;  %v5314_v56 = vld [vmem:[%s5469_s28 + $0x90] sm:$0xff] }
 0x1d3   : > { %v5084_v20 = vpop.permute.xlu0 %5083  ;;  %4248 = vmatprep.subr.msk.bf16.mxu1 %vm6056_vm4, %v4246_v19  ;;  %v5313_v19 = vld [vmem:[%s5469_s28 + $0x98] sm:$0xff] }
 0x1d4   : > { %v5086_v27 = vunpack.i.h.bf16 %v5084_v20  ;;  %v5085_v63 = vunpack.i.l.bf16 %v5084_v20  ;;  %v2274_v33 = vsel %vm682_vm1, %v5313_v19, %v4826_v17  ;;  %v2273_v20 = vsel %vm682_vm1, %v5314_v56, %v4825_v62 }
 0x1d5   : > { %v7349_v31 = vpop.permute.xlu1 %5118 }
 0x1d6   : > { %v2304_v47 = vsel %vm715_vm2, %v2272_v44, %v5086_v27  ;;  %v2303_v35 = vsel %vm715_vm2, %v2271_v8, %v5085_v63  ;;  %v5121_v51 = vunpack.i.h.bf16 %v7349_v31  ;;  %v5120_v14 = vunpack.i.l.bf16 %v7349_v31 }
 0x1d7   : > { %v5094_v42 = vpop.permute.xlu0 %5093 }
 0x1d8   : > { %v5096_v54 = vunpack.i.h.bf16 %v5094_v42  ;;  %v5095_v7 = vunpack.i.l.bf16 %v5094_v42  ;;  %v3079_v45 = vsel %vm682_vm1, %v3799_v53, %v5121_v51  ;;  %v3078_v23 = vsel %vm682_vm1, %v3798_v21, %v5120_v14 }
 0x1d9   : > { %v7357_v2 = vpop.permute.xlu1 %5128 }
 0x1da   : > { %v3092_v48 = vsel %vm715_vm2, %v3060_v36, %v5095_v7  ;;  %v3093_v49 = vsel %vm715_vm2, %v3061_v50, %v5096_v54  ;;  %v3782_v50 = vld [vmem:[%s5469_s28 + $0x91] sm:$0xff]  ;;  %v3783_v36 = vld [vmem:[%s5469_s28 + $0x99] sm:$0xff] }
 0x1db   : > { %v3124_v46 = vsel %vm748_vm3, %v3092_v48, %v5110_v58  ;;  %v3125_v52 = vsel %vm748_vm3, %v3093_v49, %v5111_v38  ;;  %v5104_v16 = vpop.permute.xlu0 %5103  ;;  %v5131_v38 = vunpack.i.h.bf16 %v7357_v2  ;;  %v5130_v58 = vunpack.i.l.bf16 %v7357_v2 }
 0x1dc   : > { %v4249_v11 = vpack.c.bf16 %v3125_v52, %v3124_v46  ;;  %v5106_v13 = vunpack.i.h.bf16 %v5104_v16  ;;  %v5105_v40 = vunpack.i.l.bf16 %v5104_v16 }
 0x1dd   : > { %v5139_v3 = vpop.permute.xlu1 %5138  ;;  %v3063_v8 = vsel %vm682_vm1, %v3783_v36, %v5131_v38 }
 0x1de   : > { %v2336_v29 = vsel %vm748_vm3, %v2304_v47, %v5106_v13  ;;  %4251 = vmatpush3.bf16.xpose.msk.msra.mxu1 %vm6056_vm4, %v4249_v11  ;;  %v2335_v55 = vsel %vm748_vm3, %v2303_v35, %v5105_v40  ;;  %v5141_v9 = vunpack.i.h.bf16 %v5139_v3  ;;  %v5140_v18 = vunpack.i.l.bf16 %v5139_v3  ;;  %v3636_v3 = vld [vmem:[%s5469_s28 + $0x168] sm:$0xff]  ;;  %v3637_v35 = vld [vmem:[%s5469_s28 + $0x170] sm:$0xff] }
 0x1df   : > { %v5114_v41 = vpop.permute.xlu0 %5113  ;;  %v4201_v15 = vpack.c.bf16 %v2336_v29, %v2335_v55  ;;  %v3062_v47 = vsel %vm682_vm1, %v3782_v50, %v5130_v58  ;;  %v5315_v50 = vld [vmem:[%s5469_s28 + $0x171] sm:$0xff] }
 0x1e0   : > { %v5116_v1 = vunpack.i.h.bf16 %v5114_v41  ;;  %v5115_v12 = vunpack.i.l.bf16 %v5114_v41  ;;  %v2305_v42 = vsel %vm715_vm2, %v2273_v20, %v5140_v18  ;;  %v2306_v0 = vsel %vm715_vm2, %v2274_v33, %v5141_v9 }
 0x1e1   : > { %v7373_v60 = vpop.permute.xlu1 %5148  ;;  %4203 = vmatpush3.bf16.xpose.msk.msra.mxu0 %vm6056_vm4, %v4201_v15 }
 0x1e2   : > { %v2290_v54 = vsel %vm682_vm1, %v3635_v6, %v5116_v1  ;;  %v2289_v7 = vsel %vm682_vm1, %v3634_v39, %v5115_v12  ;;  %v5151_v40 = vunpack.i.h.bf16 %v7373_v60  ;;  %v5150_v41 = vunpack.i.l.bf16 %v7373_v60 }
 0x1e3   : > { %v5124_v57 = vpop.permute.xlu0 %5123 }
 0x1e4   : > { %v5126_v10 = vunpack.i.h.bf16 %v5124_v57  ;;  %v5125_v26 = vunpack.i.l.bf16 %v5124_v57  ;;  %v3094_v6 = vsel %vm715_vm2, %v3062_v47, %v5150_v41  ;;  %v3784_v41 = vld [vmem:[%s5469_s28 + $0xa9] sm:$0xff] }
 0x1e5   : > { %v5159_v28 = vpop.permute.xlu1 %5158 }
 0x1e6   : > { %v5161_v37 = vunpack.i.h.bf16 %v5159_v28  ;;  %v5160_v34 = vunpack.i.l.bf16 %v5159_v28  ;;  %v2321_v27 = vsel %vm715_vm2, %v2289_v7, %v5125_v26  ;;  %v2322_v63 = vsel %vm715_vm2, %v2290_v54, %v5126_v10 }
 0x1e7   : > { %v5134_v25 = vpop.permute.xlu0 %5133  ;;  %v3095_v10 = vsel %vm715_vm2, %v3063_v8, %v5151_v40 }
 0x1e8   : > { %v2337_v2 = vsel %vm748_vm3, %v2305_v42, %v5160_v34  ;;  %v2338_v46 = vsel %vm748_vm3, %v2306_v0, %v5161_v37  ;;  %v5136_v52 = vunpack.i.h.bf16 %v5134_v25  ;;  %v5135_v16 = vunpack.i.l.bf16 %v5134_v25 }
 0x1e9   : > { %v5169_v31 = vpop.permute.xlu1 %5168  ;;  %v4207_v15 = vpack.c.bf16 %v2338_v46, %v2337_v2 }
 0x1ea   : > { %v5171_v44 = vunpack.i.h.bf16 %v5169_v31  ;;  %v5170_v11 = vunpack.i.l.bf16 %v5169_v31  ;;  %v3111_v62 = vsel %vm715_vm2, %v3079_v45, %v5136_v52  ;;  %v3110_v28 = vsel %vm715_vm2, %v3078_v23, %v5135_v16 }
 0x1eb   : > { %v5144_v4 = vpop.permute.xlu0 %5143 }
 0x1ec   : > { %v5146_v48 = vunpack.i.h.bf16 %v5144_v4  ;;  %v5145_v49 = vunpack.i.l.bf16 %v5144_v4  ;;  %v2292_v53 = vsel %vm682_vm1, %v3637_v35, %v5171_v44  ;;  %v2291_v9 = vsel %vm682_vm1, %v3636_v3, %v5170_v11 }
 0x1ed   : > { %v5179_v30 = vpop.permute.xlu1 %5178 }
 0x1ee   : > { %v2353_v13 = vsel %vm748_vm3, %v2321_v27, %v5145_v49  ;;  %v2354_v43 = vsel %vm748_vm3, %v2322_v63, %v5146_v48  ;;  %v5181_v51 = vunpack.i.h.bf16 %v5179_v30  ;;  %v5180_v14 = vunpack.i.l.bf16 %v5179_v30  ;;  %v5316_v27 = vld [vmem:[%s5469_s28 + $0x169] sm:$0xff] }
 0x1ef   : > { %v4204_v29 = vpack.c.bf16 %v2354_v43, %v2353_v13  ;;  %v5154_v55 = vpop.permute.xlu0 %5153  ;;  %v7779_v43 = vld [vmem:[#allocation7_spill] sm:$0xff] }
 0x1f0   : > { %v5156_v57 = vunpack.i.h.bf16 %v5154_v55  ;;  %v5155_v17 = vunpack.i.l.bf16 %v5154_v55  ;;  %v2323_v26 = vsel %vm715_vm2, %v2291_v9, %v5180_v14  ;;  %v2324_v19 = vsel %vm715_vm2, %v2292_v53, %v5181_v51 }
 0x1f1   : > { %4206 = vmatprep.subr.msk.bf16.mxu0 %vm6056_vm4, %v4204_v29  ;;  %v5189_v21 = vpop.permute.xlu1 %5188 }
 0x1f2   : > { %v3142_v18 = vsel %vm748_vm3, %v3110_v28, %v5155_v17  ;;  %v3143_v60 = vsel %vm748_vm3, %v3111_v62, %v5156_v57  ;;  %4209 = vmatpush3.bf16.xpose.msk.msra.mxu0 %vm6056_vm4, %v4207_v15  ;;  %v5191_v31 = vunpack.i.h.bf16 %v5189_v21  ;;  %v5190_v45 = vunpack.i.l.bf16 %v5189_v21  ;;  %v3785_v15 = vld [vmem:[%s5469_s28 + $0xb1] sm:$0xff] }
 0x1f3   : > { %v4252_v1 = vpack.c.bf16 %v3143_v60, %v3142_v18  ;;  %v5164_v12 = vpop.permute.xlu0 %5163  ;;  %v4831_v28 = vunpack.i.h.bf16 %v6798_v61  ;;  %v4830_v21 = vunpack.i.l.bf16 %v6798_v61 }
 0x1f4   : > { %v5166_v25 = vunpack.i.h.bf16 %v5164_v12  ;;  %v5165_v39 = vunpack.i.l.bf16 %v5164_v12 }
 0x1f5   : > { %4254 = vmatprep.subr.msk.bf16.mxu1 %vm6056_vm4, %v4252_v1  ;;  %v5199_v33 = vpop.permute.xlu1 %5198 }
 0x1f6   : > { %v3127_v56 = vsel %vm748_vm3, %v3095_v10, %v5166_v25  ;;  %v3126_v20 = vsel %vm748_vm3, %v3094_v6, %v5165_v39  ;;  %v5201_v37 = vunpack.i.h.bf16 %v5199_v33  ;;  %v5200_v34 = vunpack.i.l.bf16 %v5199_v33 }
 0x1f7   : > { %v4255_v23 = vpack.c.bf16 %v3127_v56, %v3126_v20  ;;  %v5174_v38 = vpop.permute.xlu0 %5173  ;;  %v5318_v56 = vld [vmem:[%s5469_s28 + $0xa8] sm:$0xff] }
 0x1f8   : > { %v2355_v58 = vsel %vm748_vm3, %v2323_v26, %v5200_v34  ;;  %v2356_v42 = vsel %vm748_vm3, %v2324_v19, %v5201_v37  ;;  %v5176_v0 = vunpack.i.h.bf16 %v5174_v38  ;;  %v5175_v54 = vunpack.i.l.bf16 %v5174_v38  ;;  %v5317_v26 = vld [vmem:[%s5469_s28 + $0xb0] sm:$0xff] }
 0x1f9   : > { %v4210_v7 = vpack.c.bf16 %v2356_v42, %v2355_v58  ;;  %4257 = vmatpush3.bf16.xpose.msk.msra.mxu1 %vm6056_vm4, %v4255_v23  ;;  %v5209_v4 = vpop.permute.xlu1 %5208  ;;  %v2276_v61 = vsel %vm682_vm1, %v5317_v26, %v4831_v28  ;;  %v2275_v20 = vsel %vm682_vm1, %v5318_v56, %v4830_v21 }
 0x1fa   : > { %v3081_v36 = vsel %vm682_vm1, %v5315_v50, %v5176_v0  ;;  %v3080_v63 = vsel %vm682_vm1, %v5316_v27, %v5175_v54  ;;  %v5211_v48 = vunpack.i.h.bf16 %v5209_v4  ;;  %v5210_v49 = vunpack.i.l.bf16 %v5209_v4 }
 0x1fb   : > { %v3112_v2 = vsel %vm715_vm2, %v3080_v63, %v5190_v45  ;;  %v3113_v46 = vsel %vm715_vm2, %v3081_v36, %v5191_v31  ;;  %v5184_v52 = vpop.permute.xlu0 %5183  ;;  %v954_v16 = vpop.f32.mrb[0].mxu0  ;;  %4212 = vmatprep.subr.msk.bf16.mxu0 %vm6056_vm4, %v4210_v7  ;;  %v4836_v7 = vunpack.i.h.bf16 %v6915_v22  ;;  %v4835_v4 = vunpack.i.l.bf16 %v6915_v22 }
 0x1fc   : > { %v3144_v30 = vsel %vm748_vm3, %v3112_v2, %v5210_v49  ;;  %v3145_v44 = vsel %vm748_vm3, %v3113_v46, %v5211_v48  ;;  %v956_v11 = vpop.f32.mrb[1].mxu0  ;;  %v955_v8 = vadd.f32 %v954_v16, %v7779_v43  ;;  %v5186_v35 = vunpack.i.h.bf16 %v5184_v52  ;;  %v3638_v2 = vld [vmem:[%s5469_s28 + $0x180] sm:$0xff]  ;;  %v3639_v46 = vld [vmem:[%s5469_s28 + $0x188] sm:$0xff] }
 0x1fd   : > { %v4258_v13 = vpack.c.bf16 %v3145_v44, %v3144_v30  ;;  %v957_v47 = vadd.f32 %v956_v11, %v7779_v43  ;;  %v5219_v40 = vpop.permute.xlu1 %5218  ;;  %v5185_v29 = vunpack.i.l.bf16 %v5184_v52  ;;  %v5319_v11 = vld [vmem:[%s5469_s28 + $0xc8] sm:$0xff]  ;;  %v5320_v43 = vld [vmem:[%s5469_s28 + $0xc0] sm:$0xff] }
 0x1fe   : > { %959 = vst [vmem:[%s7448_s4] sm:$0xff] %v955_v8  ;;  %v5221_v57 = vunpack.i.h.bf16 %v5219_v40  ;;  %v5220_v17 = vunpack.i.l.bf16 %v5219_v40  ;;  %v3065_v53 = vsel %vm682_vm1, %v3785_v15, %v5186_v35  ;;  %v2277_v8 = vsel %vm682_vm1, %v5320_v43, %v4835_v4 }
 0x1ff   : > { %960 = vst [vmem:[%s7448_s4 + $0x8] sm:$0xff] %v957_v47  ;;  %v5194_v3 = vpop.permute.xlu0 %5193  ;;  %4260 = vmatprep.subr.msk.bf16.mxu1 %vm6056_vm4, %v4258_v13  ;;  %v3064_v9 = vsel %vm682_vm1, %v3784_v41, %v5185_v29  ;;  %v2278_v13 = vsel %vm682_vm1, %v5319_v11, %v4836_v7 }
 0x200   : > { %v5196_v18 = vunpack.i.h.bf16 %v5194_v3  ;;  %v5195_v1 = vunpack.i.l.bf16 %v5194_v3 }
 0x201   : > { %v7454_v55 = vpop.permute.xlu1 %5228 }
 0x202   : > { %v2308_v37 = vsel %vm715_vm2, %v2276_v61, %v5196_v18  ;;  %v2307_v45 = vsel %vm715_vm2, %v2275_v20, %v5195_v1  ;;  %v5231_v22 = vunpack.i.h.bf16 %v7454_v55  ;;  %v5230_v47 = vunpack.i.l.bf16 %v7454_v55  ;;  %v5321_v1 = vld [vmem:[%s5469_s28 + $0x189] sm:$0xff] }
 0x203   : > { %v5204_v62 = vpop.permute.xlu0 %5203 }
 0x204   : > { %v5206_v51 = vunpack.i.h.bf16 %v5204_v62  ;;  %v5205_v14 = vunpack.i.l.bf16 %v5204_v62 }
 0x205   : > { %v7462_v60 = vpop.permute.xlu1 %5238 }
 0x206   : > { %v3096_v12 = vsel %vm715_vm2, %v3064_v9, %v5205_v14  ;;  %v3097_v25 = vsel %vm715_vm2, %v3065_v53, %v5206_v51  ;;  %v5241_v21 = vunpack.i.h.bf16 %v7462_v60  ;;  %v5240_v53 = vunpack.i.l.bf16 %v7462_v60 }
 0x207   : > { %v3128_v39 = vsel %vm748_vm3, %v3096_v12, %v5220_v17  ;;  %v3129_v6 = vsel %vm748_vm3, %v3097_v25, %v5221_v57  ;;  %v5214_v10 = vpop.permute.xlu0 %5213  ;;  %v3083_v12 = vsel %vm682_vm1, %v5321_v1, %v5231_v22 }
 0x208   : > { %v4261_v19 = vpack.c.bf16 %v3129_v6, %v3128_v39  ;;  %v5216_v33 = vunpack.i.h.bf16 %v5214_v10  ;;  %v5215_v34 = vunpack.i.l.bf16 %v5214_v10  ;;  %v5322_v6 = vld [vmem:[%s5469_s28 + $0x181] sm:$0xff] }
 0x209   : > { %v5249_v31 = vpop.permute.xlu1 %5248  ;;  %v3082_v10 = vsel %vm682_vm1, %v5322_v6, %v5230_v47 }
 0x20a   : > { %v2340_v23 = vsel %vm748_vm3, %v2308_v37, %v5216_v33  ;;  %4263 = vmatpush3.bf16.xpose.msk.msra.mxu1 %vm6056_vm4, %v4261_v19  ;;  %v2339_v38 = vsel %vm748_vm3, %v2307_v45, %v5215_v34  ;;  %v5251_v36 = vunpack.i.h.bf16 %v5249_v31  ;;  %v5250_v27 = vunpack.i.l.bf16 %v5249_v31  ;;  %v5323_v37 = vld [vmem:[%s5469_s28 + $0xc9] sm:$0xff]  ;;  %v5324_v31 = vld [vmem:[%s5469_s28 + $0xc1] sm:$0xff]  ;;  %s3941_s28 = sshll.u32 %s5437_s16, 10  ;;  %s7553_s16 = scalar_lea.sflag [#allocation3], %s161_s29 }
 0x20b   : > { %v5224_v58 = vpop.permute.xlu0 %5223  ;;  %v4213_v42 = vpack.c.bf16 %v2340_v23, %v2339_v38  ;;  %v3067_v34 = vsel %vm682_vm1, %v5323_v37, %v5241_v21  ;;  %v3066_v45 = vsel %vm682_vm1, %v5324_v31, %v5240_v53  ;;  %s7545_s8 = scalar_lea.hbm %s7597_s3, %s3941_s28 }
 0x20c   : > { %v5226_v63 = vunpack.i.h.bf16 %v5224_v58  ;;  %v5225_v48 = vunpack.i.l.bf16 %v5224_v58  ;;  %v2309_v40 = vsel %vm715_vm2, %v2277_v8, %v5250_v27  ;;  %v2310_v3 = vsel %vm715_vm2, %v2278_v13, %v5251_v36 }
 0x20d   : > { %v7478_v0 = vpop.permute.xlu1 %5258  ;;  %4215 = vmatpush3.bf16.xpose.msk.msra.mxu0 %vm6056_vm4, %v4213_v42 }
 0x20e   : > { %v2294_v35 = vsel %vm682_vm1, %v3639_v46, %v5226_v63  ;;  %v2293_v29 = vsel %vm682_vm1, %v3638_v2, %v5225_v48  ;;  %v5261_v33 = vunpack.i.h.bf16 %v7478_v0  ;;  %v5260_v60 = vunpack.i.l.bf16 %v7478_v0 }
 0x20f   : > { %v5234_v54 = vpop.permute.xlu0 %5233 }
 0x210   : > { %v5236_v52 = vunpack.i.h.bf16 %v5234_v54  ;;  %v5235_v16 = vunpack.i.l.bf16 %v5234_v54  ;;  %v3098_v7 = vsel %vm715_vm2, %v3066_v45, %v5260_v60  ;;  %v3099_v4 = vsel %vm715_vm2, %v3067_v34, %v5261_v33 }
 0x211   : > { %v5269_v50 = vpop.permute.xlu1 %5268 }
 0x212   : > { %v5271_v30 = vunpack.i.h.bf16 %v5269_v50  ;;  %v5270_v44 = vunpack.i.l.bf16 %v5269_v50  ;;  %v2325_v15 = vsel %vm715_vm2, %v2293_v29, %v5235_v16  ;;  %v2326_v57 = vsel %vm715_vm2, %v2294_v35, %v5236_v52 }
 0x213   : > { %v5244_v49 = vpop.permute.xlu0 %5243 }
 0x214   : > { %v2341_v28 = vsel %vm748_vm3, %v2309_v40, %v5270_v44  ;;  %v2342_v55 = vsel %vm748_vm3, %v2310_v3, %v5271_v30  ;;  %v5246_v51 = vunpack.i.h.bf16 %v5244_v49  ;;  %v5245_v14 = vunpack.i.l.bf16 %v5244_v49 }
 0x215   : > { %v4219_v26 = vpack.c.bf16 %v2342_v55, %v2341_v28 }
 0x216   : > { %v3115_v56 = vsel %vm715_vm2, %v3083_v12, %v5246_v51  ;;  %v3114_v20 = vsel %vm715_vm2, %v3082_v10, %v5245_v14 }
 0x217   : > { %v5254_v41 = vpop.permute.xlu0 %5253 }
 0x218   : > { %v5256_v17 = vunpack.i.h.bf16 %v5254_v41  ;;  %v5255_v62 = vunpack.i.l.bf16 %v5254_v41 }
 0x21a   : > { %v2357_v9 = vsel %vm748_vm3, %v2325_v15, %v5255_v62  ;;  %v2358_v18 = vsel %vm748_vm3, %v2326_v57, %v5256_v17 }
 0x21b   : > { %v4216_v25 = vpack.c.bf16 %v2358_v18, %v2357_v9  ;;  %v5264_v39 = vpop.permute.xlu0 %5263 }
 0x21c   : > { %v5266_v61 = vunpack.i.h.bf16 %v5264_v39  ;;  %v5265_v19 = vunpack.i.l.bf16 %v5264_v39 }
 0x21d   : > { %4218 = vmatprep.subr.msk.bf16.mxu0 %vm6056_vm4, %v4216_v25 }
 0x21e   : > { %v3146_v23 = vsel %vm748_vm3, %v3114_v20, %v5265_v19  ;;  %v3147_v38 = vsel %vm748_vm3, %v3115_v56, %v5266_v61  ;;  %4221 = vmatpush3.bf16.xpose.msk.msra.mxu0 %vm6056_vm4, %v4219_v26 }
 0x21f   : > { %v4264_v58 = vpack.c.bf16 %v3147_v38, %v3146_v23  ;;  %v5274_v42 = vpop.permute.xlu0 %5273 }
 0x220   : > { %v5276_v0 = vunpack.i.h.bf16 %v5274_v42  ;;  %v5275_v54 = vunpack.i.l.bf16 %v5274_v42 }
 0x221   : > { %4266 = vmatprep.subr.msk.bf16.mxu1 %vm6056_vm4, %v4264_v58 }
 0x222   : > { %v3131_v50 = vsel %vm748_vm3, %v3099_v4, %v5276_v0  ;;  %v3130_v36 = vsel %vm748_vm3, %v3098_v7, %v5275_v54  ;;  %v2365_v46 = vpop.permute.xlu1 %2364 }
 0x223   : > { %v4267_v27 = vpack.c.bf16 %v3131_v50, %v3130_v36 }
 0x225   : > { %4269 = vmatpush3.bf16.xpose.msk.msra.mxu1 %vm6056_vm4, %v4267_v27  ;;  %4043 = vmatmul.mubr.msk.f32.vlgmr.msra.gmra.mrb[2].mxu0 %vm788_vm0, %v7237_v24 }
 0x22c   : > { %4077 = vmatmul.mubr.msk.f32.vlgmr.msra.gmra.mrb[2].mxu1 %vm788_vm0, %v7242_v32  ;;  %v3154_v32 = vpop.permute.xlu0 %3153 }
 0x268   : > { %v1742_v63 = vpop.f32.mrb[0].mxu1 }
 0x269   : > { %v1743_v48 = vadd.f32 %v1742_v63, %v6776_v59  ;;  %v1744_v49 = vpop.f32.mrb[1].mxu1 }
 0x26a   : > { %v1745_v2 = vadd.f32 %v1744_v49, %v6776_v59 }
 0x26b   : > { %3606 = vst [vmem:[%s7448_s4 + $0x10] sm:$0xff] %v1743_v48 }
 0x26c   : > { %3607 = vst [vmem:[%s7448_s4 + $0x18] sm:$0xff] %v1745_v2 }
 0x2f8   : > { %v2532_v5 = vpop.f32.mrb[2].mxu0 }
 0x2f9   : > { %v2533_v52 = vadd.f32 %v2532_v5, %v2365_v46  ;;  %v2534_v16 = vpop.f32.mrb[3].mxu0 }
 0x2fa   : > { %v2535_v24 = vadd.f32 %v2534_v16, %v2365_v46 }
 0x2fb   : > { %3770 = vst [vmem:[%s7448_s4 + $0x20] sm:$0xff] %v2533_v52 }
 0x2fc   : > { %3771 = vst [vmem:[%s7448_s4 + $0x28] sm:$0xff] %v2535_v24 }
 0x2ff   : > { %v3321_v30 = vpop.f32.mrb[2].mxu1 }
 0x300   : > { %v3322_v44 = vadd.f32 %v3321_v30, %v3154_v32  ;;  %v3323_v11 = vpop.f32.mrb[3].mxu1 }
 0x301   : > { %v3324_v59 = vadd.f32 %v3323_v11, %v3154_v32 }
 0x302   : > { %3934 = vst [vmem:[%s7448_s4 + $0x30] sm:$0xff] %v3322_v44 }
 0x303   : > { %3935 = vst [vmem:[%s7448_s4 + $0x38] sm:$0xff] %v3324_v59 }
 0x304   : > { %5338 = shalt.err (!%p5335_p3)
}
 0x305   : > { %s5339_s19 = scalar_lea.hbm %s7545_s8, 1024  ;;  %s5343_s25 = scalar_lea.hbm %s7597_s3, 2048 }
 0x306   : > { %p5340_p4 = scmp.ne.s32.totalorder %s7545_s8, %s5339_s19  ;;  %p5344_p9 = scmp.lt.u32.totalorder %s7545_s8, %s7597_s3 }
 0x307   : > { %p5345_p10 = scmp.lt.u32.totalorder %s5343_s25, %s5339_s19  ;;  %p5347_p12 = scmp.lt.u32.totalorder %s5339_s19, %s7545_s8 }
 0x308   : > { %p5341_p7 = pnand %p5340_p4, %p5454_p5 }
 0x309   : > { %p5346_p11 = por %p5345_p10, %p5344_p9 }
 0x30a   : > { %p5342_p8 = pneg %p5341_p7 }
 0x30b   : > { %p5348_p13 = por %p5347_p12, %p5346_p11 }
 0x30d   : > { %p5349_p0 = pnand %p5348_p13, %p5342_p8 }
 0x30f   : > { %5352 = shalt.err (!%p5349_p0)
}
 0x310   : > { %s5394_s29 = smov 256   ;;  %s5395_s30 = smov 16  }
 0x311   : > { %4271 = dma.vmem_to_hbm [thread:$0]  (%p5454_p5), %s7547_s5, 1024, %s7545_s8, %s7553_s16, %s5394_s29, %s5394_s29, %s5395_s30  }
 0x312 PF: > { %p4277_p1 = scmp.ge.s32.totalorder %s5387_s15, 2  ;;  %s3358_s4 = sand.u32 1, %s5375_s12  }
 0x313   : > { %s3359_s28 = scalar_lea.sflag [#allocation3], %s3358_s4 }
 0x314   : > { %p4274_p2 = pnand %p4277_p1, %p5458_p6 }
 0x316   : > { %5370 = dma.done.wait (!%p4274_p2), %s3359_s28, 1024  }
 0x317   : > { %5372 = vsyncadd (!%p4274_p2), %s3359_s28, 4294966272  ;;  %p13_p3 = scmp.ge.s32.totalorder %s5441_s18, 4   ;;  %s7780_s12 = smov %s5379_s13 }
 0x318   : > { %s7781_s13 = smov %s5383_s14  ;;  %s7782_s14 = smov %s5452_s21 }
 0x319   : > { %s7783_s15 = smov %s5441_s18  ;;  %15 = sbr.rel (!%p13_p3) target bundleno = 3 (0x3), region = 75 }
 0x320   :  { %3364 = vsyncpa [#allocation3], 1 }
 0x321   :  { %3366 = vsyncpa [#allocation3 + $0x1], 1 }

</bundles_post_ra>
